<compile_context>
chip_gen: v7x
topology: tpu7x:2x2x1
jax: 0.10.0
libtpu: 0.0.40
codegen_flags: <defaults>
</compile_context>

<pallas_src>
import functools

import jax
import jax.numpy as jnp
from jax import lax
from jax.experimental import pallas as pl
from jax.experimental.pallas import tpu as pltpu

_EPS = 1e-5  # nn.BatchNorm2d default eps


# ----------------------------------- tile-size pickers -----------------------------------

def _pick_strip(h, w, max_rows=1024):
    """Largest th dividing h with th*w <= max_rows and a lane-legal output block
    (th*w % 128 == 0 or th == h).  Falls back to the whole image (single strip)."""
    for th in range(h, 0, -1):
        if h % th == 0 and th * w <= max_rows and (th == h or (th * w) % 128 == 0):
            return th
    return h


def _pick_lane_tile(hw, c, itemsize=4, max_bytes=4 << 20):
    """Lane-dim tile for the elementwise epilogue: whole image if it fits a few MB,
    otherwise the largest 128-multiple divisor under the byte budget."""
    if c * hw * itemsize <= max_bytes:
        return hw
    for tl in range(hw, 0, -1):
        if hw % tl == 0 and tl % 128 == 0 and c * tl * itemsize <= max_bytes:
            return tl
    return hw


# ------------------- conv3x3 (stride 1, pad 1) with fused input affine/ReLU -------------------

def _conv3x3_kernel(x_hbm, w_ref, scale_ref, shift_ref, y_ref, stat_ref,
                    land_ref, xpad_ref, sem, *, apply_input_relu, th):
    """One (sample, row-strip) grid step.

    x_hbm    : (N, Cin, H*W)   channel-major activation, left in HBM (pl.ANY)
    w_ref    : (9, Cin, Cout)  weights, one (Cin, Cout) slab per 3x3 tap
    scale_ref: (Cin, 1)        per-channel affine folded from the previous BN
    shift_ref: (Cin, 1)
    y_ref    : (1, Cout, th*W) raw conv output strip, channel-major, lane-dense
    stat_ref : (1, Cout, 2)    per-sample [sum, sum_sq] BN partials (revisited across strips)
    land_ref : (Cin, H*W)      VMEM landing buffer for the manual per-sample DMA
    xpad_ref : (H+2, W+2, Cin) VMEM scratch: padded, preprocessed activation
    sem      : DMA semaphore (shape (1,))
    """
    hp, wp, cin = xpad_ref.shape
    h, w = hp - 2, wp - 2
    b = pl.program_id(0)
    t = pl.program_id(1)

    # ---- once per sample: stage the padded, affine(+ReLU)-preprocessed activation ----
    @pl.when(t == 0)
    def _():
        # Manual DMA of this sample's activation (no auto-pipelined duplicate copy).
        cp = pltpu.make_async_copy(x_hbm.at[b], land_ref, sem.at[0])
        cp.start()
        cp.wait()

        # Folded previous-layer BN affine (+ ReLU), lane-dense on (Cin, H*W).
        xin = land_ref[...].astype(jnp.float32)
        xin = xin * scale_ref[...] + shift_ref[...]
        if apply_input_relu:
            xin = jnp.maximum(xin, 0.0)

        # Zero ONLY the 1-px halo border (4 thin slabs), per sample (megacore-safe).
        zdt = xpad_ref.dtype
        xpad_ref[0:1, :, :] = jnp.zeros((1, wp, cin), zdt)
        xpad_ref[hp - 1:hp, :, :] = jnp.zeros((1, wp, cin), zdt)
        xpad_ref[:, 0:1, :] = jnp.zeros((hp, 1, cin), zdt)
        xpad_ref[:, wp - 1:wp, :] = jnp.zeros((hp, 1, cin), zdt)

        # Channel-major -> channels-last interior (folds the NCHW->NHWC relayout
        # into the kernel; the halo stays exactly zero so padding semantics hold).
        xpad_ref[1:h + 1, 1:w + 1, :] = (
            jnp.transpose(xin, (1, 0)).reshape(h, w, cin).astype(zdt))

        # Reset the per-sample BN partial accumulator (output block is revisited
        # across the strip axis; its HBM writeback happens once per sample).
        stat_ref[...] = jnp.zeros_like(stat_ref)

    # ---- conv for this row strip: 9 accumulating MXU matmuls (K = Cin each). ----
    # (A deep-K im2col would need a lane concat / relayout every strip; the 9-dot
    #  f32 accumulation chain avoids that and maps onto the v7x MRB.)
    row0 = pl.multiple_of(t * th, th)
    acc = None
    for k in range(9):
        dy, dx = k // 3, k % 3
        tap = xpad_ref[pl.ds(row0 + dy, th), dx:dx + w, :].reshape(th * w, cin)
        d = jnp.dot(tap, w_ref[k], preferred_element_type=jnp.float32)
        acc = d if acc is None else acc + d

    # Lane-dense, channel-major store of the raw (pre-BN) conv output strip.
    acc_t = jnp.transpose(acc, (1, 0))                        # (Cout, th*W) f32
    y_ref[0] = acc_t.astype(y_ref.dtype)

    # Per-strip BN partial sums from the f32 accumulator.
    s = jnp.sum(acc_t, axis=1, keepdims=True)                 # (Cout, 1)
    sq = jnp.sum(acc_t * acc_t, axis=1, keepdims=True)        # (Cout, 1)
    stat_ref[0] += jnp.concatenate([s, sq], axis=1)           # (Cout, 2)


def _conv3x3(x_cm, w_oihw, in_scale, in_shift, h, w, *,
             apply_input_relu, compute_dtype, act_dtype):
    """x_cm: (N, Cin, H*W) channel-major activation.
    Returns raw conv output (N, Cout, H*W) in act_dtype and BN partials (N, Cout, 2) f32."""
    n, cin, hw = x_cm.shape
    cout = w_oihw.shape[0]
    th = _pick_strip(h, w)
    n_strips = h // th

    # (Cout, Cin, 3, 3) -> (3, 3, Cin, Cout) -> (9, Cin, Cout).
    w_taps = jnp.transpose(w_oihw, (2, 3, 1, 0)).reshape(9, cin, cout).astype(compute_dtype)

    kernel = functools.partial(_conv3x3_kernel, apply_input_relu=apply_input_relu, th=th)
    y, stats = pl.pallas_call(
        kernel,
        grid=(n, n_strips),
        in_specs=[
            pl.BlockSpec(memory_space=pl.ANY),                       # x stays in HBM
            pl.BlockSpec((9, cin, cout), lambda i, t: (0, 0, 0)),
            pl.BlockSpec((cin, 1), lambda i, t: (0, 0)),
            pl.BlockSpec((cin, 1), lambda i, t: (0, 0)),
        ],
        out_specs=[
            pl.BlockSpec((1, cout, th * w), lambda i, t: (i, 0, t)),
            pl.BlockSpec((1, cout, 2), lambda i, t: (i, 0, 0)),      # revisited across t
        ],
        out_shape=[
            jax.ShapeDtypeStruct((n, cout, hw), act_dtype),
            jax.ShapeDtypeStruct((n, cout, 2), jnp.float32),
        ],
        scratch_shapes=[
            pltpu.VMEM((cin, hw), x_cm.dtype),                       # landing buffer
            pltpu.VMEM((h + 2, w + 2, cin), compute_dtype),          # padded sample
            pltpu.SemaphoreType.DMA((1,)),
        ],
        compiler_params=pltpu.CompilerParams(
            # batch axis -> megacore-parallel; strip axis carries the per-sample
            # VMEM staging + stat accumulator, so it stays sequential.
            dimension_semantics=("parallel", "arbitrary")),
    )(x_cm, w_taps, in_scale, in_shift)
    return y, stats


# ------------------------------- BatchNorm finalize + epilogue --------------------------------

def _bn_affine(stats, gamma, beta, count):
    """Fold BatchNorm (training-mode biased batch stats) into y*scale + shift.
    stats: (N, C, 2) per-sample [sum, sum_sq]."""
    # TODO(synk): E[x^2]-E[x]^2 can cancel badly for huge counts; fine at these scales.
    s = jnp.sum(stats[:, :, 0], axis=0)
    sq = jnp.sum(stats[:, :, 1], axis=0)
    mean = s / count
    var = jnp.maximum(sq / count - mean * mean, 0.0)
    inv = lax.rsqrt(var + _EPS)
    scale = gamma * inv
    shift = beta - mean * scale
    return (scale.reshape(-1, 1).astype(jnp.float32),
            shift.reshape(-1, 1).astype(jnp.float32))


def _affine_relu_kernel(y_ref, scale_ref, shift_ref, o_ref):
    # y_ref: (1, C, tl) raw conv2 output; scale/shift: (C, 1); o_ref: (1, C, tl) NCHW-flat.
    o_ref[0] = jnp.maximum(
        y_ref[0].astype(jnp.float32) * scale_ref[...] + shift_ref[...], 0.0
    ).astype(o_ref.dtype)


def _bn_relu_epilogue(y_cm, scale, shift):
    """Final BN + ReLU; input and output are channel-major (N, C, H*W), so the result
    is already NCHW (no XLA transpose) and every load/store is lane-dense."""
    n, c, hw = y_cm.shape
    tl = _pick_lane_tile(hw, c)
    return pl.pallas_call(
        _affine_relu_kernel,
        grid=(n, hw // tl),
        in_specs=[
            pl.BlockSpec((1, c, tl), lambda i, j: (i, 0, j)),
            pl.BlockSpec((c, 1), lambda i, j: (0, 0)),
            pl.BlockSpec((c, 1), lambda i, j: (0, 0)),
        ],
        out_specs=pl.BlockSpec((1, c, tl), lambda i, j: (i, 0, j)),
        out_shape=jax.ShapeDtypeStruct((n, c, hw), jnp.float32),
        compiler_params=pltpu.CompilerParams(
            dimension_semantics=("parallel", "parallel")),
    )(y_cm, scale, shift)


# ----------------------------------------- BasicBlock -----------------------------------------

def basic_block_forward(x_nchw, params, *, compute_dtype=jnp.bfloat16):
    """relu(bn2(conv2(relu(bn1(conv1(x)))))) with BN in training mode (batch stats)."""
    # TODO(synk): stride > 1 variant of conv1 not implemented (module default stride=1 used).
    n, cin, h, w = x_nchw.shape
    c2 = params["w2"].shape[0]
    act_dtype = compute_dtype   # inter-layer activations stored at compute precision

    # NCHW -> (N, C, H*W) is a free metadata reshape; the channel-major ->
    # channels-last relayout happens inside the conv kernel's per-sample staging.
    x_cm = x_nchw.reshape(n, cin, h * w)

    # conv1 (identity input affine); BN1 stats from per-sample partials.
    ident_s = jnp.ones((cin, 1), jnp.float32)
    ident_b = jnp.zeros((cin, 1), jnp.float32)
    y1_raw, st1 = _conv3x3(x_cm, params["w1"], ident_s, ident_b, h, w,
                           apply_input_relu=False, compute_dtype=compute_dtype,
                           act_dtype=act_dtype)
    scale1, shift1 = _bn_affine(st1, params["g1"], params["b1"], n * h * w)

    # conv2 with BN1 + ReLU1 folded into its input staging (no extra HBM pass).
    y2_raw, st2 = _conv3x3(y1_raw, params["w2"], scale1, shift1, h, w,
                           apply_input_relu=True, compute_dtype=compute_dtype,
                           act_dtype=act_dtype)
    scale2, shift2 = _bn_affine(st2, params["g2"], params["b2"], n * h * w)

    # BN2 + ReLU2 as a lane-dense elementwise epilogue that emits NCHW directly.
    out_cm = _bn_relu_epilogue(y2_raw, scale2, shift2)        # (N, C2, H*W) f32
    return out_cm.reshape(n, c2, h, w)                        # free metadata reshape


# ---------------------------- pure-JAX reference (correctness check) ---------------------------

def _bn_relu_ref(y, gamma, beta):
    mean = jnp.mean(y, axis=(0, 2, 3), keepdims=True)
    var = jnp.mean((y - mean) ** 2, axis=(0, 2, 3), keepdims=True)
    yn = (y - mean) * lax.rsqrt(var + _EPS)
    return jnp.maximum(yn * gamma[None, :, None, None] + beta[None, :, None, None], 0.0)


def _ref_forward(x, params):
    dn = lax.conv_dimension_numbers(x.shape, params["w1"].shape, ("NCHW", "OIHW", "NCHW"))
    y = lax.conv_general_dilated(x, params["w1"], (1, 1), ((1, 1), (1, 1)),
                                 dimension_numbers=dn)
    y = _bn_relu_ref(y, params["g1"], params["b1"])
    y = lax.conv_general_dilated(y, params["w2"], (1, 1), ((1, 1), (1, 1)),
                                 dimension_numbers=dn)
    return _bn_relu_ref(y, params["g2"], params["b2"])


if __name__ == "__main__":
    key = jax.random.PRNGKey(0)
    kx, k1, k2, k3, k4 = jax.random.split(key, 5)
    n, cin, h, w = 2, 4, 16, 16   # in_planes = 4
    planes = 4
    x = jax.random.normal(kx, (n, cin, h, w), jnp.float32)
    params = {
        "w1": jax.random.normal(k1, (planes, cin, 3, 3), jnp.float32) * (2.0 / (cin * 9)) ** 0.5,
        "g1": 1.0 + 0.1 * jax.random.normal(k2, (planes,), jnp.float32),
        "b1": 0.1 * jax.random.normal(k3, (planes,), jnp.float32),
        "w2": jax.random.normal(k4, (planes, planes, 3, 3), jnp.float32) * (2.0 / (planes * 9)) ** 0.5,
        "g2": jnp.ones((planes,), jnp.float32),   # PyTorch BN default init
        "b2": jnp.zeros((planes,), jnp.float32),
    }

    fwd = jax.jit(basic_block_forward, static_argnames=("compute_dtype",))
    ref = jax.block_until_ready(_ref_forward(x, params))

    # Strict correctness check: f32 MXU operands and f32 inter-layer activations.
    out_f32 = jax.block_until_ready(fwd(x, params, compute_dtype=jnp.float32))
    assert out_f32.shape == (n, planes, h, w), out_f32.shape
    err32 = float(jnp.max(jnp.abs(out_f32 - ref)))
    if not jnp.allclose(out_f32, ref, atol=1e-3, rtol=1e-3):
        raise AssertionError("f32 path mismatch vs reference: max abs err = %g" % err32)

    # Production dtype (bf16 operands + bf16 inter-layer activations, f32 accumulate):
    # quantization-level tolerance.
    out_bf16 = jax.block_until_ready(fwd(x, params, compute_dtype=jnp.bfloat16))
    err16 = float(jnp.max(jnp.abs(out_bf16 - ref)))
    if not jnp.allclose(out_bf16, ref, atol=1e-1, rtol=1e-1):
        raise AssertionError("bf16 path mismatch vs reference: max abs err = %g" % err16)

    print("KERNEL_OK")
</pallas_src>

<mosaic_0001>
module attributes {stable_mosaic.version = 11 : i64} {
  func.func @_conv3x3_kernel(%arg0: i32, %arg1: i32, %arg2: memref<2x4x256xf32, #tpu.memory_space<any>>, %arg3: memref<9x4x4xf32, #tpu.memory_space<vmem>>, %arg4: memref<4x1xf32, #tpu.memory_space<vmem>>, %arg5: memref<4x1xf32, #tpu.memory_space<vmem>>, %arg6: memref<1x4x256xf32, #tpu.memory_space<vmem>>, %arg7: memref<1x4x2xf32, #tpu.memory_space<vmem>>, %arg8: memref<4x256xf32, #tpu.memory_space<vmem>>, %arg9: memref<18x18x4xf32, #tpu.memory_space<vmem>>, %arg10: memref<1x!tpu.dma_semaphore, #tpu.memory_space<semaphore_mem>>) attributes {dimension_semantics = [#tpu.dimension_semantics<parallel>, #tpu.dimension_semantics<arbitrary>], iteration_bounds = array<i64: 2, 1>, scalar_prefetch = 0 : i64, scratch_operands = 3 : i64, tpu.core_type = #tpu.core_type<tc>, window_params = [{}, {pipeline_mode = #tpu.pipeline_mode<synchronous>, transform_indices = @transform_1, window_bounds = array<i64: 9, 4, 4>}, {pipeline_mode = #tpu.pipeline_mode<synchronous>, transform_indices = @transform_2, window_bounds = array<i64: 4, 1>}, {pipeline_mode = #tpu.pipeline_mode<synchronous>, transform_indices = @transform_3, window_bounds = array<i64: 4, 1>}, {transform_indices = @transform_4, window_bounds = array<i64: 1, 4, 256>}, {transform_indices = @transform_5, window_bounds = array<i64: 1, 4, 2>}]} {
    %c0_i32 = arith.constant 0 : i32
    %0 = arith.cmpi eq, %arg1, %c0_i32 : i32
    %1 = arith.extui %0 : i1 to i32
    %c0_i32_0 = arith.constant 0 : i32
    %2 = arith.cmpi ne, %1, %c0_i32_0 : i32
    scf.if %2 {
      %c0_i32_63 = arith.constant 0 : i32
      %c0_i32_64 = arith.constant 0 : i32
      %c0_i32_65 = arith.constant 0 : i32
      %92 = tpu.memref_slice %arg2[%arg0, %c0_i32_64, %c0_i32_65] : memref<2x4x256xf32, #tpu.memory_space<any>> -> memref<1x4x256xf32, #tpu.memory_space<any>>
      %93 = tpu.memref_squeeze %92 : memref<1x4x256xf32, #tpu.memory_space<any>> -> memref<4x256xf32, #tpu.memory_space<any>>
      %94 = tpu.memref_slice %arg10[%c0_i32_63] : memref<1x!tpu.dma_semaphore, #tpu.memory_space<semaphore_mem>> -> memref<1x!tpu.dma_semaphore, #tpu.memory_space<semaphore_mem>>
      %95 = tpu.memref_squeeze %94 : memref<1x!tpu.dma_semaphore, #tpu.memory_space<semaphore_mem>> -> memref<!tpu.dma_semaphore, #tpu.memory_space<semaphore_mem>>
      tpu.enqueue_dma source(%93 : memref<4x256xf32, #tpu.memory_space<any>>) target(%arg8 : memref<4x256xf32, #tpu.memory_space<vmem>>) target_semaphore(%95 : memref<!tpu.dma_semaphore, #tpu.memory_space<semaphore_mem>>)
      %c0_i32_66 = arith.constant 0 : i32
      %c0_i32_67 = arith.constant 0 : i32
      %c0_i32_68 = arith.constant 0 : i32
      %96 = tpu.memref_slice %arg2[%arg0, %c0_i32_67, %c0_i32_68] : memref<2x4x256xf32, #tpu.memory_space<any>> -> memref<1x4x256xf32, #tpu.memory_space<any>>
      %97 = tpu.memref_squeeze %96 : memref<1x4x256xf32, #tpu.memory_space<any>> -> memref<4x256xf32, #tpu.memory_space<any>>
      %98 = tpu.memref_slice %arg10[%c0_i32_66] : memref<1x!tpu.dma_semaphore, #tpu.memory_space<semaphore_mem>> -> memref<1x!tpu.dma_semaphore, #tpu.memory_space<semaphore_mem>>
      %99 = tpu.memref_squeeze %98 : memref<1x!tpu.dma_semaphore, #tpu.memory_space<semaphore_mem>> -> memref<!tpu.dma_semaphore, #tpu.memory_space<semaphore_mem>>
      tpu.wait_dma2 semaphore(%99 : memref<!tpu.dma_semaphore, #tpu.memory_space<semaphore_mem>>) src(%97 : memref<4x256xf32, #tpu.memory_space<any>>) dst(%arg8 : memref<4x256xf32, #tpu.memory_space<vmem>>)
      %c0_69 = arith.constant 0 : index
      %c0_70 = arith.constant 0 : index
      %100 = vector.load %arg8[%c0_69, %c0_70] : memref<4x256xf32, #tpu.memory_space<vmem>>, vector<4x256xf32>
      %c0_71 = arith.constant 0 : index
      %c0_72 = arith.constant 0 : index
      %101 = vector.load %arg4[%c0_71, %c0_72] : memref<4x1xf32, #tpu.memory_space<vmem>>, vector<4x1xf32>
      %102 = vector.broadcast %101 : vector<4x1xf32> to vector<4x256xf32>
      %103 = arith.mulf %100, %102 : vector<4x256xf32>
      %c0_73 = arith.constant 0 : index
      %c0_74 = arith.constant 0 : index
      %104 = vector.load %arg5[%c0_73, %c0_74] : memref<4x1xf32, #tpu.memory_space<vmem>>, vector<4x1xf32>
      %105 = vector.broadcast %104 : vector<4x1xf32> to vector<4x256xf32>
      %106 = arith.addf %103, %105 : vector<4x256xf32>
      %cst_75 = arith.constant 0.000000e+00 : f32
      %107 = vector.broadcast %cst_75 : f32 to vector<1x18x4xf32>
      %c0_76 = arith.constant 0 : index
      %c0_77 = arith.constant 0 : index
      %c0_78 = arith.constant 0 : index
      %108 = vector.load %arg9[%c0_76, %c0_77, %c0_78] : memref<18x18x4xf32, #tpu.memory_space<vmem>>, vector<1x18x4xf32>
      tpu.vector_store %arg9[%c0_76, %c0_77, %c0_78], %107 {strides = array<i32>} : memref<18x18x4xf32, #tpu.memory_space<vmem>>, vector<1x18x4xf32>,
      %cst_79 = arith.constant 0.000000e+00 : f32
      %109 = vector.broadcast %cst_79 : f32 to vector<1x18x4xf32>
      %c17 = arith.constant 17 : index
      %c0_80 = arith.constant 0 : index
      %c0_81 = arith.constant 0 : index
      %110 = vector.load %arg9[%c17, %c0_80, %c0_81] : memref<18x18x4xf32, #tpu.memory_space<vmem>>, vector<1x18x4xf32>
      tpu.vector_store %arg9[%c17, %c0_80, %c0_81], %109 {strides = array<i32>} : memref<18x18x4xf32, #tpu.memory_space<vmem>>, vector<1x18x4xf32>,
      %cst_82 = arith.constant 0.000000e+00 : f32
      %111 = vector.broadcast %cst_82 : f32 to vector<18x1x4xf32>
      %c0_83 = arith.constant 0 : index
      %c0_84 = arith.constant 0 : index
      %c0_85 = arith.constant 0 : index
      %112 = vector.load %arg9[%c0_83, %c0_84, %c0_85] : memref<18x18x4xf32, #tpu.memory_space<vmem>>, vector<18x1x4xf32>
      tpu.vector_store %arg9[%c0_83, %c0_84, %c0_85], %111 {strides = array<i32>} : memref<18x18x4xf32, #tpu.memory_space<vmem>>, vector<18x1x4xf32>,
      %cst_86 = arith.constant 0.000000e+00 : f32
      %113 = vector.broadcast %cst_86 : f32 to vector<18x1x4xf32>
      %c0_87 = arith.constant 0 : index
      %c17_88 = arith.constant 17 : index
      %c0_89 = arith.constant 0 : index
      %114 = vector.load %arg9[%c0_87, %c17_88, %c0_89] : memref<18x18x4xf32, #tpu.memory_space<vmem>>, vector<18x1x4xf32>
      tpu.vector_store %arg9[%c0_87, %c17_88, %c0_89], %113 {strides = array<i32>} : memref<18x18x4xf32, #tpu.memory_space<vmem>>, vector<18x1x4xf32>,
      %115 = tpu.transpose %106, [1, 0] : vector<4x256xf32> -> vector<256x4xf32>
      %116 = vector.shape_cast %115 : vector<256x4xf32> to vector<16x16x4xf32>
      %c1_90 = arith.constant 1 : index
      %c1_91 = arith.constant 1 : index
      %c0_92 = arith.constant 0 : index
      %117 = vector.load %arg9[%c1_90, %c1_91, %c0_92] : memref<18x18x4xf32, #tpu.memory_space<vmem>>, vector<16x16x4xf32>
      tpu.vector_store %arg9[%c1_90, %c1_91, %c0_92], %116 {strides = array<i32>} : memref<18x18x4xf32, #tpu.memory_space<vmem>>, vector<16x16x4xf32>,
      %cst_93 = arith.constant 0.000000e+00 : f32
      %118 = vector.broadcast %cst_93 : f32 to vector<1x4x2xf32>
      %c0_94 = arith.constant 0 : index
      %c0_95 = arith.constant 0 : index
      %c0_96 = arith.constant 0 : index
      %119 = vector.load %arg7[%c0_94, %c0_95, %c0_96] : memref<1x4x2xf32, #tpu.memory_space<vmem>>, vector<1x4x2xf32>
      tpu.vector_store %arg7[%c0_94, %c0_95, %c0_96], %118 {strides = array<i32>} : memref<1x4x2xf32, #tpu.memory_space<vmem>>, vector<1x4x2xf32>,
    } else {
    }
    %c16_i32 = arith.constant 16 : i32
    %3 = arith.muli %arg1, %c16_i32 : i32
    %4 = tpu.assume_multiple %3, 16 : i32
    %c0_i32_1 = arith.constant 0 : i32
    %5 = arith.addi %4, %c0_i32_1 : i32
    %6 = arith.index_cast %5 : i32 to index
    %c0 = arith.constant 0 : index
    %c0_2 = arith.constant 0 : index
    %7 = vector.load %arg9[%6, %c0, %c0_2] : memref<18x18x4xf32, #tpu.memory_space<vmem>>, vector<16x16x4xf32>
    %8 = vector.shape_cast %7 : vector<16x16x4xf32> to vector<256x4xf32>
    %c0_3 = arith.constant 0 : index
    %c0_4 = arith.constant 0 : index
    %c0_5 = arith.constant 0 : index
    %9 = vector.load %arg3[%c0_3, %c0_4, %c0_5] : memref<9x4x4xf32, #tpu.memory_space<vmem>>, vector<1x4x4xf32>
    %10 = vector.shape_cast %9 : vector<1x4x4xf32> to vector<4x4xf32>
    %cst = arith.constant dense<0.000000e+00> : vector<256x4xf32>
    %11 = tpu.matmul %8, %10, %cst {dimension_numbers = #tpu.dot_dimension_numbers<[1], [0], [0], [1], [0, 0, 1, 1], [], []>} : vector<256x4xf32>, vector<4x4xf32>, vector<256x4xf32> -> vector<256x4xf32>
    %c0_i32_6 = arith.constant 0 : i32
    %12 = arith.addi %4, %c0_i32_6 : i32
    %13 = arith.index_cast %12 : i32 to index
    %c1 = arith.constant 1 : index
    %c0_7 = arith.constant 0 : index
    %14 = vector.load %arg9[%13, %c1, %c0_7] : memref<18x18x4xf32, #tpu.memory_space<vmem>>, vector<16x16x4xf32>
    %15 = vector.shape_cast %14 : vector<16x16x4xf32> to vector<256x4xf32>
    %c1_8 = arith.constant 1 : index
    %c0_9 = arith.constant 0 : index
    %c0_10 = arith.constant 0 : index
    %16 = vector.load %arg3[%c1_8, %c0_9, %c0_10] : memref<9x4x4xf32, #tpu.memory_space<vmem>>, vector<1x4x4xf32>
    %17 = vector.shape_cast %16 : vector<1x4x4xf32> to vector<4x4xf32>
    %cst_11 = arith.constant dense<0.000000e+00> : vector<256x4xf32>
    %18 = tpu.matmul %15, %17, %cst_11 {dimension_numbers = #tpu.dot_dimension_numbers<[1], [0], [0], [1], [0, 0, 1, 1], [], []>} : vector<256x4xf32>, vector<4x4xf32>, vector<256x4xf32> -> vector<256x4xf32>
    %19 = arith.addf %11, %18 : vector<256x4xf32>
    %c0_i32_12 = arith.constant 0 : i32
    %20 = arith.addi %4, %c0_i32_12 : i32
    %21 = arith.index_cast %20 : i32 to index
    %c2 = arith.constant 2 : index
    %c0_13 = arith.constant 0 : index
    %22 = vector.load %arg9[%21, %c2, %c0_13] : memref<18x18x4xf32, #tpu.memory_space<vmem>>, vector<16x16x4xf32>
    %23 = vector.shape_cast %22 : vector<16x16x4xf32> to vector<256x4xf32>
    %c2_14 = arith.constant 2 : index
    %c0_15 = arith.constant 0 : index
    %c0_16 = arith.constant 0 : index
    %24 = vector.load %arg3[%c2_14, %c0_15, %c0_16] : memref<9x4x4xf32, #tpu.memory_space<vmem>>, vector<1x4x4xf32>
    %25 = vector.shape_cast %24 : vector<1x4x4xf32> to vector<4x4xf32>
    %cst_17 = arith.constant dense<0.000000e+00> : vector<256x4xf32>
    %26 = tpu.matmul %23, %25, %cst_17 {dimension_numbers = #tpu.dot_dimension_numbers<[1], [0], [0], [1], [0, 0, 1, 1], [], []>} : vector<256x4xf32>, vector<4x4xf32>, vector<256x4xf32> -> vector<256x4xf32>
    %27 = arith.addf %19, %26 : vector<256x4xf32>
    %c1_i32 = arith.constant 1 : i32
    %28 = arith.addi %4, %c1_i32 : i32
    %29 = arith.index_cast %28 : i32 to index
    %c0_18 = arith.constant 0 : index
    %c0_19 = arith.constant 0 : index
    %30 = vector.load %arg9[%29, %c0_18, %c0_19] : memref<18x18x4xf32, #tpu.memory_space<vmem>>, vector<16x16x4xf32>
    %31 = vector.shape_cast %30 : vector<16x16x4xf32> to vector<256x4xf32>
    %c3 = arith.constant 3 : index
    %c0_20 = arith.constant 0 : index
    %c0_21 = arith.constant 0 : index
    %32 = vector.load %arg3[%c3, %c0_20, %c0_21] : memref<9x4x4xf32, #tpu.memory_space<vmem>>, vector<1x4x4xf32>
    %33 = vector.shape_cast %32 : vector<1x4x4xf32> to vector<4x4xf32>
    %cst_22 = arith.constant dense<0.000000e+00> : vector<256x4xf32>
    %34 = tpu.matmul %31, %33, %cst_22 {dimension_numbers = #tpu.dot_dimension_numbers<[1], [0], [0], [1], [0, 0, 1, 1], [], []>} : vector<256x4xf32>, vector<4x4xf32>, vector<256x4xf32> -> vector<256x4xf32>
    %35 = arith.addf %27, %34 : vector<256x4xf32>
    %c1_i32_23 = arith.constant 1 : i32
    %36 = arith.addi %4, %c1_i32_23 : i32
    %37 = arith.index_cast %36 : i32 to index
    %c1_24 = arith.constant 1 : index
    %c0_25 = arith.constant 0 : index
    %38 = vector.load %arg9[%37, %c1_24, %c0_25] : memref<18x18x4xf32, #tpu.memory_space<vmem>>, vector<16x16x4xf32>
    %39 = vector.shape_cast %38 : vector<16x16x4xf32> to vector<256x4xf32>
    %c4 = arith.constant 4 : index
    %c0_26 = arith.constant 0 : index
    %c0_27 = arith.constant 0 : index
    %40 = vector.load %arg3[%c4, %c0_26, %c0_27] : memref<9x4x4xf32, #tpu.memory_space<vmem>>, vector<1x4x4xf32>
    %41 = vector.shape_cast %40 : vector<1x4x4xf32> to vector<4x4xf32>
    %cst_28 = arith.constant dense<0.000000e+00> : vector<256x4xf32>
    %42 = tpu.matmul %39, %41, %cst_28 {dimension_numbers = #tpu.dot_dimension_numbers<[1], [0], [0], [1], [0, 0, 1, 1], [], []>} : vector<256x4xf32>, vector<4x4xf32>, vector<256x4xf32> -> vector<256x4xf32>
    %43 = arith.addf %35, %42 : vector<256x4xf32>
    %c1_i32_29 = arith.constant 1 : i32
    %44 = arith.addi %4, %c1_i32_29 : i32
    %45 = arith.index_cast %44 : i32 to index
    %c2_30 = arith.constant 2 : index
    %c0_31 = arith.constant 0 : index
    %46 = vector.load %arg9[%45, %c2_30, %c0_31] : memref<18x18x4xf32, #tpu.memory_space<vmem>>, vector<16x16x4xf32>
    %47 = vector.shape_cast %46 : vector<16x16x4xf32> to vector<256x4xf32>
    %c5 = arith.constant 5 : index
    %c0_32 = arith.constant 0 : index
    %c0_33 = arith.constant 0 : index
    %48 = vector.load %arg3[%c5, %c0_32, %c0_33] : memref<9x4x4xf32, #tpu.memory_space<vmem>>, vector<1x4x4xf32>
    %49 = vector.shape_cast %48 : vector<1x4x4xf32> to vector<4x4xf32>
    %cst_34 = arith.constant dense<0.000000e+00> : vector<256x4xf32>
    %50 = tpu.matmul %47, %49, %cst_34 {dimension_numbers = #tpu.dot_dimension_numbers<[1], [0], [0], [1], [0, 0, 1, 1], [], []>} : vector<256x4xf32>, vector<4x4xf32>, vector<256x4xf32> -> vector<256x4xf32>
    %51 = arith.addf %43, %50 : vector<256x4xf32>
    %c2_i32 = arith.constant 2 : i32
    %52 = arith.addi %4, %c2_i32 : i32
    %53 = arith.index_cast %52 : i32 to index
    %c0_35 = arith.constant 0 : index
    %c0_36 = arith.constant 0 : index
    %54 = vector.load %arg9[%53, %c0_35, %c0_36] : memref<18x18x4xf32, #tpu.memory_space<vmem>>, vector<16x16x4xf32>
    %55 = vector.shape_cast %54 : vector<16x16x4xf32> to vector<256x4xf32>
    %c6 = arith.constant 6 : index
    %c0_37 = arith.constant 0 : index
    %c0_38 = arith.constant 0 : index
    %56 = vector.load %arg3[%c6, %c0_37, %c0_38] : memref<9x4x4xf32, #tpu.memory_space<vmem>>, vector<1x4x4xf32>
    %57 = vector.shape_cast %56 : vector<1x4x4xf32> to vector<4x4xf32>
    %cst_39 = arith.constant dense<0.000000e+00> : vector<256x4xf32>
    %58 = tpu.matmul %55, %57, %cst_39 {dimension_numbers = #tpu.dot_dimension_numbers<[1], [0], [0], [1], [0, 0, 1, 1], [], []>} : vector<256x4xf32>, vector<4x4xf32>, vector<256x4xf32> -> vector<256x4xf32>
    %59 = arith.addf %51, %58 : vector<256x4xf32>
    %c2_i32_40 = arith.constant 2 : i32
    %60 = arith.addi %4, %c2_i32_40 : i32
    %61 = arith.index_cast %60 : i32 to index
    %c1_41 = arith.constant 1 : index
    %c0_42 = arith.constant 0 : index
    %62 = vector.load %arg9[%61, %c1_41, %c0_42] : memref<18x18x4xf32, #tpu.memory_space<vmem>>, vector<16x16x4xf32>
    %63 = vector.shape_cast %62 : vector<16x16x4xf32> to vector<256x4xf32>
    %c7 = arith.constant 7 : index
    %c0_43 = arith.constant 0 : index
    %c0_44 = arith.constant 0 : index
    %64 = vector.load %arg3[%c7, %c0_43, %c0_44] : memref<9x4x4xf32, #tpu.memory_space<vmem>>, vector<1x4x4xf32>
    %65 = vector.shape_cast %64 : vector<1x4x4xf32> to vector<4x4xf32>
    %cst_45 = arith.constant dense<0.000000e+00> : vector<256x4xf32>
    %66 = tpu.matmul %63, %65, %cst_45 {dimension_numbers = #tpu.dot_dimension_numbers<[1], [0], [0], [1], [0, 0, 1, 1], [], []>} : vector<256x4xf32>, vector<4x4xf32>, vector<256x4xf32> -> vector<256x4xf32>
    %67 = arith.addf %59, %66 : vector<256x4xf32>
    %c2_i32_46 = arith.constant 2 : i32
    %68 = arith.addi %4, %c2_i32_46 : i32
    %69 = arith.index_cast %68 : i32 to index
    %c2_47 = arith.constant 2 : index
    %c0_48 = arith.constant 0 : index
    %70 = vector.load %arg9[%69, %c2_47, %c0_48] : memref<18x18x4xf32, #tpu.memory_space<vmem>>, vector<16x16x4xf32>
    %71 = vector.shape_cast %70 : vector<16x16x4xf32> to vector<256x4xf32>
    %c8 = arith.constant 8 : index
    %c0_49 = arith.constant 0 : index
    %c0_50 = arith.constant 0 : index
    %72 = vector.load %arg3[%c8, %c0_49, %c0_50] : memref<9x4x4xf32, #tpu.memory_space<vmem>>, vector<1x4x4xf32>
    %73 = vector.shape_cast %72 : vector<1x4x4xf32> to vector<4x4xf32>
    %cst_51 = arith.constant dense<0.000000e+00> : vector<256x4xf32>
    %74 = tpu.matmul %71, %73, %cst_51 {dimension_numbers = #tpu.dot_dimension_numbers<[1], [0], [0], [1], [0, 0, 1, 1], [], []>} : vector<256x4xf32>, vector<4x4xf32>, vector<256x4xf32> -> vector<256x4xf32>
    %75 = arith.addf %67, %74 : vector<256x4xf32>
    %76 = tpu.transpose %75, [1, 0] : vector<256x4xf32> -> vector<4x256xf32>
    %c0_52 = arith.constant 0 : index
    %c0_53 = arith.constant 0 : index
    %c0_54 = arith.constant 0 : index
    %77 = vector.load %arg6[%c0_52, %c0_53, %c0_54] : memref<1x4x256xf32, #tpu.memory_space<vmem>>, vector<1x4x256xf32>
    %78 = vector.shape_cast %77 : vector<1x4x256xf32> to vector<4x256xf32>
    %79 = vector.shape_cast %76 : vector<4x256xf32> to vector<1x4x256xf32>
    tpu.vector_store %arg6[%c0_52, %c0_53, %c0_54], %79 {strides = array<i32>} : memref<1x4x256xf32, #tpu.memory_space<vmem>>, vector<1x4x256xf32>,
    %cst_55 = arith.constant dense<0.000000e+00> : vector<4xf32>
    %80 = vector.multi_reduction <add>, %76, %cst_55 [1] : vector<4x256xf32> to vector<4xf32>
    %81 = vector.shape_cast %80 : vector<4xf32> to vector<4x1xf32>
    %82 = arith.mulf %76, %76 : vector<4x256xf32>
    %cst_56 = arith.constant dense<0.000000e+00> : vector<4xf32>
    %83 = vector.multi_reduction <add>, %82, %cst_56 [1] : vector<4x256xf32> to vector<4xf32>
    %84 = vector.shape_cast %83 : vector<4xf32> to vector<4x1xf32>
    %c0_57 = arith.constant 0 : index
    %c0_58 = arith.constant 0 : index
    %c0_59 = arith.constant 0 : index
    %85 = vector.load %arg7[%c0_57, %c0_58, %c0_59] : memref<1x4x2xf32, #tpu.memory_space<vmem>>, vector<1x4x2xf32>
    %86 = vector.shape_cast %85 : vector<1x4x2xf32> to vector<4x2xf32>
    %87 = tpu.concatenate %81, %84 in 1 : vector<4x1xf32>, vector<4x1xf32> -> vector<4x2xf32>
    %88 = arith.addf %86, %87 : vector<4x2xf32>
    %c0_60 = arith.constant 0 : index
    %c0_61 = arith.constant 0 : index
    %c0_62 = arith.constant 0 : index
    %89 = vector.load %arg7[%c0_60, %c0_61, %c0_62] : memref<1x4x2xf32, #tpu.memory_space<vmem>>, vector<1x4x2xf32>
    %90 = vector.shape_cast %89 : vector<1x4x2xf32> to vector<4x2xf32>
    %91 = vector.shape_cast %88 : vector<4x2xf32> to vector<1x4x2xf32>
    tpu.vector_store %arg7[%c0_60, %c0_61, %c0_62], %91 {strides = array<i32>} : memref<1x4x2xf32, #tpu.memory_space<vmem>>, vector<1x4x2xf32>,
    return
  }
  func.func @transform_1(%arg0: i32, %arg1: i32) -> (i32, i32, i32) {
    %c0_i32 = arith.constant 0 : i32
    %c0_i32_0 = arith.constant 0 : i32
    %c0_i32_1 = arith.constant 0 : i32
    %c0_i32_2 = arith.constant 0 : i32
    return %c0_i32, %c0_i32_0, %c0_i32_1 : i32, i32, i32
  }
  func.func @transform_2(%arg0: i32, %arg1: i32) -> (i32, i32) {
    %c0_i32 = arith.constant 0 : i32
    %c0_i32_0 = arith.constant 0 : i32
    %c0_i32_1 = arith.constant 0 : i32
    return %c0_i32, %c0_i32_0 : i32, i32
  }
  func.func @transform_3(%arg0: i32, %arg1: i32) -> (i32, i32) {
    %c0_i32 = arith.constant 0 : i32
    %c0_i32_0 = arith.constant 0 : i32
    %c0_i32_1 = arith.constant 0 : i32
    return %c0_i32, %c0_i32_0 : i32, i32
  }
  func.func @transform_4(%arg0: i32, %arg1: i32) -> (i32, i32, i32) {
    %c0_i32 = arith.constant 0 : i32
    %c0_i32_0 = arith.constant 0 : i32
    return %arg0, %c0_i32, %arg1 : i32, i32, i32
  }
  func.func @transform_5(%arg0: i32, %arg1: i32) -> (i32, i32, i32) {
    %c0_i32 = arith.constant 0 : i32
    %c0_i32_0 = arith.constant 0 : i32
    %c0_i32_1 = arith.constant 0 : i32
    return %arg0, %c0_i32, %c0_i32_0 : i32, i32, i32
  }
}

module attributes {stable_mosaic.version = 11 : i64} {
  func.func @_affine_relu_kernel(%arg0: i32, %arg1: i32, %arg2: memref<1x4x256xf32, #tpu.memory_space<vmem>>, %arg3: memref<4x1xf32, #tpu.memory_space<vmem>>, %arg4: memref<4x1xf32, #tpu.memory_space<vmem>>, %arg5: memref<1x4x256xf32, #tpu.memory_space<vmem>>) attributes {dimension_semantics = [#tpu.dimension_semantics<parallel>, #tpu.dimension_semantics<parallel>], iteration_bounds = array<i64: 2, 1>, scalar_prefetch = 0 : i64, scratch_operands = 0 : i64, tpu.core_type = #tpu.core_type<tc>, window_params = [{transform_indices = @transform_0, window_bounds = array<i64: 1, 4, 256>}, {pipeline_mode = #tpu.pipeline_mode<synchronous>, transform_indices = @transform_1, window_bounds = array<i64: 4, 1>}, {pipeline_mode = #tpu.pipeline_mode<synchronous>, transform_indices = @transform_2, window_bounds = array<i64: 4, 1>}, {transform_indices = @transform_3, window_bounds = array<i64: 1, 4, 256>}]} {
    %c0 = arith.constant 0 : index
    %c0_0 = arith.constant 0 : index
    %c0_1 = arith.constant 0 : index
    %0 = vector.load %arg2[%c0, %c0_0, %c0_1] : memref<1x4x256xf32, #tpu.memory_space<vmem>>, vector<1x4x256xf32>
    %1 = vector.shape_cast %0 : vector<1x4x256xf32> to vector<4x256xf32>
    %c0_2 = arith.constant 0 : index
    %c0_3 = arith.constant 0 : index
    %2 = vector.load %arg3[%c0_2, %c0_3] : memref<4x1xf32, #tpu.memory_space<vmem>>, vector<4x1xf32>
    %3 = vector.broadcast %2 : vector<4x1xf32> to vector<4x256xf32>
    %4 = arith.mulf %1, %3 : vector<4x256xf32>
    %c0_4 = arith.constant 0 : index
    %c0_5 = arith.constant 0 : index
    %5 = vector.load %arg4[%c0_4, %c0_5] : memref<4x1xf32, #tpu.memory_space<vmem>>, vector<4x1xf32>
    %6 = vector.broadcast %5 : vector<4x1xf32> to vector<4x256xf32>
    %7 = arith.addf %4, %6 : vector<4x256xf32>
    %cst = arith.constant 0.000000e+00 : f32
    %8 = vector.broadcast %cst : f32 to vector<4x256xf32>
    %9 = arith.maximumf %7, %8 : vector<4x256xf32>
    %c0_6 = arith.constant 0 : index
    %c0_7 = arith.constant 0 : index
    %c0_8 = arith.constant 0 : index
    %10 = vector.load %arg5[%c0_6, %c0_7, %c0_8] : memref<1x4x256xf32, #tpu.memory_space<vmem>>, vector<1x4x256xf32>
    %11 = vector.shape_cast %10 : vector<1x4x256xf32> to vector<4x256xf32>
    %12 = vector.shape_cast %9 : vector<4x256xf32> to vector<1x4x256xf32>
    tpu.vector_store %arg5[%c0_6, %c0_7, %c0_8], %12 {strides = array<i32>} : memref<1x4x256xf32, #tpu.memory_space<vmem>>, vector<1x4x256xf32>,
    return
  }
  func.func @transform_0(%arg0: i32, %arg1: i32) -> (i32, i32, i32) {
    %c0_i32 = arith.constant 0 : i32
    %c0_i32_0 = arith.constant 0 : i32
    return %arg0, %c0_i32, %arg1 : i32, i32, i32
  }
  func.func @transform_1(%arg0: i32, %arg1: i32) -> (i32, i32) {
    %c0_i32 = arith.constant 0 : i32
    %c0_i32_0 = arith.constant 0 : i32
    %c0_i32_1 = arith.constant 0 : i32
    return %c0_i32, %c0_i32_0 : i32, i32
  }
  func.func @transform_2(%arg0: i32, %arg1: i32) -> (i32, i32) {
    %c0_i32 = arith.constant 0 : i32
    %c0_i32_0 = arith.constant 0 : i32
    %c0_i32_1 = arith.constant 0 : i32
    return %c0_i32, %c0_i32_0 : i32, i32
  }
  func.func @transform_3(%arg0: i32, %arg1: i32) -> (i32, i32, i32) {
    %c0_i32 = arith.constant 0 : i32
    %c0_i32_0 = arith.constant 0 : i32
    return %arg0, %c0_i32, %arg1 : i32, i32, i32
  }
}

module attributes {stable_mosaic.version = 11 : i64} {
  func.func @_conv3x3_kernel(%arg0: i32, %arg1: i32, %arg2: memref<2x4x256xf32, #tpu.memory_space<any>>, %arg3: memref<9x4x4xf32, #tpu.memory_space<vmem>>, %arg4: memref<4x1xf32, #tpu.memory_space<vmem>>, %arg5: memref<4x1xf32, #tpu.memory_space<vmem>>, %arg6: memref<1x4x256xf32, #tpu.memory_space<vmem>>, %arg7: memref<1x4x2xf32, #tpu.memory_space<vmem>>, %arg8: memref<4x256xf32, #tpu.memory_space<vmem>>, %arg9: memref<18x18x4xf32, #tpu.memory_space<vmem>>, %arg10: memref<1x!tpu.dma_semaphore, #tpu.memory_space<semaphore_mem>>) attributes {dimension_semantics = [#tpu.dimension_semantics<parallel>, #tpu.dimension_semantics<arbitrary>], iteration_bounds = array<i64: 2, 1>, scalar_prefetch = 0 : i64, scratch_operands = 3 : i64, tpu.core_type = #tpu.core_type<tc>, window_params = [{}, {pipeline_mode = #tpu.pipeline_mode<synchronous>, transform_indices = @transform_1, window_bounds = array<i64: 9, 4, 4>}, {pipeline_mode = #tpu.pipeline_mode<synchronous>, transform_indices = @transform_2, window_bounds = array<i64: 4, 1>}, {pipeline_mode = #tpu.pipeline_mode<synchronous>, transform_indices = @transform_3, window_bounds = array<i64: 4, 1>}, {transform_indices = @transform_4, window_bounds = array<i64: 1, 4, 256>}, {transform_indices = @transform_5, window_bounds = array<i64: 1, 4, 2>}]} {
    %c0_i32 = arith.constant 0 : i32
    %0 = arith.cmpi eq, %arg1, %c0_i32 : i32
    %1 = arith.extui %0 : i1 to i32
    %c0_i32_0 = arith.constant 0 : i32
    %2 = arith.cmpi ne, %1, %c0_i32_0 : i32
    scf.if %2 {
      %c0_i32_63 = arith.constant 0 : i32
      %c0_i32_64 = arith.constant 0 : i32
      %c0_i32_65 = arith.constant 0 : i32
      %92 = tpu.memref_slice %arg2[%arg0, %c0_i32_64, %c0_i32_65] : memref<2x4x256xf32, #tpu.memory_space<any>> -> memref<1x4x256xf32, #tpu.memory_space<any>>
      %93 = tpu.memref_squeeze %92 : memref<1x4x256xf32, #tpu.memory_space<any>> -> memref<4x256xf32, #tpu.memory_space<any>>
      %94 = tpu.memref_slice %arg10[%c0_i32_63] : memref<1x!tpu.dma_semaphore, #tpu.memory_space<semaphore_mem>> -> memref<1x!tpu.dma_semaphore, #tpu.memory_space<semaphore_mem>>
      %95 = tpu.memref_squeeze %94 : memref<1x!tpu.dma_semaphore, #tpu.memory_space<semaphore_mem>> -> memref<!tpu.dma_semaphore, #tpu.memory_space<semaphore_mem>>
      tpu.enqueue_dma source(%93 : memref<4x256xf32, #tpu.memory_space<any>>) target(%arg8 : memref<4x256xf32, #tpu.memory_space<vmem>>) target_semaphore(%95 : memref<!tpu.dma_semaphore, #tpu.memory_space<semaphore_mem>>)
      %c0_i32_66 = arith.constant 0 : i32
      %c0_i32_67 = arith.constant 0 : i32
      %c0_i32_68 = arith.constant 0 : i32
      %96 = tpu.memref_slice %arg2[%arg0, %c0_i32_67, %c0_i32_68] : memref<2x4x256xf32, #tpu.memory_space<any>> -> memref<1x4x256xf32, #tpu.memory_space<any>>
      %97 = tpu.memref_squeeze %96 : memref<1x4x256xf32, #tpu.memory_space<any>> -> memref<4x256xf32, #tpu.memory_space<any>>
      %98 = tpu.memref_slice %arg10[%c0_i32_66] : memref<1x!tpu.dma_semaphore, #tpu.memory_space<semaphore_mem>> -> memref<1x!tpu.dma_semaphore, #tpu.memory_space<semaphore_mem>>
      %99 = tpu.memref_squeeze %98 : memref<1x!tpu.dma_semaphore, #tpu.memory_space<semaphore_mem>> -> memref<!tpu.dma_semaphore, #tpu.memory_space<semaphore_mem>>
      tpu.wait_dma2 semaphore(%99 : memref<!tpu.dma_semaphore, #tpu.memory_space<semaphore_mem>>) src(%97 : memref<4x256xf32, #tpu.memory_space<any>>) dst(%arg8 : memref<4x256xf32, #tpu.memory_space<vmem>>)
      %c0_69 = arith.constant 0 : index
      %c0_70 = arith.constant 0 : index
      %100 = vector.load %arg8[%c0_69, %c0_70] : memref<4x256xf32, #tpu.memory_space<vmem>>, vector<4x256xf32>
      %c0_71 = arith.constant 0 : index
      %c0_72 = arith.constant 0 : index
      %101 = vector.load %arg4[%c0_71, %c0_72] : memref<4x1xf32, #tpu.memory_space<vmem>>, vector<4x1xf32>
      %102 = vector.broadcast %101 : vector<4x1xf32> to vector<4x256xf32>
      %103 = arith.mulf %100, %102 : vector<4x256xf32>
      %c0_73 = arith.constant 0 : index
      %c0_74 = arith.constant 0 : index
      %104 = vector.load %arg5[%c0_73, %c0_74] : memref<4x1xf32, #tpu.memory_space<vmem>>, vector<4x1xf32>
      %105 = vector.broadcast %104 : vector<4x1xf32> to vector<4x256xf32>
      %106 = arith.addf %103, %105 : vector<4x256xf32>
      %cst_75 = arith.constant 0.000000e+00 : f32
      %107 = vector.broadcast %cst_75 : f32 to vector<4x256xf32>
      %108 = arith.maximumf %106, %107 : vector<4x256xf32>
      %cst_76 = arith.constant 0.000000e+00 : f32
      %109 = vector.broadcast %cst_76 : f32 to vector<1x18x4xf32>
      %c0_77 = arith.constant 0 : index
      %c0_78 = arith.constant 0 : index
      %c0_79 = arith.constant 0 : index
      %110 = vector.load %arg9[%c0_77, %c0_78, %c0_79] : memref<18x18x4xf32, #tpu.memory_space<vmem>>, vector<1x18x4xf32>
      tpu.vector_store %arg9[%c0_77, %c0_78, %c0_79], %109 {strides = array<i32>} : memref<18x18x4xf32, #tpu.memory_space<vmem>>, vector<1x18x4xf32>,
      %cst_80 = arith.constant 0.000000e+00 : f32
      %111 = vector.broadcast %cst_80 : f32 to vector<1x18x4xf32>
      %c17 = arith.constant 17 : index
      %c0_81 = arith.constant 0 : index
      %c0_82 = arith.constant 0 : index
      %112 = vector.load %arg9[%c17, %c0_81, %c0_82] : memref<18x18x4xf32, #tpu.memory_space<vmem>>, vector<1x18x4xf32>
      tpu.vector_store %arg9[%c17, %c0_81, %c0_82], %111 {strides = array<i32>} : memref<18x18x4xf32, #tpu.memory_space<vmem>>, vector<1x18x4xf32>,
      %cst_83 = arith.constant 0.000000e+00 : f32
      %113 = vector.broadcast %cst_83 : f32 to vector<18x1x4xf32>
      %c0_84 = arith.constant 0 : index
      %c0_85 = arith.constant 0 : index
      %c0_86 = arith.constant 0 : index
      %114 = vector.load %arg9[%c0_84, %c0_85, %c0_86] : memref<18x18x4xf32, #tpu.memory_space<vmem>>, vector<18x1x4xf32>
      tpu.vector_store %arg9[%c0_84, %c0_85, %c0_86], %113 {strides = array<i32>} : memref<18x18x4xf32, #tpu.memory_space<vmem>>, vector<18x1x4xf32>,
      %cst_87 = arith.constant 0.000000e+00 : f32
      %115 = vector.broadcast %cst_87 : f32 to vector<18x1x4xf32>
      %c0_88 = arith.constant 0 : index
      %c17_89 = arith.constant 17 : index
      %c0_90 = arith.constant 0 : index
      %116 = vector.load %arg9[%c0_88, %c17_89, %c0_90] : memref<18x18x4xf32, #tpu.memory_space<vmem>>, vector<18x1x4xf32>
      tpu.vector_store %arg9[%c0_88, %c17_89, %c0_90], %115 {strides = array<i32>} : memref<18x18x4xf32, #tpu.memory_space<vmem>>, vector<18x1x4xf32>,
      %117 = tpu.transpose %108, [1, 0] : vector<4x256xf32> -> vector<256x4xf32>
      %118 = vector.shape_cast %117 : vector<256x4xf32> to vector<16x16x4xf32>
      %c1_91 = arith.constant 1 : index
      %c1_92 = arith.constant 1 : index
      %c0_93 = arith.constant 0 : index
      %119 = vector.load %arg9[%c1_91, %c1_92, %c0_93] : memref<18x18x4xf32, #tpu.memory_space<vmem>>, vector<16x16x4xf32>
      tpu.vector_store %arg9[%c1_91, %c1_92, %c0_93], %118 {strides = array<i32>} : memref<18x18x4xf32, #tpu.memory_space<vmem>>, vector<16x16x4xf32>,
      %cst_94 = arith.constant 0.000000e+00 : f32
      %120 = vector.broadcast %cst_94 : f32 to vector<1x4x2xf32>
      %c0_95 = arith.constant 0 : index
      %c0_96 = arith.constant 0 : index
      %c0_97 = arith.constant 0 : index
      %121 = vector.load %arg7[%c0_95, %c0_96, %c0_97] : memref<1x4x2xf32, #tpu.memory_space<vmem>>, vector<1x4x2xf32>
      tpu.vector_store %arg7[%c0_95, %c0_96, %c0_97], %120 {strides = array<i32>} : memref<1x4x2xf32, #tpu.memory_space<vmem>>, vector<1x4x2xf32>,
    } else {
    }
    %c16_i32 = arith.constant 16 : i32
    %3 = arith.muli %arg1, %c16_i32 : i32
    %4 = tpu.assume_multiple %3, 16 : i32
    %c0_i32_1 = arith.constant 0 : i32
    %5 = arith.addi %4, %c0_i32_1 : i32
    %6 = arith.index_cast %5 : i32 to index
    %c0 = arith.constant 0 : index
    %c0_2 = arith.constant 0 : index
    %7 = vector.load %arg9[%6, %c0, %c0_2] : memref<18x18x4xf32, #tpu.memory_space<vmem>>, vector<16x16x4xf32>
    %8 = vector.shape_cast %7 : vector<16x16x4xf32> to vector<256x4xf32>
    %c0_3 = arith.constant 0 : index
    %c0_4 = arith.constant 0 : index
    %c0_5 = arith.constant 0 : index
    %9 = vector.load %arg3[%c0_3, %c0_4, %c0_5] : memref<9x4x4xf32, #tpu.memory_space<vmem>>, vector<1x4x4xf32>
    %10 = vector.shape_cast %9 : vector<1x4x4xf32> to vector<4x4xf32>
    %cst = arith.constant dense<0.000000e+00> : vector<256x4xf32>
    %11 = tpu.matmul %8, %10, %cst {dimension_numbers = #tpu.dot_dimension_numbers<[1], [0], [0], [1], [0, 0, 1, 1], [], []>} : vector<256x4xf32>, vector<4x4xf32>, vector<256x4xf32> -> vector<256x4xf32>
    %c0_i32_6 = arith.constant 0 : i32
    %12 = arith.addi %4, %c0_i32_6 : i32
    %13 = arith.index_cast %12 : i32 to index
    %c1 = arith.constant 1 : index
    %c0_7 = arith.constant 0 : index
    %14 = vector.load %arg9[%13, %c1, %c0_7] : memref<18x18x4xf32, #tpu.memory_space<vmem>>, vector<16x16x4xf32>
    %15 = vector.shape_cast %14 : vector<16x16x4xf32> to vector<256x4xf32>
    %c1_8 = arith.constant 1 : index
    %c0_9 = arith.constant 0 : index
    %c0_10 = arith.constant 0 : index
    %16 = vector.load %arg3[%c1_8, %c0_9, %c0_10] : memref<9x4x4xf32, #tpu.memory_space<vmem>>, vector<1x4x4xf32>
    %17 = vector.shape_cast %16 : vector<1x4x4xf32> to vector<4x4xf32>
    %cst_11 = arith.constant dense<0.000000e+00> : vector<256x4xf32>
    %18 = tpu.matmul %15, %17, %cst_11 {dimension_numbers = #tpu.dot_dimension_numbers<[1], [0], [0], [1], [0, 0, 1, 1], [], []>} : vector<256x4xf32>, vector<4x4xf32>, vector<256x4xf32> -> vector<256x4xf32>
    %19 = arith.addf %11, %18 : vector<256x4xf32>
    %c0_i32_12 = arith.constant 0 : i32
    %20 = arith.addi %4, %c0_i32_12 : i32
    %21 = arith.index_cast %20 : i32 to index
    %c2 = arith.constant 2 : index
    %c0_13 = arith.constant 0 : index
    %22 = vector.load %arg9[%21, %c2, %c0_13] : memref<18x18x4xf32, #tpu.memory_space<vmem>>, vector<16x16x4xf32>
    %23 = vector.shape_cast %22 : vector<16x16x4xf32> to vector<256x4xf32>
    %c2_14 = arith.constant 2 : index
    %c0_15 = arith.constant 0 : index
    %c0_16 = arith.constant 0 : index
    %24 = vector.load %arg3[%c2_14, %c0_15, %c0_16] : memref<9x4x4xf32, #tpu.memory_space<vmem>>, vector<1x4x4xf32>
    %25 = vector.shape_cast %24 : vector<1x4x4xf32> to vector<4x4xf32>
    %cst_17 = arith.constant dense<0.000000e+00> : vector<256x4xf32>
    %26 = tpu.matmul %23, %25, %cst_17 {dimension_numbers = #tpu.dot_dimension_numbers<[1], [0], [0], [1], [0, 0, 1, 1], [], []>} : vector<256x4xf32>, vector<4x4xf32>, vector<256x4xf32> -> vector<256x4xf32>
    %27 = arith.addf %19, %26 : vector<256x4xf32>
    %c1_i32 = arith.constant 1 : i32
    %28 = arith.addi %4, %c1_i32 : i32
    %29 = arith.index_cast %28 : i32 to index
    %c0_18 = arith.constant 0 : index
    %c0_19 = arith.constant 0 : index
    %30 = vector.load %arg9[%29, %c0_18, %c0_19] : memref<18x18x4xf32, #tpu.memory_space<vmem>>, vector<16x16x4xf32>
    %31 = vector.shape_cast %30 : vector<16x16x4xf32> to vector<256x4xf32>
    %c3 = arith.constant 3 : index
    %c0_20 = arith.constant 0 : index
    %c0_21 = arith.constant 0 : index
    %32 = vector.load %arg3[%c3, %c0_20, %c0_21] : memref<9x4x4xf32, #tpu.memory_space<vmem>>, vector<1x4x4xf32>
    %33 = vector.shape_cast %32 : vector<1x4x4xf32> to vector<4x4xf32>
    %cst_22 = arith.constant dense<0.000000e+00> : vector<256x4xf32>
    %34 = tpu.matmul %31, %33, %cst_22 {dimension_numbers = #tpu.dot_dimension_numbers<[1], [0], [0], [1], [0, 0, 1, 1], [], []>} : vector<256x4xf32>, vector<4x4xf32>, vector<256x4xf32> -> vector<256x4xf32>
    %35 = arith.addf %27, %34 : vector<256x4xf32>
    %c1_i32_23 = arith.constant 1 : i32
    %36 = arith.addi %4, %c1_i32_23 : i32
    %37 = arith.index_cast %36 : i32 to index
    %c1_24 = arith.constant 1 : index
    %c0_25 = arith.constant 0 : index
    %38 = vector.load %arg9[%37, %c1_24, %c0_25] : memref<18x18x4xf32, #tpu.memory_space<vmem>>, vector<16x16x4xf32>
    %39 = vector.shape_cast %38 : vector<16x16x4xf32> to vector<256x4xf32>
    %c4 = arith.constant 4 : index
    %c0_26 = arith.constant 0 : index
    %c0_27 = arith.constant 0 : index
    %40 = vector.load %arg3[%c4, %c0_26, %c0_27] : memref<9x4x4xf32, #tpu.memory_space<vmem>>, vector<1x4x4xf32>
    %41 = vector.shape_cast %40 : vector<1x4x4xf32> to vector<4x4xf32>
    %cst_28 = arith.constant dense<0.000000e+00> : vector<256x4xf32>
    %42 = tpu.matmul %39, %41, %cst_28 {dimension_numbers = #tpu.dot_dimension_numbers<[1], [0], [0], [1], [0, 0, 1, 1], [], []>} : vector<256x4xf32>, vector<4x4xf32>, vector<256x4xf32> -> vector<256x4xf32>
    %43 = arith.addf %35, %42 : vector<256x4xf32>
    %c1_i32_29 = arith.constant 1 : i32
    %44 = arith.addi %4, %c1_i32_29 : i32
    %45 = arith.index_cast %44 : i32 to index
    %c2_30 = arith.constant 2 : index
    %c0_31 = arith.constant 0 : index
    %46 = vector.load %arg9[%45, %c2_30, %c0_31] : memref<18x18x4xf32, #tpu.memory_space<vmem>>, vector<16x16x4xf32>
    %47 = vector.shape_cast %46 : vector<16x16x4xf32> to vector<256x4xf32>
    %c5 = arith.constant 5 : index
    %c0_32 = arith.constant 0 : index
    %c0_33 = arith.constant 0 : index
    %48 = vector.load %arg3[%c5, %c0_32, %c0_33] : memref<9x4x4xf32, #tpu.memory_space<vmem>>, vector<1x4x4xf32>
    %49 = vector.shape_cast %48 : vector<1x4x4xf32> to vector<4x4xf32>
    %cst_34 = arith.constant dense<0.000000e+00> : vector<256x4xf32>
    %50 = tpu.matmul %47, %49, %cst_34 {dimension_numbers = #tpu.dot_dimension_numbers<[1], [0], [0], [1], [0, 0, 1, 1], [], []>} : vector<256x4xf32>, vector<4x4xf32>, vector<256x4xf32> -> vector<256x4xf32>
    %51 = arith.addf %43, %50 : vector<256x4xf32>
    %c2_i32 = arith.constant 2 : i32
    %52 = arith.addi %4, %c2_i32 : i32
    %53 = arith.index_cast %52 : i32 to index
    %c0_35 = arith.constant 0 : index
    %c0_36 = arith.constant 0 : index
    %54 = vector.load %arg9[%53, %c0_35, %c0_36] : memref<18x18x4xf32, #tpu.memory_space<vmem>>, vector<16x16x4xf32>
    %55 = vector.shape_cast %54 : vector<16x16x4xf32> to vector<256x4xf32>
    %c6 = arith.constant 6 : index
    %c0_37 = arith.constant 0 : index
    %c0_38 = arith.constant 0 : index
    %56 = vector.load %arg3[%c6, %c0_37, %c0_38] : memref<9x4x4xf32, #tpu.memory_space<vmem>>, vector<1x4x4xf32>
    %57 = vector.shape_cast %56 : vector<1x4x4xf32> to vector<4x4xf32>
    %cst_39 = arith.constant dense<0.000000e+00> : vector<256x4xf32>
    %58 = tpu.matmul %55, %57, %cst_39 {dimension_numbers = #tpu.dot_dimension_numbers<[1], [0], [0], [1], [0, 0, 1, 1], [], []>} : vector<256x4xf32>, vector<4x4xf32>, vector<256x4xf32> -> vector<256x4xf32>
    %59 = arith.addf %51, %58 : vector<256x4xf32>
    %c2_i32_40 = arith.constant 2 : i32
    %60 = arith.addi %4, %c2_i32_40 : i32
    %61 = arith.index_cast %60 : i32 to index
    %c1_41 = arith.constant 1 : index
    %c0_42 = arith.constant 0 : index
    %62 = vector.load %arg9[%61, %c1_41, %c0_42] : memref<18x18x4xf32, #tpu.memory_space<vmem>>, vector<16x16x4xf32>
    %63 = vector.shape_cast %62 : vector<16x16x4xf32> to vector<256x4xf32>
    %c7 = arith.constant 7 : index
    %c0_43 = arith.constant 0 : index
    %c0_44 = arith.constant 0 : index
    %64 = vector.load %arg3[%c7, %c0_43, %c0_44] : memref<9x4x4xf32, #tpu.memory_space<vmem>>, vector<1x4x4xf32>
    %65 = vector.shape_cast %64 : vector<1x4x4xf32> to vector<4x4xf32>
    %cst_45 = arith.constant dense<0.000000e+00> : vector<256x4xf32>
    %66 = tpu.matmul %63, %65, %cst_45 {dimension_numbers = #tpu.dot_dimension_numbers<[1], [0], [0], [1], [0, 0, 1, 1], [], []>} : vector<256x4xf32>, vector<4x4xf32>, vector<256x4xf32> -> vector<256x4xf32>
    %67 = arith.addf %59, %66 : vector<256x4xf32>
    %c2_i32_46 = arith.constant 2 : i32
    %68 = arith.addi %4, %c2_i32_46 : i32
    %69 = arith.index_cast %68 : i32 to index
    %c2_47 = arith.constant 2 : index
    %c0_48 = arith.constant 0 : index
    %70 = vector.load %arg9[%69, %c2_47, %c0_48] : memref<18x18x4xf32, #tpu.memory_space<vmem>>, vector<16x16x4xf32>
    %71 = vector.shape_cast %70 : vector<16x16x4xf32> to vector<256x4xf32>
    %c8 = arith.constant 8 : index
    %c0_49 = arith.constant 0 : index
    %c0_50 = arith.constant 0 : index
    %72 = vector.load %arg3[%c8, %c0_49, %c0_50] : memref<9x4x4xf32, #tpu.memory_space<vmem>>, vector<1x4x4xf32>
    %73 = vector.shape_cast %72 : vector<1x4x4xf32> to vector<4x4xf32>
    %cst_51 = arith.constant dense<0.000000e+00> : vector<256x4xf32>
    %74 = tpu.matmul %71, %73, %cst_51 {dimension_numbers = #tpu.dot_dimension_numbers<[1], [0], [0], [1], [0, 0, 1, 1], [], []>} : vector<256x4xf32>, vector<4x4xf32>, vector<256x4xf32> -> vector<256x4xf32>
    %75 = arith.addf %67, %74 : vector<256x4xf32>
    %76 = tpu.transpose %75, [1, 0] : vector<256x4xf32> -> vector<4x256xf32>
    %c0_52 = arith.constant 0 : index
    %c0_53 = arith.constant 0 : index
    %c0_54 = arith.constant 0 : index
    %77 = vector.load %arg6[%c0_52, %c0_53, %c0_54] : memref<1x4x256xf32, #tpu.memory_space<vmem>>, vector<1x4x256xf32>
    %78 = vector.shape_cast %77 : vector<1x4x256xf32> to vector<4x256xf32>
    %79 = vector.shape_cast %76 : vector<4x256xf32> to vector<1x4x256xf32>
    tpu.vector_store %arg6[%c0_52, %c0_53, %c0_54], %79 {strides = array<i32>} : memref<1x4x256xf32, #tpu.memory_space<vmem>>, vector<1x4x256xf32>,
    %cst_55 = arith.constant dense<0.000000e+00> : vector<4xf32>
    %80 = vector.multi_reduction <add>, %76, %cst_55 [1] : vector<4x256xf32> to vector<4xf32>
    %81 = vector.shape_cast %80 : vector<4xf32> to vector<4x1xf32>
    %82 = arith.mulf %76, %76 : vector<4x256xf32>
    %cst_56 = arith.constant dense<0.000000e+00> : vector<4xf32>
    %83 = vector.multi_reduction <add>, %82, %cst_56 [1] : vector<4x256xf32> to vector<4xf32>
    %84 = vector.shape_cast %83 : vector<4xf32> to vector<4x1xf32>
    %c0_57 = arith.constant 0 : index
    %c0_58 = arith.constant 0 : index
    %c0_59 = arith.constant 0 : index
    %85 = vector.load %arg7[%c0_57, %c0_58, %c0_59] : memref<1x4x2xf32, #tpu.memory_space<vmem>>, vector<1x4x2xf32>
    %86 = vector.shape_cast %85 : vector<1x4x2xf32> to vector<4x2xf32>
    %87 = tpu.concatenate %81, %84 in 1 : vector<4x1xf32>, vector<4x1xf32> -> vector<4x2xf32>
    %88 = arith.addf %86, %87 : vector<4x2xf32>
    %c0_60 = arith.constant 0 : index
    %c0_61 = arith.constant 0 : index
    %c0_62 = arith.constant 0 : index
    %89 = vector.load %arg7[%c0_60, %c0_61, %c0_62] : memref<1x4x2xf32, #tpu.memory_space<vmem>>, vector<1x4x2xf32>
    %90 = vector.shape_cast %89 : vector<1x4x2xf32> to vector<4x2xf32>
    %91 = vector.shape_cast %88 : vector<4x2xf32> to vector<1x4x2xf32>
    tpu.vector_store %arg7[%c0_60, %c0_61, %c0_62], %91 {strides = array<i32>} : memref<1x4x2xf32, #tpu.memory_space<vmem>>, vector<1x4x2xf32>,
    return
  }
  func.func @transform_1(%arg0: i32, %arg1: i32) -> (i32, i32, i32) {
    %c0_i32 = arith.constant 0 : i32
    %c0_i32_0 = arith.constant 0 : i32
    %c0_i32_1 = arith.constant 0 : i32
    %c0_i32_2 = arith.constant 0 : i32
    return %c0_i32, %c0_i32_0, %c0_i32_1 : i32, i32, i32
  }
  func.func @transform_2(%arg0: i32, %arg1: i32) -> (i32, i32) {
    %c0_i32 = arith.constant 0 : i32
    %c0_i32_0 = arith.constant 0 : i32
    %c0_i32_1 = arith.constant 0 : i32
    return %c0_i32, %c0_i32_0 : i32, i32
  }
  func.func @transform_3(%arg0: i32, %arg1: i32) -> (i32, i32) {
    %c0_i32 = arith.constant 0 : i32
    %c0_i32_0 = arith.constant 0 : i32
    %c0_i32_1 = arith.constant 0 : i32
    return %c0_i32, %c0_i32_0 : i32, i32
  }
  func.func @transform_4(%arg0: i32, %arg1: i32) -> (i32, i32, i32) {
    %c0_i32 = arith.constant 0 : i32
    %c0_i32_0 = arith.constant 0 : i32
    return %arg0, %c0_i32, %arg1 : i32, i32, i32
  }
  func.func @transform_5(%arg0: i32, %arg1: i32) -> (i32, i32, i32) {
    %c0_i32 = arith.constant 0 : i32
    %c0_i32_0 = arith.constant 0 : i32
    %c0_i32_1 = arith.constant 0 : i32
    return %arg0, %c0_i32, %c0_i32_0 : i32, i32, i32
  }
}

</mosaic_0001>

<bundles_post_ra>
// kernel: basic_block_forward.5
= control target key start
LH: loop header
LB: loop body
LE: loop exit
PB: predicated region body
PF: predicated region fallthrough
CT: control target
= control target key end

     0   :  { %s414_s12 = smov 0   ;;  %s416_s13 = smov 0   ;;  %s453_s0 = inlined_call_operand.vmem [shape: f32[2,4,256], index: 0, kind: input, shape index: {}]   ;;  %s454_s1 = inlined_call_operand.vmem [shape: f32[4,1], index: 1, kind: input, shape index: {}]   ;;  %s455_s2 = inlined_call_operand.vmem [shape: f32[4,1], index: 2, kind: input, shape index: {}]   ;;  %s456_s3 = inlined_call_operand.vmem [shape: f32[2,4,256], index: 3, kind: output, shape index: {}]  }
   0x1   :  { %s418_s14 = smov 0  }
   0x2 LB: > { %s25_s15 = sadd.s32 1, %s386_s13  ;;  %p332_p0 = scmp.ge.s32.totalorder %s390_s14, 1  ;;  %s390_s14 = sphi %s418_s14, %s13_s14   ;;  %s386_s13 = sphi %s416_s13, %s458_s13   ;;  %s382_s12 = sphi %s414_s12, %s457_s12  }
   0x3   : > { %p27_p1 = scmp.ge.s32.totalorder %s25_s15, 2  ;;  %p158_p2 = scmp.lt.s32.totalorder %s390_s14, 3 }
   0x5   : > { %s460_s15 = smov (%p27_p1, %s25_s15), 0  ;;  %p159_p3 = pnand %p332_p0, %p158_p2 }
   0x6   : > { %v211_v0 = vld [vmem:[%s454_s1] sm:$0xf] (!%p159_p3)  ;;  %v392_v1 = vmov (!%p159_p3), 0   ;;  %p191_p4 = scmp.lt.s32.totalorder (!%p159_p3), %s382_s12, 1  ;;  %v393_v3 = vmov (!%p159_p3), 839922192   ;;  %v219_v5 = vlaneseq (!%p159_p3) }
   0x7   : > { %162 = sbr.rel (%p159_p3) target bundleno = 147 (0x93), region = 32  ;;  %367 = vset.pattern.permute.xlu0 (!%p159_p3), %v392_v1  ;;  %v225_v2 = vld [vmem:[%s455_s2] sm:$0xf] (!%p159_p3)  ;;  %v217_v4 = vunpack.c.l.s4 (!%p159_p3), %v393_v3 }
   0x8   : > { %214 = vperm.xlu0 (!%p159_p3), %367, %v211_v0   ;;  %v220_v7 = vshrl.u32 (!%p159_p3), %v219_v5, 7 }
   0x9   : > { %v218_v6 = vunpack.c.0.s8 (!%p159_p3), %v217_v4 }
   0xb   : > { %v221_v8 = vsub.s32 (!%p159_p3), %v218_v6, %v220_v7 }
   0xc   : > { %228 = vperm.xlu0 (!%p159_p3), %367, %v225_v2  }
   0xe   : > { %s462_s12 = smov (!%p191_p4, %s382_s12), 1 }
   0xf   : > { %s339_s20 = sshll.u32 %s462_s12, 3 }
  0x10   : > { %s198_s23 = scalar_lea.vmem %s453_s0, %s339_s20  ;;  %s208_s26 = scalar_lea.vmem %s456_s3, %s339_s20 }
  0x11   : > { %v210_v11 = vld [vmem:[%s198_s23] sm:$0xff] }
  0x87   : > { %v215_v9 = vpop.permute.xlu0 %214 }
  0x88   : > { %v222_v10 = vrot.slane %v215_v9, %v221_v8 }
  0x8a   : > { %v224_v13 = vmul.f32 %v222_v10, %v210_v11 }
  0x8b   : > { %v229_v12 = vpop.permute.xlu0 %228 }
  0x8c   : > { %v236_v14 = vrot.slane %v229_v12, %v221_v8 }
  0x8e   : > { %v238_v15 = vadd.f32 %v236_v14, %v224_v13 }
  0x90   : > { %v239_v16 = vmax.f32 %v238_v15, 0.0 }
  0x92   : > { %240 = vst [vmem:[%s208_s26] sm:$0xff] %v239_v16 }
  0x93 PF: > { %s13_s14 = sadd.s32 1, %s390_s14   ;;  %s457_s12 = smov %s386_s13 }
  0x94   : > { %p10_p5 = scmp.ge.s32.totalorder %s13_s14, 4   ;;  %s458_s13 = smov %s460_s15 }
  0x96   :  { %12 = sbr.rel (!%p10_p5) target bundleno = 2 (0x2), region = 62 }

// kernel: basic_block_forward.3
= control target key start
LH: loop header
LB: loop body
LE: loop exit
PB: predicated region body
PF: predicated region fallthrough
CT: control target
= control target key end

     0   :  { %s5715_s18 = smov 0   ;;  %s5717_s19 = smov 0   ;;  %s6705_s0 = inlined_call_operand.vmem [shape: f32[2,4,256], index: 0, kind: input, shape index: {}]   ;;  %s6706_s1 = inlined_call_operand.vmem [shape: f32[9,4,4], index: 1, kind: input, shape index: {}]   ;;  %s6707_s2 = inlined_call_operand.vmem [shape: f32[4,1], index: 2, kind: input, shape index: {}]   ;;  %s6708_s3 = inlined_call_operand.vmem [shape: f32[4,1], index: 3, kind: input, shape index: {}]   ;;  %s6709_s4 = inlined_call_operand.vmem [shape: f32[2,4,256], index: 4, kind: output, shape index: {0}]   ;;  %s6710_s5 = inlined_call_operand.vmem [shape: f32[2,4,2], index: 5, kind: output, shape index: {1}]  }
   0x1   :  { %s5719_s20 = smov 0  }
   0x2 LB: > { %s28_s21 = sadd.s32 1, %s5676_s19  ;;  %p4115_p0 = scmp.ge.s32.totalorder %s5680_s20, 1  ;;  %s5680_s20 = sphi %s5719_s20, %s16_s20   ;;  %s5676_s19 = sphi %s5717_s19, %s6819_s19   ;;  %s5672_s18 = sphi %s5715_s18, %s6818_s18  }
   0x3   : > { %p30_p1 = scmp.ge.s32.totalorder %s28_s21, 2  ;;  %p170_p2 = scmp.lt.s32.totalorder %s5680_s20, 3 }
   0x5   : > { %s6821_s21 = smov (%p30_p1, %s28_s21), 0  ;;  %p171_p3 = pnand %p4115_p0, %p170_p2 }
   0x7   : > { %174 = sbr.rel (%p171_p3) target bundleno = 1105 (0x451), region = 32 }
   0xe   : > { %p200_p4 = scmp.lt.s32.totalorder %s5672_s18, 1  ;;  %s4622_s22 = sshll.u32 %s5672_s18, 3 }
   0xf   : > { %s219_s25 = scalar_lea.vmem %s6705_s0, %s4622_s22 }
  0x10   : > { %s6823_s18 = smov (!%p200_p4, %s5672_s18), 1  ;;  %v252_v0 = vld [vmem:[%s219_s25] sm:$0xff] }
  0x11   : > { %s4621_s26 = sshll.u32 %s6823_s18, 3  ;;  %s4118_s27 = sshll.u32 %s6823_s18, 2 }
  0x12   : > { %s5739_s30 = scalar_lea.vmem %s6709_s4, %s4621_s26  ;;  %s5744_s8 = scalar_lea.vmem %s6710_s5, %s4118_s27 }
  0x13   : > { %261 = vsyncadd [#allocation4], 128 }
  0x14   : > { %5668 = dma.done.wait [#allocation4], 128 }
  0x15   : > { %5669 = vsyncadd [#allocation4], 4294967168  ;;  %v5682_v1 = vmov 0   ;;  %v267_v2 = vld [vmem:[%s6707_s2] sm:$0xf]  ;;  %v275_v6 = vlaneseq  ;;  %vm295_vm0 = vcmask 31744  }
  0x16   : > { %5655 = vset.pattern.permute.xlu0 %v5682_v1  ;;  %v281_v3 = vld [vmem:[%s6708_s3] sm:$0xf]  ;;  %v5683_v4 = vmov 839922192   ;;  %v6711_v16 = vmov 0.0   ;;  %vm298_vm1 = vcmask 25600  }
  0x17   : > { %270 = vperm.xlu0 %5655, %v267_v2   ;;  %v273_v5 = vunpack.c.l.s4 %v5683_v4  ;;  %v276_v8 = vshrl.u32 %v275_v6, 7  ;;  %296 = vst.msk [vmem:[#allocation3] sm:$0xff] %vm295_vm0, %v6711_v16  ;;  %297 = vst.msk [vmem:[#allocation3 + $0x8] sm:$0xff] %vm295_vm0, %v6711_v16  ;;  %vm304_vm2 = vcmask 24576   ;;  %v4121_v17 = vld [vmem:[%s6706_s1 + $0x4] sm:$0xf] }
  0x18   : > { %301 = vst.msk [vmem:[#allocation3 + $0x198] sm:$0xff] %vm295_vm0, %v6711_v16  ;;  %302 = vst.msk [vmem:[#allocation3 + $0x1a0] sm:$0xff] %vm295_vm0, %v6711_v16  ;;  %vm610_vm3 = vcmask 1043456   ;;  %v5844_v20 = vld [vmem:[%s6706_s1 + $0x10] sm:$0xf]  ;;  %vm441_vm4 = vcmask 11264  }
  0x19   : > { %v274_v7 = vunpack.c.0.s8 %v273_v5  ;;  %299 = vst.msk [vmem:[#allocation3 + $0x10] sm:$0x3] %vm298_vm1, %v6711_v16  ;;  %303 = vst.msk [vmem:[#allocation3 + $0x1a8] sm:$0x3] %vm298_vm1, %v6711_v16  ;;  %4920 = vmatprep.subr.msk.mxu1 %vm610_vm3, %v4121_v17  ;;  %5120 = vmatprep.subr.msk.mxu0 %vm610_vm3, %v5844_v20  ;;  %v478_v22 = vld [vmem:[%s6706_s1] sm:$0xf] }
  0x1a   : > { %323 = vst.msk [vmem:[#allocation3 + $0x11] sm:$0x1] %vm304_vm2, %v6711_v16  ;;  %305 = vst.msk [vmem:[#allocation3] sm:$0x1] %vm304_vm2, %v6711_v16  ;;  %4921 = vmatpush3.msk.msra.mxu1 %vm610_vm3, %v4121_v17  ;;  %5121 = vmatpush3.msk.msra.mxu0 %vm610_vm3, %v5844_v20  ;;  %v4386_v23 = vld [vmem:[%s6706_s1 + $0x14] sm:$0xf] }
  0x1b   : > { %284 = vperm.xlu0 %5655, %v281_v3   ;;  %v277_v9 = vsub.s32 %v274_v7, %v276_v8  ;;  %306 = vst.msk [vmem:[#allocation3 + $0x18] sm:$0x1] %vm304_vm2, %v6711_v16  ;;  %307 = vst.msk [vmem:[#allocation3 + $0x30] sm:$0x1] %vm304_vm2, %v6711_v16  ;;  %4970 = vmatprep.subr.msk.mxu1 %vm610_vm3, %v478_v22  ;;  %v5862_v24 = vld [vmem:[%s6706_s1 + $0x8] sm:$0xf] }
  0x1c   : > { %308 = vst.msk [vmem:[#allocation3 + $0x48] sm:$0x1] %vm304_vm2, %v6711_v16  ;;  %309 = vst.msk [vmem:[#allocation3 + $0x60] sm:$0x1] %vm304_vm2, %v6711_v16  ;;  %5170 = vmatprep.subr.msk.mxu0 %vm610_vm3, %v4386_v23  ;;  %v5874_v31 = vld [vmem:[%s6706_s1 + $0x18] sm:$0xf] }
  0x1d   : > { %310 = vst.msk [vmem:[#allocation3 + $0x78] sm:$0x1] %vm304_vm2, %v6711_v16  ;;  %311 = vst.msk [vmem:[#allocation3 + $0x90] sm:$0x1] %vm304_vm2, %v6711_v16  ;;  %vm3981_vm5 = vcmask 7168  }
  0x1e   : > { %312 = vst.msk [vmem:[#allocation3 + $0xa8] sm:$0x1] %vm304_vm2, %v6711_v16  ;;  %313 = vst.msk [vmem:[#allocation3 + $0xc0] sm:$0x1] %vm304_vm2, %v6711_v16  ;;  %v479_v18 = vld [vmem:[#allocation3 + $0x1] sm:$0xff] }
  0x1f   : > { %314 = vst.msk [vmem:[#allocation3 + $0xd8] sm:$0x1] %vm304_vm2, %v6711_v16  ;;  %315 = vst.msk [vmem:[#allocation3 + $0xf0] sm:$0x1] %vm304_vm2, %v6711_v16  ;;  %4922 = vmatprep.mubr.msk.f32.mxu1 %vm295_vm0, %v479_v18 }
  0x20   : > { %316 = vst.msk [vmem:[#allocation3 + $0x108] sm:$0x1] %vm304_vm2, %v6711_v16  ;;  %317 = vst.msk [vmem:[#allocation3 + $0x120] sm:$0x1] %vm304_vm2, %v6711_v16  ;;  %v480_v19 = vld [vmem:[#allocation3 + $0x9] sm:$0xff] }
  0x21   : > { %318 = vst.msk [vmem:[#allocation3 + $0x138] sm:$0x1] %vm304_vm2, %v6711_v16  ;;  %319 = vst.msk [vmem:[#allocation3 + $0x150] sm:$0x1] %vm304_vm2, %v6711_v16  ;;  %4923 = vmatmul.mubr.msk.f32.vlgmr.msra.gmra.mrb[0].mxu1 %vm295_vm0, %v480_v19 }
  0x22   : > { %320 = vst.msk [vmem:[#allocation3 + $0x168] sm:$0x1] %vm304_vm2, %v6711_v16  ;;  %321 = vst.msk [vmem:[#allocation3 + $0x180] sm:$0x1] %vm304_vm2, %v6711_v16  ;;  %4971 = vmatpush3.msk.msra.mxu1 %vm610_vm3, %v478_v22 }
  0x23   : > { %322 = vst.msk [vmem:[#allocation3 + $0x198] sm:$0x1] %vm304_vm2, %v6711_v16  ;;  %324 = vst.msk [vmem:[#allocation3 + $0x29] sm:$0x1] %vm304_vm2, %v6711_v16  ;;  %5020 = vmatprep.subr.msk.mxu1 %vm610_vm3, %v5862_v24 }
  0x24   : > { %325 = vst.msk [vmem:[#allocation3 + $0x41] sm:$0x1] %vm304_vm2, %v6711_v16  ;;  %326 = vst.msk [vmem:[#allocation3 + $0x59] sm:$0x1] %vm304_vm2, %v6711_v16 }
  0x25   : > { %327 = vst.msk [vmem:[#allocation3 + $0x71] sm:$0x1] %vm304_vm2, %v6711_v16  ;;  %328 = vst.msk [vmem:[#allocation3 + $0x89] sm:$0x1] %vm304_vm2, %v6711_v16 }
  0x26   : > { %329 = vst.msk [vmem:[#allocation3 + $0xa1] sm:$0x1] %vm304_vm2, %v6711_v16  ;;  %330 = vst.msk [vmem:[#allocation3 + $0xb9] sm:$0x1] %vm304_vm2, %v6711_v16 }
  0x27   : > { %331 = vst.msk [vmem:[#allocation3 + $0xd1] sm:$0x1] %vm304_vm2, %v6711_v16  ;;  %332 = vst.msk [vmem:[#allocation3 + $0xe9] sm:$0x1] %vm304_vm2, %v6711_v16 }
  0x28   : > { %333 = vst.msk [vmem:[#allocation3 + $0x101] sm:$0x1] %vm304_vm2, %v6711_v16  ;;  %334 = vst.msk [vmem:[#allocation3 + $0x119] sm:$0x1] %vm304_vm2, %v6711_v16 }
  0x29   : > { %335 = vst.msk [vmem:[#allocation3 + $0x131] sm:$0x1] %vm304_vm2, %v6711_v16  ;;  %336 = vst.msk [vmem:[#allocation3 + $0x149] sm:$0x1] %vm304_vm2, %v6711_v16 }
  0x2a   : > { %337 = vst.msk [vmem:[#allocation3 + $0x161] sm:$0x1] %vm304_vm2, %v6711_v16  ;;  %338 = vst.msk [vmem:[#allocation3 + $0x179] sm:$0x1] %vm304_vm2, %v6711_v16 }
  0x2b   : > { %339 = vst.msk [vmem:[#allocation3 + $0x191] sm:$0x1] %vm304_vm2, %v6711_v16  ;;  %340 = vst.msk [vmem:[#allocation3 + $0x1a9] sm:$0x1] %vm304_vm2, %v6711_v16 }
  0x96   : > { %v271_v10 = vpop.permute.xlu0 %270 }
  0x97   : > { %v278_v11 = vrot.slane %v271_v10, %v277_v9 }
  0x99   : > { %v280_v13 = vmul.f32 %v278_v11, %v252_v0  ;;  %v5991_v0 = vld [vmem:[%s6706_s1 + $0x1c] sm:$0xf] }
  0x9a   : > { %v285_v12 = vpop.permute.xlu0 %284 }
  0x9b   : > { %v292_v14 = vrot.slane %v285_v12, %v277_v9 }
  0x9d   : > { %v294_v15 = vadd.f32 %v292_v14, %v280_v13 }
  0x9f   : > { %344 = vxpose.xlu1.b32.start.end [1/1] (short) %v294_v15, 128  ;;  %v342_v21 = vcombine.high %v294_v15, %v294_v15 }
  0xdc   : > { %376 = vxpose.xlu1.b32.start.end [1/1] (short) %v342_v21, 128 }
 0x11f   : > { %v360_v25 = vpop.trf.xlu1 }
 0x120   : > { %409 = vst.msk [vmem:[#allocation3 + $0x19] sm:$0xff] %vm295_vm0, %v360_v25 }
 0x123   : > { %v361_v26 = vpop.trf.xlu1 }
 0x124   : > { %410 = vst.msk [vmem:[#allocation3 + $0x21] sm:$0xff] %vm295_vm0, %v361_v26 }
 0x127   : > { %v362_v27 = vpop.trf.xlu1  ;;  %v481_v28 = vld [vmem:[#allocation3 + $0x19] sm:$0xff] }
 0x128   : > { %411 = vst.msk [vmem:[#allocation3 + $0x31] sm:$0xff] %vm295_vm0, %v362_v27  ;;  %4925 = vmatprep.mubr.msk.f32.mxu1 %vm295_vm0, %v481_v28  ;;  %5122 = vmatprep.mubr.msk.f32.mxu0 %vm295_vm0, %v481_v28 }
 0x12b   : > { %v363_v29 = vpop.trf.xlu1  ;;  %v482_v30 = vld [vmem:[#allocation3 + $0x21] sm:$0xff] }
 0x12c   : > { %412 = vst.msk [vmem:[#allocation3 + $0x39] sm:$0xff] %vm295_vm0, %v363_v29  ;;  %4926 = vmatmul.mubr.msk.f32.gmra.mrb[2].mxu1 %vm295_vm0, %v482_v30  ;;  %5123 = vmatmul.mubr.msk.f32.vlgmr.msra.gmra.mrb[0].mxu0 %vm295_vm0, %v482_v30  ;;  %v5980_v60 = vld [vmem:[#allocation3 + $0x1a] sm:$0xff]  ;;  %v5986_v63 = vld [vmem:[#allocation3 + $0x22] sm:$0xff] }
 0x12d   : > { %5171 = vmatpush3.msk.msra.mxu0 %vm610_vm3, %v4386_v23 }
 0x12e   : > { %5220 = vmatprep.subr.msk.mxu0 %vm610_vm3, %v5874_v31 }
 0x12f   : > { %v364_v32 = vpop.trf.xlu1  ;;  %v5882_v33 = vld [vmem:[#allocation3 + $0x31] sm:$0xff] }
 0x130   : > { %413 = vst.msk [vmem:[#allocation3 + $0x49] sm:$0xff] %vm295_vm0, %v364_v32  ;;  %4928 = vmatprep.mubr.msk.f32.mxu1 %vm295_vm0, %v5882_v33  ;;  %5125 = vmatprep.mubr.msk.f32.mxu0 %vm295_vm0, %v5882_v33 }
 0x133   : > { %v365_v34 = vpop.trf.xlu1  ;;  %v5889_v35 = vld [vmem:[#allocation3 + $0x39] sm:$0xff] }
 0x134   : > { %414 = vst.msk [vmem:[#allocation3 + $0x51] sm:$0xff] %vm295_vm0, %v365_v34  ;;  %4929 = vmatmul.mubr.msk.f32.gmra.mrb[4].mxu1 %vm295_vm0, %v5889_v35  ;;  %5126 = vmatmul.mubr.msk.f32.gmra.mrb[2].mxu0 %vm295_vm0, %v5889_v35  ;;  %v5998_v1 = vld [vmem:[#allocation3 + $0x32] sm:$0xff]  ;;  %v6008_v4 = vld [vmem:[#allocation3 + $0x3a] sm:$0xff] }
 0x137   : > { %v366_v36 = vpop.trf.xlu1  ;;  %v5896_v37 = vld [vmem:[#allocation3 + $0x49] sm:$0xff] }
 0x138   : > { %415 = vst.msk [vmem:[#allocation3 + $0x61] sm:$0xff] %vm295_vm0, %v366_v36  ;;  %4931 = vmatprep.mubr.msk.f32.mxu1 %vm295_vm0, %v5896_v37  ;;  %5128 = vmatprep.mubr.msk.f32.mxu0 %vm295_vm0, %v5896_v37 }
 0x13b   : > { %v367_v38 = vpop.trf.xlu1  ;;  %v5903_v39 = vld [vmem:[#allocation3 + $0x51] sm:$0xff] }
 0x13c   : > { %416 = vst.msk [vmem:[#allocation3 + $0x69] sm:$0xff] %vm295_vm0, %v367_v38  ;;  %4932 = vmatmul.mubr.msk.f32.gmra.mrb[6].mxu1 %vm295_vm0, %v5903_v39  ;;  %5129 = vmatmul.mubr.msk.f32.gmra.mrb[4].mxu0 %vm295_vm0, %v5903_v39  ;;  %v6015_v5 = vld [vmem:[#allocation3 + $0x4a] sm:$0xff]  ;;  %v6021_v8 = vld [vmem:[#allocation3 + $0x52] sm:$0xff] }
 0x13f   : > { %v368_v40 = vpop.trf.xlu1  ;;  %v5910_v41 = vld [vmem:[#allocation3 + $0x61] sm:$0xff] }
 0x140   : > { %417 = vst.msk [vmem:[#allocation3 + $0x79] sm:$0xff] %vm295_vm0, %v368_v40  ;;  %4934 = vmatprep.mubr.msk.f32.mxu1 %vm295_vm0, %v5910_v41  ;;  %5131 = vmatprep.mubr.msk.f32.mxu0 %vm295_vm0, %v5910_v41 }
 0x143   : > { %v369_v42 = vpop.trf.xlu1  ;;  %v5917_v43 = vld [vmem:[#allocation3 + $0x69] sm:$0xff] }
 0x144   : > { %418 = vst.msk [vmem:[#allocation3 + $0x81] sm:$0xff] %vm295_vm0, %v369_v42  ;;  %4935 = vmatmul.mubr.msk.f32.gmra.mrb[8].mxu1 %vm295_vm0, %v5917_v43  ;;  %5132 = vmatmul.mubr.msk.f32.gmra.mrb[6].mxu0 %vm295_vm0, %v5917_v43  ;;  %v6028_v9 = vld [vmem:[#allocation3 + $0x62] sm:$0xff]  ;;  %v6034_v12 = vld [vmem:[#allocation3 + $0x6a] sm:$0xff] }
 0x147   : > { %v370_v44 = vpop.trf.xlu1  ;;  %v5924_v45 = vld [vmem:[#allocation3 + $0x79] sm:$0xff] }
 0x148   : > { %419 = vst.msk [vmem:[#allocation3 + $0x91] sm:$0xff] %vm295_vm0, %v370_v44  ;;  %4937 = vmatprep.mubr.msk.f32.mxu1 %vm295_vm0, %v5924_v45  ;;  %5134 = vmatprep.mubr.msk.f32.mxu0 %vm295_vm0, %v5924_v45 }
 0x14b   : > { %v371_v46 = vpop.trf.xlu1  ;;  %v5931_v47 = vld [vmem:[#allocation3 + $0x81] sm:$0xff] }
 0x14c   : > { %420 = vst.msk [vmem:[#allocation3 + $0x99] sm:$0xff] %vm295_vm0, %v371_v46  ;;  %4938 = vmatmul.mubr.msk.f32.gmra.mrb[10].mxu1 %vm295_vm0, %v5931_v47  ;;  %5135 = vmatmul.mubr.msk.f32.gmra.mrb[8].mxu0 %vm295_vm0, %v5931_v47  ;;  %v6041_v13 = vld [vmem:[#allocation3 + $0x7a] sm:$0xff]  ;;  %v6047_v17 = vld [vmem:[#allocation3 + $0x82] sm:$0xff] }
 0x14f   : > { %v372_v48 = vpop.trf.xlu1  ;;  %v5938_v49 = vld [vmem:[#allocation3 + $0x91] sm:$0xff] }
 0x150   : > { %421 = vst.msk [vmem:[#allocation3 + $0xa9] sm:$0xff] %vm295_vm0, %v372_v48  ;;  %4940 = vmatprep.mubr.msk.f32.mxu1 %vm295_vm0, %v5938_v49  ;;  %5137 = vmatprep.mubr.msk.f32.mxu0 %vm295_vm0, %v5938_v49 }
 0x153   : > { %v373_v50 = vpop.trf.xlu1  ;;  %v5945_v51 = vld [vmem:[#allocation3 + $0x99] sm:$0xff] }
 0x154   : > { %422 = vst.msk [vmem:[#allocation3 + $0xb1] sm:$0xff] %vm295_vm0, %v373_v50  ;;  %4941 = vmatmul.mubr.msk.f32.gmra.mrb[12].mxu1 %vm295_vm0, %v5945_v51  ;;  %5138 = vmatmul.mubr.msk.f32.gmra.mrb[10].mxu0 %vm295_vm0, %v5945_v51  ;;  %v6054_v18 = vld [vmem:[#allocation3 + $0x92] sm:$0xff]  ;;  %v6060_v22 = vld [vmem:[#allocation3 + $0x9a] sm:$0xff] }
 0x157   : > { %v374_v52 = vpop.trf.xlu1  ;;  %v5952_v53 = vld [vmem:[#allocation3 + $0xa9] sm:$0xff] }
 0x158   : > { %423 = vst.msk [vmem:[#allocation3 + $0xc1] sm:$0xff] %vm295_vm0, %v374_v52  ;;  %4943 = vmatprep.mubr.msk.f32.mxu1 %vm295_vm0, %v5952_v53  ;;  %5140 = vmatprep.mubr.msk.f32.mxu0 %vm295_vm0, %v5952_v53 }
 0x15b   : > { %v375_v54 = vpop.trf.xlu1  ;;  %v5959_v55 = vld [vmem:[#allocation3 + $0xb1] sm:$0xff] }
 0x15c   : > { %424 = vst.msk [vmem:[#allocation3 + $0xc9] sm:$0xff] %vm295_vm0, %v375_v54  ;;  %4944 = vmatmul.mubr.msk.f32.gmra.mrb[14].mxu1 %vm295_vm0, %v5959_v55  ;;  %5141 = vmatmul.mubr.msk.f32.gmra.mrb[12].mxu0 %vm295_vm0, %v5959_v55  ;;  %v6067_v23 = vld [vmem:[#allocation3 + $0xaa] sm:$0xff]  ;;  %v6073_v27 = vld [vmem:[#allocation3 + $0xb2] sm:$0xff] }
 0x15f   : > { %v392_v56 = vpop.trf.xlu1  ;;  %v5966_v57 = vld [vmem:[#allocation3 + $0xc1] sm:$0xff] }
 0x160   : > { %425 = vst.msk [vmem:[#allocation3 + $0xd9] sm:$0xff] %vm295_vm0, %v392_v56  ;;  %4946 = vmatprep.mubr.msk.f32.mxu1 %vm295_vm0, %v5966_v57  ;;  %5143 = vmatprep.mubr.msk.f32.mxu0 %vm295_vm0, %v5966_v57 }
 0x163   : > { %v393_v58 = vpop.trf.xlu1  ;;  %v5973_v59 = vld [vmem:[#allocation3 + $0xc9] sm:$0xff] }
 0x164   : > { %426 = vst.msk [vmem:[#allocation3 + $0xe1] sm:$0xff] %vm295_vm0, %v393_v58  ;;  %4947 = vmatmul.mubr.msk.f32.gmra.mrb[16].mxu1 %vm295_vm0, %v5973_v59  ;;  %5144 = vmatmul.mubr.msk.f32.gmra.mrb[14].mxu0 %vm295_vm0, %v5973_v59  ;;  %v6080_v28 = vld [vmem:[#allocation3 + $0xc2] sm:$0xff] }
 0x165   : > { %5172 = vmatprep.mubr.msk.f32.mxu0 %vm295_vm0, %v5980_v60 }
 0x167   : > { %v394_v61 = vpop.trf.xlu1  ;;  %v5984_v62 = vld [vmem:[#allocation3 + $0xd9] sm:$0xff] }
 0x168   : > { %427 = vst.msk [vmem:[#allocation3 + $0xf1] sm:$0xff] %vm295_vm0, %v394_v61  ;;  %4949 = vmatprep.mubr.msk.f32.mxu1 %vm295_vm0, %v5984_v62  ;;  %5173 = vmatmul.mubr.msk.f32.vlgmr.msra.gmra.mrb[0].mxu0 %vm295_vm0, %v5986_v63 }
 0x169   : > { %5175 = vmatprep.mubr.msk.f32.mxu0 %vm295_vm0, %v5998_v1  ;;  %5221 = vmatpush3.msk.msra.mxu0 %vm610_vm3, %v5874_v31  ;;  %v6086_v31 = vld [vmem:[#allocation3 + $0xca] sm:$0xff] }
 0x16a   : > { %5270 = vmatprep.subr.msk.mxu0 %vm610_vm3, %v5991_v0 }
 0x16b   : > { %v395_v2 = vpop.trf.xlu1  ;;  %v6006_v3 = vld [vmem:[#allocation3 + $0xe1] sm:$0xff] }
 0x16c   : > { %428 = vst.msk [vmem:[#allocation3 + $0xf9] sm:$0xff] %vm295_vm0, %v395_v2  ;;  %4950 = vmatmul.mubr.msk.f32.gmra.mrb[18].mxu1 %vm295_vm0, %v6006_v3  ;;  %5176 = vmatmul.mubr.msk.f32.gmra.mrb[2].mxu0 %vm295_vm0, %v6008_v4  ;;  %v6093_v32 = vld [vmem:[#allocation3 + $0xda] sm:$0xff]  ;;  %v6099_v38 = vld [vmem:[#allocation3 + $0xe2] sm:$0xff] }
 0x16d   : > { %5178 = vmatprep.mubr.msk.f32.mxu0 %vm295_vm0, %v6015_v5 }
 0x16f   : > { %v396_v6 = vpop.trf.xlu1  ;;  %v6019_v7 = vld [vmem:[#allocation3 + $0xf1] sm:$0xff] }
 0x170   : > { %429 = vst.msk [vmem:[#allocation3 + $0x109] sm:$0xff] %vm295_vm0, %v396_v6  ;;  %4952 = vmatprep.mubr.msk.f32.mxu1 %vm295_vm0, %v6019_v7  ;;  %5179 = vmatmul.mubr.msk.f32.gmra.mrb[4].mxu0 %vm295_vm0, %v6021_v8 }
 0x171   : > { %5181 = vmatprep.mubr.msk.f32.mxu0 %vm295_vm0, %v6028_v9 }
 0x173   : > { %v397_v10 = vpop.trf.xlu1  ;;  %v6032_v11 = vld [vmem:[#allocation3 + $0xf9] sm:$0xff] }
 0x174   : > { %430 = vst.msk [vmem:[#allocation3 + $0x111] sm:$0xff] %vm295_vm0, %v397_v10  ;;  %4953 = vmatmul.mubr.msk.f32.gmra.mrb[20].mxu1 %vm295_vm0, %v6032_v11  ;;  %5182 = vmatmul.mubr.msk.f32.gmra.mrb[6].mxu0 %vm295_vm0, %v6034_v12  ;;  %v6106_v40 = vld [vmem:[#allocation3 + $0xf2] sm:$0xff]  ;;  %v6112_v46 = vld [vmem:[#allocation3 + $0xfa] sm:$0xff] }
 0x175   : > { %5184 = vmatprep.mubr.msk.f32.mxu0 %vm295_vm0, %v6041_v13 }
 0x177   : > { %v398_v14 = vpop.trf.xlu1  ;;  %v6045_v15 = vld [vmem:[#allocation3 + $0x109] sm:$0xff] }
 0x178   : > { %431 = vst.msk [vmem:[#allocation3 + $0x121] sm:$0xff] %vm295_vm0, %v398_v14  ;;  %4955 = vmatprep.mubr.msk.f32.mxu1 %vm295_vm0, %v6045_v15  ;;  %5185 = vmatmul.mubr.msk.f32.gmra.mrb[8].mxu0 %vm295_vm0, %v6047_v17 }
 0x179   : > { %5187 = vmatprep.mubr.msk.f32.mxu0 %vm295_vm0, %v6054_v18 }
 0x17b   : > { %v399_v19 = vpop.trf.xlu1  ;;  %v6058_v21 = vld [vmem:[#allocation3 + $0x111] sm:$0xff] }
 0x17c   : > { %432 = vst.msk [vmem:[#allocation3 + $0x129] sm:$0xff] %vm295_vm0, %v399_v19  ;;  %4956 = vmatmul.mubr.msk.f32.gmra.mrb[22].mxu1 %vm295_vm0, %v6058_v21  ;;  %5188 = vmatmul.mubr.msk.f32.gmra.mrb[10].mxu0 %vm295_vm0, %v6060_v22  ;;  %v6119_v48 = vld [vmem:[#allocation3 + $0x10a] sm:$0xff]  ;;  %v6125_v54 = vld [vmem:[#allocation3 + $0x112] sm:$0xff] }
 0x17d   : > { %5190 = vmatprep.mubr.msk.f32.mxu0 %vm295_vm0, %v6067_v23 }
 0x17f   : > { %v400_v25 = vpop.trf.xlu1  ;;  %v6071_v26 = vld [vmem:[#allocation3 + $0x121] sm:$0xff] }
 0x180   : > { %433 = vst.msk [vmem:[#allocation3 + $0x139] sm:$0xff] %vm295_vm0, %v400_v25  ;;  %4958 = vmatprep.mubr.msk.f32.mxu1 %vm295_vm0, %v6071_v26  ;;  %5191 = vmatmul.mubr.msk.f32.gmra.mrb[12].mxu0 %vm295_vm0, %v6073_v27 }
 0x181   : > { %5193 = vmatprep.mubr.msk.f32.mxu0 %vm295_vm0, %v6080_v28 }
 0x183   : > { %v401_v29 = vpop.trf.xlu1  ;;  %v6084_v30 = vld [vmem:[#allocation3 + $0x129] sm:$0xff] }
 0x184   : > { %434 = vst.msk [vmem:[#allocation3 + $0x141] sm:$0xff] %vm295_vm0, %v401_v29  ;;  %4959 = vmatmul.mubr.msk.f32.gmra.mrb[24].mxu1 %vm295_vm0, %v6084_v30  ;;  %5194 = vmatmul.mubr.msk.f32.gmra.mrb[14].mxu0 %vm295_vm0, %v6086_v31  ;;  %v6132_v56 = vld [vmem:[#allocation3 + $0x122] sm:$0xff]  ;;  %v6138_v2 = vld [vmem:[#allocation3 + $0x12a] sm:$0xff] }
 0x185   : > { %5196 = vmatprep.mubr.msk.f32.mxu0 %vm295_vm0, %v6093_v32  ;;  %v446_v29 = vld [vmem:[#allocation3] sm:$0xff] }
 0x187   : > { %v402_v34 = vpop.trf.xlu1  ;;  %v6097_v36 = vld [vmem:[#allocation3 + $0x139] sm:$0xff] }
 0x188   : > { %435 = vst.msk [vmem:[#allocation3 + $0x151] sm:$0xff] %vm295_vm0, %v402_v34  ;;  %4961 = vmatprep.mubr.msk.f32.mxu1 %vm295_vm0, %v6097_v36  ;;  %5197 = vmatmul.mubr.msk.f32.gmra.mrb[16].mxu0 %vm295_vm0, %v6099_v38 }
 0x189   : > { %5199 = vmatprep.mubr.msk.f32.mxu0 %vm295_vm0, %v6106_v40 }
 0x18b   : > { %v403_v42 = vpop.trf.xlu1  ;;  %v6110_v44 = vld [vmem:[#allocation3 + $0x141] sm:$0xff] }
 0x18c   : > { %436 = vst.msk [vmem:[#allocation3 + $0x159] sm:$0xff] %vm295_vm0, %v403_v42  ;;  %4962 = vmatmul.mubr.msk.f32.gmra.mrb[26].mxu1 %vm295_vm0, %v6110_v44  ;;  %5200 = vmatmul.mubr.msk.f32.gmra.mrb[18].mxu0 %vm295_vm0, %v6112_v46  ;;  %v6145_v6 = vld [vmem:[#allocation3 + $0x13a] sm:$0xff]  ;;  %v6151_v19 = vld [vmem:[#allocation3 + $0x142] sm:$0xff] }
 0x18d   : > { %5202 = vmatprep.mubr.msk.f32.mxu0 %vm295_vm0, %v6119_v48 }
 0x18f   : > { %v404_v50 = vpop.trf.xlu1  ;;  %v6123_v52 = vld [vmem:[#allocation3 + $0x151] sm:$0xff] }
 0x190   : > { %437 = vst.msk [vmem:[#allocation3 + $0x169] sm:$0xff] %vm295_vm0, %v404_v50  ;;  %4964 = vmatprep.mubr.msk.f32.mxu1 %vm295_vm0, %v6123_v52  ;;  %5203 = vmatmul.mubr.msk.f32.gmra.mrb[20].mxu0 %vm295_vm0, %v6125_v54 }
 0x191   : > { %5205 = vmatprep.mubr.msk.f32.mxu0 %vm295_vm0, %v6132_v56 }
 0x193   : > { %v405_v58 = vpop.trf.xlu1  ;;  %v6136_v61 = vld [vmem:[#allocation3 + $0x159] sm:$0xff] }
 0x194   : > { %6749 = vst [vmem:[#allocation7_spill] sm:$0xff] %v6136_v61  ;;  %438 = vst.msk [vmem:[#allocation3 + $0x171] sm:$0xff] %vm295_vm0, %v405_v58  ;;  %4965 = vmatmul.mubr.msk.f32.gmra.mrb[28].mxu1 %vm295_vm0, %v6136_v61  ;;  %5206 = vmatmul.mubr.msk.f32.gmra.mrb[22].mxu0 %vm295_vm0, %v6138_v2  ;;  %v6158_v25 = vld [vmem:[#allocation3 + $0x152] sm:$0xff]  ;;  %v6164_v50 = vld [vmem:[#allocation3 + $0x15a] sm:$0xff] }
 0x195   : > { %5208 = vmatprep.mubr.msk.f32.mxu0 %vm295_vm0, %v6145_v6 }
 0x197   : > { %v406_v10 = vpop.trf.xlu1  ;;  %v6149_v14 = vld [vmem:[#allocation3 + $0x169] sm:$0xff] }
 0x198   : > { %6750 = vst [vmem:[#allocation8_spill] sm:$0xff] %v6149_v14  ;;  %439 = vst.msk [vmem:[#allocation3 + $0x181] sm:$0xff] %vm295_vm0, %v406_v10  ;;  %4967 = vmatprep.mubr.msk.f32.mxu1 %vm295_vm0, %v6149_v14  ;;  %5209 = vmatmul.mubr.msk.f32.gmra.mrb[24].mxu0 %vm295_vm0, %v6151_v19  ;;  %v447_v10 = vld [vmem:[#allocation3 + $0x8] sm:$0xff] }
 0x199   : > { %5211 = vmatprep.mubr.msk.f32.mxu0 %vm295_vm0, %v6158_v25  ;;  %v6181_v14 = vld [vmem:[%s6706_s1 + $0xc] sm:$0xf] }
 0x19b   : > { %v407_v34 = vpop.trf.xlu1  ;;  %v6162_v42 = vld [vmem:[#allocation3 + $0x171] sm:$0xff] }
 0x19c   : > { %6751 = vst [vmem:[#allocation9_spill] sm:$0xff] %v6162_v42  ;;  %v6166_v58 = vld [vmem:[#allocation3 + $0x16a] sm:$0xff]  ;;  %440 = vst.msk [vmem:[#allocation3 + $0x189] sm:$0xff] %vm295_vm0, %v407_v34  ;;  %4968 = vmatmul.mubr.msk.f32.gmra.mrb[30].mxu1 %vm295_vm0, %v6162_v42  ;;  %5212 = vmatmul.mubr.msk.f32.gmra.mrb[26].mxu0 %vm295_vm0, %v6164_v50  ;;  %v6176_v16 = vld [vmem:[#allocation3 + $0x172] sm:$0xff] }
 0x19d   : > { %5214 = vmatprep.mubr.msk.f32.mxu0 %vm295_vm0, %v6166_v58  ;;  %4972 = vmatprep.mubr.msk.f32.mxu1 %vm295_vm0, %v446_v29  ;;  %v6186_v34 = vld [vmem:[#allocation3 + $0x18] sm:$0xff]  ;;  %v6194_v29 = vld [vmem:[#allocation3 + $0x20] sm:$0xff] }
 0x19e   : > { %6752 = vst [vmem:[#allocation10_spill] sm:$0xff] %v6186_v34  ;;  %6753 = vst [vmem:[#allocation11_spill] sm:$0xff] %v6194_v29 }
 0x1a0   : > { %4973 = vmatmul.mubr.msk.f32.vlgmr.msra.gmra.mrb[0].mxu1 %vm295_vm0, %v447_v10  ;;  %5215 = vmatmul.mubr.msk.f32.gmra.mrb[28].mxu0 %vm295_vm0, %v6176_v16  ;;  %v6204_v10 = vld [vmem:[#allocation3 + $0x30] sm:$0xff] }
 0x1a1   : > { %5021 = vmatpush3.msk.msra.mxu1 %vm610_vm3, %v5862_v24  ;;  %4975 = vmatprep.mubr.msk.f32.mxu1 %vm295_vm0, %v6186_v34  ;;  %6756 = vst [vmem:[#allocation14_spill] sm:$0xff] %v6204_v10  ;;  %v6212_v24 = vld [vmem:[#allocation3 + $0x38] sm:$0xff]  ;;  %v1164_v34 = vld [vmem:[#allocation3 + $0xa] sm:$0xff] }
 0x1a2   : > { %5070 = vmatprep.subr.msk.mxu1 %vm610_vm3, %v6181_v14  ;;  %6757 = vst [vmem:[#allocation15_spill] sm:$0xff] %v6212_v24 }
 0x1a3   : > { %v6196_v42 = vld [vmem:[#allocation3 + $0x182] sm:$0xff]  ;;  %v6198_v61 = vld [vmem:[#allocation3 + $0x18a] sm:$0xff] }
 0x1a4   : > { %6754 = vst [vmem:[#allocation12_spill] sm:$0xff] %v6196_v42  ;;  %6755 = vst [vmem:[#allocation13_spill] sm:$0xff] %v6198_v61  ;;  %4976 = vmatmul.mubr.msk.f32.gmra.mrb[2].mxu1 %vm295_vm0, %v6194_v29  ;;  %5217 = vmatprep.mubr.msk.f32.mxu0 %vm295_vm0, %v6196_v42  ;;  %v6216_v29 = vld [vmem:[#allocation3 + $0x48] sm:$0xff]  ;;  %v6221_v42 = vld [vmem:[%s6706_s1 + $0x20] sm:$0xf] }
 0x1a5   : > { %4978 = vmatprep.mubr.msk.f32.mxu1 %vm295_vm0, %v6204_v10  ;;  %5218 = vmatmul.mubr.msk.f32.gmra.mrb[30].mxu0 %vm295_vm0, %v6198_v61  ;;  %6758 = vst [vmem:[#allocation16_spill] sm:$0xff] %v6216_v29  ;;  %v6231_v61 = vld [vmem:[#allocation3 + $0x50] sm:$0xff] }
 0x1a6   : > { %5222 = vmatprep.mubr.msk.f32.mxu0 %vm295_vm0, %v6204_v10  ;;  %6759 = vst [vmem:[#allocation17_spill] sm:$0xff] %v6231_v61  ;;  %v6237_v10 = vld [vmem:[#allocation3 + $0x60] sm:$0xff] }
 0x1a7   : > { %6760 = vst [vmem:[#allocation18_spill] sm:$0xff] %v6237_v10 }
 0x1a8   : > { %4979 = vmatmul.mubr.msk.f32.gmra.mrb[4].mxu1 %vm295_vm0, %v6212_v24 }
 0x1a9   : > { %4981 = vmatprep.mubr.msk.f32.mxu1 %vm295_vm0, %v6216_v29  ;;  %5223 = vmatmul.mubr.msk.f32.vlgmr.msra.gmra.mrb[0].mxu0 %vm295_vm0, %v6212_v24  ;;  %v6377_v24 = vld [vmem:[#allocation3 + $0x170] sm:$0xff] }
 0x1aa   : > { %5225 = vmatprep.mubr.msk.f32.mxu0 %vm295_vm0, %v6216_v29  ;;  %5271 = vmatpush3.msk.msra.mxu0 %vm610_vm3, %v5991_v0  ;;  %v6245_v0 = vld [vmem:[#allocation3 + $0x68] sm:$0xff]  ;;  %v6249_v29 = vld [vmem:[#allocation3 + $0x78] sm:$0xff] }
 0x1ab   : > { %5320 = vmatprep.subr.msk.mxu0 %vm610_vm3, %v6221_v42  ;;  %6761 = vst [vmem:[#allocation19_spill] sm:$0xff] %v6245_v0  ;;  %6762 = vst [vmem:[#allocation20_spill] sm:$0xff] %v6249_v29 }
 0x1ac   : > { %4982 = vmatmul.mubr.msk.f32.gmra.mrb[6].mxu1 %vm295_vm0, %v6231_v61 }
 0x1ad   : > { %4984 = vmatprep.mubr.msk.f32.mxu1 %vm295_vm0, %v6237_v10  ;;  %5226 = vmatmul.mubr.msk.f32.gmra.mrb[2].mxu0 %vm295_vm0, %v6231_v61  ;;  %v6257_v61 = vld [vmem:[#allocation3 + $0x80] sm:$0xff] }
 0x1ae   : > { %5228 = vmatprep.mubr.msk.f32.mxu0 %vm295_vm0, %v6237_v10  ;;  %6763 = vst [vmem:[#allocation21_spill] sm:$0xff] %v6257_v61  ;;  %v6261_v10 = vld [vmem:[#allocation3 + $0x90] sm:$0xff] }
 0x1af   : > { %6764 = vst [vmem:[#allocation22_spill] sm:$0xff] %v6261_v10 }
 0x1b0   : > { %4985 = vmatmul.mubr.msk.f32.gmra.mrb[8].mxu1 %vm295_vm0, %v6245_v0 }
 0x1b1   : > { %4987 = vmatprep.mubr.msk.f32.mxu1 %vm295_vm0, %v6249_v29  ;;  %5229 = vmatmul.mubr.msk.f32.gmra.mrb[4].mxu0 %vm295_vm0, %v6245_v0  ;;  %v6269_v0 = vld [vmem:[#allocation3 + $0x98] sm:$0xff] }
 0x1b2   : > { %5231 = vmatprep.mubr.msk.f32.mxu0 %vm295_vm0, %v6249_v29  ;;  %6765 = vst [vmem:[#allocation23_spill] sm:$0xff] %v6269_v0  ;;  %v6273_v29 = vld [vmem:[#allocation3 + $0xa8] sm:$0xff] }
 0x1b3   : > { %6766 = vst [vmem:[#allocation24_spill] sm:$0xff] %v6273_v29 }
 0x1b4   : > { %4988 = vmatmul.mubr.msk.f32.gmra.mrb[10].mxu1 %vm295_vm0, %v6257_v61 }
 0x1b5   : > { %4990 = vmatprep.mubr.msk.f32.mxu1 %vm295_vm0, %v6261_v10  ;;  %5232 = vmatmul.mubr.msk.f32.gmra.mrb[6].mxu0 %vm295_vm0, %v6257_v61  ;;  %v6281_v61 = vld [vmem:[#allocation3 + $0xb0] sm:$0xff] }
 0x1b6   : > { %5234 = vmatprep.mubr.msk.f32.mxu0 %vm295_vm0, %v6261_v10  ;;  %6767 = vst [vmem:[#allocation25_spill] sm:$0xff] %v6281_v61  ;;  %v6285_v10 = vld [vmem:[#allocation3 + $0xc0] sm:$0xff] }
 0x1b7   : > { %6768 = vst [vmem:[#allocation26_spill] sm:$0xff] %v6285_v10 }
 0x1b8   : > { %4991 = vmatmul.mubr.msk.f32.gmra.mrb[12].mxu1 %vm295_vm0, %v6269_v0 }
 0x1b9   : > { %4993 = vmatprep.mubr.msk.f32.mxu1 %vm295_vm0, %v6273_v29  ;;  %5235 = vmatmul.mubr.msk.f32.gmra.mrb[8].mxu0 %vm295_vm0, %v6269_v0  ;;  %v6293_v0 = vld [vmem:[#allocation3 + $0xc8] sm:$0xff] }
 0x1ba   : > { %5237 = vmatprep.mubr.msk.f32.mxu0 %vm295_vm0, %v6273_v29  ;;  %6769 = vst [vmem:[#allocation27_spill] sm:$0xff] %v6293_v0  ;;  %v6297_v29 = vld [vmem:[#allocation3 + $0xd8] sm:$0xff] }
 0x1bb   : > { %6770 = vst [vmem:[#allocation28_spill] sm:$0xff] %v6297_v29 }
 0x1bc   : > { %4994 = vmatmul.mubr.msk.f32.gmra.mrb[14].mxu1 %vm295_vm0, %v6281_v61 }
 0x1bd   : > { %4996 = vmatprep.mubr.msk.f32.mxu1 %vm295_vm0, %v6285_v10  ;;  %5238 = vmatmul.mubr.msk.f32.gmra.mrb[10].mxu0 %vm295_vm0, %v6281_v61  ;;  %v6305_v61 = vld [vmem:[#allocation3 + $0xe0] sm:$0xff] }
 0x1be   : > { %5240 = vmatprep.mubr.msk.f32.mxu0 %vm295_vm0, %v6285_v10  ;;  %6771 = vst [vmem:[#allocation29_spill] sm:$0xff] %v6305_v61  ;;  %v6309_v10 = vld [vmem:[#allocation3 + $0xf0] sm:$0xff] }
 0x1bf   : > { %6772 = vst [vmem:[#allocation30_spill] sm:$0xff] %v6309_v10 }
 0x1c0   : > { %4997 = vmatmul.mubr.msk.f32.gmra.mrb[16].mxu1 %vm295_vm0, %v6293_v0 }
 0x1c1   : > { %4999 = vmatprep.mubr.msk.f32.mxu1 %vm295_vm0, %v6297_v29  ;;  %5241 = vmatmul.mubr.msk.f32.gmra.mrb[12].mxu0 %vm295_vm0, %v6293_v0  ;;  %v6317_v0 = vld [vmem:[#allocation3 + $0xf8] sm:$0xff] }
 0x1c2   : > { %5243 = vmatprep.mubr.msk.f32.mxu0 %vm295_vm0, %v6297_v29  ;;  %6773 = vst [vmem:[#allocation31_spill] sm:$0xff] %v6317_v0  ;;  %v6321_v29 = vld [vmem:[#allocation3 + $0x108] sm:$0xff] }
 0x1c3   : > { %6774 = vst [vmem:[#allocation32_spill] sm:$0xff] %v6321_v29 }
 0x1c4   : > { %5000 = vmatmul.mubr.msk.f32.gmra.mrb[18].mxu1 %vm295_vm0, %v6305_v61 }
 0x1c5   : > { %5002 = vmatprep.mubr.msk.f32.mxu1 %vm295_vm0, %v6309_v10  ;;  %5244 = vmatmul.mubr.msk.f32.gmra.mrb[14].mxu0 %vm295_vm0, %v6305_v61  ;;  %v6329_v61 = vld [vmem:[#allocation3 + $0x110] sm:$0xff] }
 0x1c6   : > { %5246 = vmatprep.mubr.msk.f32.mxu0 %vm295_vm0, %v6309_v10  ;;  %6775 = vst [vmem:[#allocation33_spill] sm:$0xff] %v6329_v61  ;;  %v6333_v10 = vld [vmem:[#allocation3 + $0x120] sm:$0xff] }
 0x1c7   : > { %6776 = vst [vmem:[#allocation34_spill] sm:$0xff] %v6333_v10 }
 0x1c8   : > { %5003 = vmatmul.mubr.msk.f32.gmra.mrb[20].mxu1 %vm295_vm0, %v6317_v0 }
 0x1c9   : > { %5005 = vmatprep.mubr.msk.f32.mxu1 %vm295_vm0, %v6321_v29  ;;  %5247 = vmatmul.mubr.msk.f32.gmra.mrb[16].mxu0 %vm295_vm0, %v6317_v0  ;;  %v6341_v0 = vld [vmem:[#allocation3 + $0x128] sm:$0xff] }
 0x1ca   : > { %5249 = vmatprep.mubr.msk.f32.mxu0 %vm295_vm0, %v6321_v29  ;;  %6777 = vst [vmem:[#allocation35_spill] sm:$0xff] %v6341_v0  ;;  %v6345_v29 = vld [vmem:[#allocation3 + $0x138] sm:$0xff] }
 0x1cb   : > { %6778 = vst [vmem:[#allocation36_spill] sm:$0xff] %v6345_v29 }
 0x1cc   : > { %5006 = vmatmul.mubr.msk.f32.gmra.mrb[22].mxu1 %vm295_vm0, %v6329_v61 }
 0x1cd   : > { %5008 = vmatprep.mubr.msk.f32.mxu1 %vm295_vm0, %v6333_v10  ;;  %5250 = vmatmul.mubr.msk.f32.gmra.mrb[18].mxu0 %vm295_vm0, %v6329_v61  ;;  %v6353_v61 = vld [vmem:[#allocation3 + $0x140] sm:$0xff] }
 0x1ce   : > { %5252 = vmatprep.mubr.msk.f32.mxu0 %vm295_vm0, %v6333_v10  ;;  %6779 = vst [vmem:[#allocation37_spill] sm:$0xff] %v6353_v61  ;;  %v6357_v10 = vld [vmem:[#allocation3 + $0x150] sm:$0xff] }
 0x1cf   : > { %6780 = vst [vmem:[#allocation38_spill] sm:$0xff] %v6357_v10 }
 0x1d0   : > { %5009 = vmatmul.mubr.msk.f32.gmra.mrb[24].mxu1 %vm295_vm0, %v6341_v0 }
 0x1d1   : > { %5011 = vmatprep.mubr.msk.f32.mxu1 %vm295_vm0, %v6345_v29  ;;  %5253 = vmatmul.mubr.msk.f32.gmra.mrb[20].mxu0 %vm295_vm0, %v6341_v0  ;;  %v6365_v0 = vld [vmem:[#allocation3 + $0x158] sm:$0xff] }
 0x1d2   : > { %5255 = vmatprep.mubr.msk.f32.mxu0 %vm295_vm0, %v6345_v29  ;;  %6781 = vst [vmem:[#allocation39_spill] sm:$0xff] %v6365_v0  ;;  %v6369_v29 = vld [vmem:[#allocation3 + $0x168] sm:$0xff] }
 0x1d3   : > { %6782 = vst [vmem:[#allocation40_spill] sm:$0xff] %v6369_v29 }
 0x1d4   : > { %5012 = vmatmul.mubr.msk.f32.gmra.mrb[26].mxu1 %vm295_vm0, %v6353_v61 }
 0x1d5   : > { %5014 = vmatprep.mubr.msk.f32.mxu1 %vm295_vm0, %v6357_v10  ;;  %5256 = vmatmul.mubr.msk.f32.gmra.mrb[22].mxu0 %vm295_vm0, %v6353_v61  ;;  %v1163_v61 = vld [vmem:[#allocation3 + $0x2] sm:$0xff] }
 0x1d6   : > { %5258 = vmatprep.mubr.msk.f32.mxu0 %vm295_vm0, %v6357_v10  ;;  %v6383_v10 = vld [vmem:[#allocation3 + $0x180] sm:$0xff] }
 0x1d8   : > { %5015 = vmatmul.mubr.msk.f32.gmra.mrb[28].mxu1 %vm295_vm0, %v6365_v0 }
 0x1d9   : > { %5017 = vmatprep.mubr.msk.f32.mxu1 %vm295_vm0, %v6369_v29  ;;  %5259 = vmatmul.mubr.msk.f32.gmra.mrb[24].mxu0 %vm295_vm0, %v6365_v0  ;;  %v6393_v0 = vld [vmem:[#allocation3 + $0x188] sm:$0xff] }
 0x1da   : > { %5261 = vmatprep.mubr.msk.f32.mxu0 %vm295_vm0, %v6369_v29  ;;  %v4450_v29 = vld [vmem:[#allocation3 + $0x198] sm:$0xff] }
 0x1dc   : > { %5018 = vmatmul.mubr.msk.f32.gmra.mrb[30].mxu1 %vm295_vm0, %v6377_v24 }
 0x1dd   : > { %5262 = vmatmul.mubr.msk.f32.gmra.mrb[26].mxu0 %vm295_vm0, %v6377_v24  ;;  %5022 = vmatprep.mubr.msk.f32.mxu1 %vm295_vm0, %v1163_v61  ;;  %v4451_v61 = vld [vmem:[#allocation3 + $0x1a0] sm:$0xff] }
 0x1de   : > { %5264 = vmatprep.mubr.msk.f32.mxu0 %vm295_vm0, %v6383_v10 }
 0x1e0   : > { %5023 = vmatmul.mubr.msk.f32.vlgmr.msra.gmra.mrb[0].mxu1 %vm295_vm0, %v1164_v34 }
 0x1e1   : > { %5071 = vmatpush3.msk.msra.mxu1 %vm610_vm3, %v6181_v14  ;;  %5025 = vmatprep.mubr.msk.f32.mxu1 %vm295_vm0, %v5980_v60  ;;  %v6794_v60 = vld [vmem:[#allocation20_spill] sm:$0xff] }
 0x1e2   : > { %5265 = vmatmul.mubr.msk.f32.gmra.mrb[28].mxu0 %vm295_vm0, %v6393_v0  ;;  %5370 = vmatprep.subr.msk.mxu1 %vm610_vm3, %v5844_v20 }
 0x1e3   : > { %5267 = vmatprep.mubr.msk.f32.mxu0 %vm295_vm0, %v4450_v29 }
 0x1e4   : > { %5026 = vmatmul.mubr.msk.f32.gmra.mrb[2].mxu1 %vm295_vm0, %v5986_v63  ;;  %v6795_v63 = vld [vmem:[#allocation21_spill] sm:$0xff] }
 0x1e5   : > { %5028 = vmatprep.mubr.msk.f32.mxu1 %vm295_vm0, %v5998_v1 }
 0x1e6   : > { %5268 = vmatmul.mubr.msk.f32.gmra.mrb[30].mxu0 %vm295_vm0, %v4451_v61 }
 0x1e7   : > { %5272 = vmatprep.mubr.msk.f32.mxu0 %vm295_vm0, %v5882_v33  ;;  %v6783_v33 = vld [vmem:[#allocation7_spill] sm:$0xff] }
 0x1e8   : > { %5029 = vmatmul.mubr.msk.f32.gmra.mrb[4].mxu1 %vm295_vm0, %v6008_v4 }
 0x1e9   : > { %5031 = vmatprep.mubr.msk.f32.mxu1 %vm295_vm0, %v6015_v5 }
 0x1ea   : > { %5273 = vmatmul.mubr.msk.f32.vlgmr.msra.gmra.mrb[0].mxu0 %vm295_vm0, %v5889_v35  ;;  %v6784_v35 = vld [vmem:[#allocation8_spill] sm:$0xff] }
 0x1eb   : > { %5275 = vmatprep.mubr.msk.f32.mxu0 %vm295_vm0, %v5896_v37  ;;  %5321 = vmatpush3.msk.msra.mxu0 %vm610_vm3, %v6221_v42  ;;  %v6785_v37 = vld [vmem:[#allocation10_spill] sm:$0xff] }
 0x1ec   : > { %5032 = vmatmul.mubr.msk.f32.gmra.mrb[6].mxu1 %vm295_vm0, %v6021_v8 }
 0x1ed   : > { %5034 = vmatprep.mubr.msk.f32.mxu1 %vm295_vm0, %v6028_v9 }
 0x1ee   : > { %5276 = vmatmul.mubr.msk.f32.gmra.mrb[2].mxu0 %vm295_vm0, %v5903_v39  ;;  %v6786_v39 = vld [vmem:[#allocation9_spill] sm:$0xff] }
 0x1ef   : > { %5278 = vmatprep.mubr.msk.f32.mxu0 %vm295_vm0, %v5910_v41  ;;  %v6519_v41 = vld [vmem:[#allocation3 + $0x181] sm:$0xff] }
 0x1f0   : > { %5035 = vmatmul.mubr.msk.f32.gmra.mrb[8].mxu1 %vm295_vm0, %v6034_v12 }
 0x1f1   : > { %5037 = vmatprep.mubr.msk.f32.mxu1 %vm295_vm0, %v6041_v13 }
 0x1f2   : > { %5279 = vmatmul.mubr.msk.f32.gmra.mrb[4].mxu0 %vm295_vm0, %v5917_v43  ;;  %v6787_v43 = vld [vmem:[#allocation11_spill] sm:$0xff] }
 0x1f3   : > { %5281 = vmatprep.mubr.msk.f32.mxu0 %vm295_vm0, %v5924_v45  ;;  %v4516_v45 = vld [vmem:[#allocation3 + $0x199] sm:$0xff] }
 0x1f4   : > { %5038 = vmatmul.mubr.msk.f32.gmra.mrb[10].mxu1 %vm295_vm0, %v6047_v17 }
 0x1f5   : > { %5040 = vmatprep.mubr.msk.f32.mxu1 %vm295_vm0, %v6054_v18 }
 0x1f6   : > { %5282 = vmatmul.mubr.msk.f32.gmra.mrb[6].mxu0 %vm295_vm0, %v5931_v47  ;;  %v6788_v47 = vld [vmem:[#allocation14_spill] sm:$0xff] }
 0x1f7   : > { %5284 = vmatprep.mubr.msk.f32.mxu0 %vm295_vm0, %v5938_v49  ;;  %v6529_v49 = vld [vmem:[#allocation3 + $0x189] sm:$0xff] }
 0x1f8   : > { %5041 = vmatmul.mubr.msk.f32.gmra.mrb[12].mxu1 %vm295_vm0, %v6060_v22 }
 0x1f9   : > { %5043 = vmatprep.mubr.msk.f32.mxu1 %vm295_vm0, %v6067_v23 }
 0x1fa   : > { %5285 = vmatmul.mubr.msk.f32.gmra.mrb[8].mxu0 %vm295_vm0, %v5945_v51  ;;  %v4517_v51 = vld [vmem:[#allocation3 + $0x1a1] sm:$0xff] }
 0x1fb   : > { %5287 = vmatprep.mubr.msk.f32.mxu0 %vm295_vm0, %v5952_v53  ;;  %v6789_v53 = vld [vmem:[#allocation15_spill] sm:$0xff] }
 0x1fc   : > { %5044 = vmatmul.mubr.msk.f32.gmra.mrb[14].mxu1 %vm295_vm0, %v6073_v27 }
 0x1fd   : > { %5046 = vmatprep.mubr.msk.f32.mxu1 %vm295_vm0, %v6080_v28 }
 0x1fe   : > { %5288 = vmatmul.mubr.msk.f32.gmra.mrb[10].mxu0 %vm295_vm0, %v5959_v55  ;;  %v6790_v55 = vld [vmem:[#allocation16_spill] sm:$0xff] }
 0x1ff   : > { %5290 = vmatprep.mubr.msk.f32.mxu0 %vm295_vm0, %v5966_v57  ;;  %v6792_v57 = vld [vmem:[#allocation18_spill] sm:$0xff] }
 0x200   : > { %5047 = vmatmul.mubr.msk.f32.gmra.mrb[16].mxu1 %vm295_vm0, %v6086_v31 }
 0x201   : > { %5049 = vmatprep.mubr.msk.f32.mxu1 %vm295_vm0, %v6093_v32 }
 0x202   : > { %5291 = vmatmul.mubr.msk.f32.gmra.mrb[12].mxu0 %vm295_vm0, %v5973_v59  ;;  %v6793_v59 = vld [vmem:[#allocation19_spill] sm:$0xff] }
 0x203   : > { %5293 = vmatprep.mubr.msk.f32.mxu0 %vm295_vm0, %v5984_v62 }
 0x204   : > { %5050 = vmatmul.mubr.msk.f32.gmra.mrb[18].mxu1 %vm295_vm0, %v6099_v38 }
 0x205   : > { %5052 = vmatprep.mubr.msk.f32.mxu1 %vm295_vm0, %v6106_v40 }
 0x206   : > { %5294 = vmatmul.mubr.msk.f32.gmra.mrb[14].mxu0 %vm295_vm0, %v6006_v3 }
 0x207   : > { %5296 = vmatprep.mubr.msk.f32.mxu0 %vm295_vm0, %v6019_v7 }
 0x208   : > { %5053 = vmatmul.mubr.msk.f32.gmra.mrb[20].mxu1 %vm295_vm0, %v6112_v46 }
 0x209   : > { %5055 = vmatprep.mubr.msk.f32.mxu1 %vm295_vm0, %v6119_v48 }
 0x20a   : > { %5297 = vmatmul.mubr.msk.f32.gmra.mrb[16].mxu0 %vm295_vm0, %v6032_v11 }
 0x20b   : > { %5299 = vmatprep.mubr.msk.f32.mxu0 %vm295_vm0, %v6045_v15 }
 0x20c   : > { %5056 = vmatmul.mubr.msk.f32.gmra.mrb[22].mxu1 %vm295_vm0, %v6125_v54 }
 0x20d   : > { %5058 = vmatprep.mubr.msk.f32.mxu1 %vm295_vm0, %v6132_v56 }
 0x20e   : > { %5300 = vmatmul.mubr.msk.f32.gmra.mrb[18].mxu0 %vm295_vm0, %v6058_v21 }
 0x20f   : > { %5302 = vmatprep.mubr.msk.f32.mxu0 %vm295_vm0, %v6071_v26 }
 0x210   : > { %5059 = vmatmul.mubr.msk.f32.gmra.mrb[24].mxu1 %vm295_vm0, %v6138_v2 }
 0x211   : > { %5061 = vmatprep.mubr.msk.f32.mxu1 %vm295_vm0, %v6145_v6 }
 0x212   : > { %5303 = vmatmul.mubr.msk.f32.gmra.mrb[20].mxu0 %vm295_vm0, %v6084_v30 }
 0x213   : > { %5305 = vmatprep.mubr.msk.f32.mxu0 %vm295_vm0, %v6097_v36 }
 0x214   : > { %5062 = vmatmul.mubr.msk.f32.gmra.mrb[26].mxu1 %vm295_vm0, %v6151_v19 }
 0x215   : > { %5064 = vmatprep.mubr.msk.f32.mxu1 %vm295_vm0, %v6158_v25 }
 0x216   : > { %5306 = vmatmul.mubr.msk.f32.gmra.mrb[22].mxu0 %vm295_vm0, %v6110_v44 }
 0x217   : > { %5308 = vmatprep.mubr.msk.f32.mxu0 %vm295_vm0, %v6123_v52 }
 0x218   : > { %5065 = vmatmul.mubr.msk.f32.gmra.mrb[28].mxu1 %vm295_vm0, %v6164_v50 }
 0x219   : > { %5067 = vmatprep.mubr.msk.f32.mxu1 %vm295_vm0, %v6166_v58 }
 0x21a   : > { %5309 = vmatmul.mubr.msk.f32.gmra.mrb[24].mxu0 %vm295_vm0, %v6783_v33 }
 0x21b   : > { %5311 = vmatprep.mubr.msk.f32.mxu0 %vm295_vm0, %v6784_v35 }
 0x21c   : > { %5068 = vmatmul.mubr.msk.f32.gmra.mrb[30].mxu1 %vm295_vm0, %v6176_v16 }
 0x21d   : > { %5072 = vmatprep.mubr.msk.f32.mxu1 %vm295_vm0, %v6785_v37 }
 0x21e   : > { %5312 = vmatmul.mubr.msk.f32.gmra.mrb[26].mxu0 %vm295_vm0, %v6786_v39 }
 0x21f   : > { %5314 = vmatprep.mubr.msk.f32.mxu0 %vm295_vm0, %v6519_v41 }
 0x220   : > { %5073 = vmatmul.mubr.msk.f32.vlgmr.msra.gmra.mrb[0].mxu1 %vm295_vm0, %v6787_v43 }
 0x221   : > { %5371 = vmatpush3.msk.msra.mxu1 %vm610_vm3, %v5844_v20  ;;  %5075 = vmatprep.mubr.msk.f32.mxu1 %vm295_vm0, %v6788_v47  ;;  %v6791_v20 = vld [vmem:[#allocation17_spill] sm:$0xff] }
 0x222   : > { %5315 = vmatmul.mubr.msk.f32.gmra.mrb[28].mxu0 %vm295_vm0, %v6529_v49 }
 0x223   : > { %5317 = vmatprep.mubr.msk.f32.mxu0 %vm295_vm0, %v4516_v45 }
 0x224   : > { %5076 = vmatmul.mubr.msk.f32.gmra.mrb[2].mxu1 %vm295_vm0, %v6789_v53 }
 0x225   : > { %5078 = vmatprep.mubr.msk.f32.mxu1 %vm295_vm0, %v6790_v55 }
 0x226   : > { %5318 = vmatmul.mubr.msk.f32.gmra.mrb[30].mxu0 %vm295_vm0, %v4517_v51 }
 0x227   : > { %5322 = vmatprep.mubr.msk.f32.mxu0 %vm295_vm0, %v5998_v1  ;;  %v6796_v1 = vld [vmem:[#allocation22_spill] sm:$0xff] }
 0x228   : > { %5079 = vmatmul.mubr.msk.f32.gmra.mrb[4].mxu1 %vm295_vm0, %v6791_v20 }
 0x229   : > { %5081 = vmatprep.mubr.msk.f32.mxu1 %vm295_vm0, %v6792_v57 }
 0x22a   : > { %5323 = vmatmul.mubr.msk.f32.vlgmr.msra.gmra.mrb[0].mxu0 %vm295_vm0, %v6008_v4  ;;  %v6797_v4 = vld [vmem:[#allocation23_spill] sm:$0xff] }
 0x22b   : > { %5325 = vmatprep.mubr.msk.f32.mxu0 %vm295_vm0, %v6015_v5  ;;  %v6798_v5 = vld [vmem:[#allocation24_spill] sm:$0xff] }
 0x22c   : > { %5082 = vmatmul.mubr.msk.f32.gmra.mrb[6].mxu1 %vm295_vm0, %v6793_v59 }
 0x22d   : > { %5084 = vmatprep.mubr.msk.f32.mxu1 %vm295_vm0, %v6794_v60 }
 0x22e   : > { %5326 = vmatmul.mubr.msk.f32.gmra.mrb[2].mxu0 %vm295_vm0, %v6021_v8  ;;  %v6799_v8 = vld [vmem:[#allocation25_spill] sm:$0xff] }
 0x22f   : > { %5328 = vmatprep.mubr.msk.f32.mxu0 %vm295_vm0, %v6028_v9  ;;  %v6800_v9 = vld [vmem:[#allocation26_spill] sm:$0xff] }
 0x230   : > { %5085 = vmatmul.mubr.msk.f32.gmra.mrb[8].mxu1 %vm295_vm0, %v6795_v63 }
 0x231   : > { %5087 = vmatprep.mubr.msk.f32.mxu1 %vm295_vm0, %v6796_v1 }
 0x232   : > { %5329 = vmatmul.mubr.msk.f32.gmra.mrb[4].mxu0 %vm295_vm0, %v6034_v12  ;;  %v6801_v12 = vld [vmem:[#allocation27_spill] sm:$0xff] }
 0x233   : > { %5331 = vmatprep.mubr.msk.f32.mxu0 %vm295_vm0, %v6041_v13  ;;  %v6802_v13 = vld [vmem:[#allocation28_spill] sm:$0xff] }
 0x234   : > { %5088 = vmatmul.mubr.msk.f32.gmra.mrb[10].mxu1 %vm295_vm0, %v6797_v4 }
 0x235   : > { %5090 = vmatprep.mubr.msk.f32.mxu1 %vm295_vm0, %v6798_v5 }
 0x236   : > { %5332 = vmatmul.mubr.msk.f32.gmra.mrb[6].mxu0 %vm295_vm0, %v6047_v17  ;;  %v6803_v17 = vld [vmem:[#allocation29_spill] sm:$0xff] }
 0x237   : > { %5334 = vmatprep.mubr.msk.f32.mxu0 %vm295_vm0, %v6054_v18  ;;  %v6804_v18 = vld [vmem:[#allocation30_spill] sm:$0xff] }
 0x238   : > { %5091 = vmatmul.mubr.msk.f32.gmra.mrb[12].mxu1 %vm295_vm0, %v6799_v8 }
 0x239   : > { %5093 = vmatprep.mubr.msk.f32.mxu1 %vm295_vm0, %v6800_v9 }
 0x23a   : > { %5335 = vmatmul.mubr.msk.f32.gmra.mrb[8].mxu0 %vm295_vm0, %v6060_v22  ;;  %v6805_v22 = vld [vmem:[#allocation31_spill] sm:$0xff] }
 0x23b   : > { %5337 = vmatprep.mubr.msk.f32.mxu0 %vm295_vm0, %v6067_v23  ;;  %v6806_v23 = vld [vmem:[#allocation32_spill] sm:$0xff] }
 0x23c   : > { %5094 = vmatmul.mubr.msk.f32.gmra.mrb[14].mxu1 %vm295_vm0, %v6801_v12 }
 0x23d   : > { %5096 = vmatprep.mubr.msk.f32.mxu1 %vm295_vm0, %v6802_v13 }
 0x23e   : > { %5338 = vmatmul.mubr.msk.f32.gmra.mrb[10].mxu0 %vm295_vm0, %v6073_v27  ;;  %v6807_v27 = vld [vmem:[#allocation33_spill] sm:$0xff] }
 0x23f   : > { %5340 = vmatprep.mubr.msk.f32.mxu0 %vm295_vm0, %v6080_v28  ;;  %v6808_v28 = vld [vmem:[#allocation34_spill] sm:$0xff] }
 0x240   : > { %5097 = vmatmul.mubr.msk.f32.gmra.mrb[16].mxu1 %vm295_vm0, %v6803_v17 }
 0x241   : > { %5099 = vmatprep.mubr.msk.f32.mxu1 %vm295_vm0, %v6804_v18 }
 0x242   : > { %5341 = vmatmul.mubr.msk.f32.gmra.mrb[12].mxu0 %vm295_vm0, %v6086_v31  ;;  %v6809_v31 = vld [vmem:[#allocation35_spill] sm:$0xff] }
 0x243   : > { %5343 = vmatprep.mubr.msk.f32.mxu0 %vm295_vm0, %v6093_v32  ;;  %v6810_v32 = vld [vmem:[#allocation36_spill] sm:$0xff] }
 0x244   : > { %5100 = vmatmul.mubr.msk.f32.gmra.mrb[18].mxu1 %vm295_vm0, %v6805_v22 }
 0x245   : > { %5102 = vmatprep.mubr.msk.f32.mxu1 %vm295_vm0, %v6806_v23 }
 0x246   : > { %5344 = vmatmul.mubr.msk.f32.gmra.mrb[14].mxu0 %vm295_vm0, %v6099_v38  ;;  %v6811_v38 = vld [vmem:[#allocation37_spill] sm:$0xff] }
 0x247   : > { %5346 = vmatprep.mubr.msk.f32.mxu0 %vm295_vm0, %v6106_v40  ;;  %v6812_v40 = vld [vmem:[#allocation38_spill] sm:$0xff] }
 0x248   : > { %5103 = vmatmul.mubr.msk.f32.gmra.mrb[20].mxu1 %vm295_vm0, %v6807_v27 }
 0x249   : > { %5105 = vmatprep.mubr.msk.f32.mxu1 %vm295_vm0, %v6808_v28 }
 0x24a   : > { %5347 = vmatmul.mubr.msk.f32.gmra.mrb[16].mxu0 %vm295_vm0, %v6112_v46  ;;  %v6813_v46 = vld [vmem:[#allocation39_spill] sm:$0xff] }
 0x24b   : > { %5349 = vmatprep.mubr.msk.f32.mxu0 %vm295_vm0, %v6119_v48  ;;  %v6814_v48 = vld [vmem:[#allocation40_spill] sm:$0xff] }
 0x24c   : > { %5106 = vmatmul.mubr.msk.f32.gmra.mrb[22].mxu1 %vm295_vm0, %v6809_v31 }
 0x24d   : > { %5108 = vmatprep.mubr.msk.f32.mxu1 %vm295_vm0, %v6810_v32 }
 0x24e   : > { %5350 = vmatmul.mubr.msk.f32.gmra.mrb[18].mxu0 %vm295_vm0, %v6125_v54  ;;  %v6815_v54 = vld [vmem:[#allocation12_spill] sm:$0xff] }
 0x24f   : > { %5352 = vmatprep.mubr.msk.f32.mxu0 %vm295_vm0, %v6132_v56  ;;  %v4582_v56 = vld [vmem:[#allocation3 + $0x19a] sm:$0xff] }
 0x250   : > { %5109 = vmatmul.mubr.msk.f32.gmra.mrb[24].mxu1 %vm295_vm0, %v6811_v38 }
 0x251   : > { %5111 = vmatprep.mubr.msk.f32.mxu1 %vm295_vm0, %v6812_v40 }
 0x252   : > { %5353 = vmatmul.mubr.msk.f32.gmra.mrb[20].mxu0 %vm295_vm0, %v6138_v2  ;;  %v6816_v2 = vld [vmem:[#allocation13_spill] sm:$0xff] }
 0x253   : > { %5355 = vmatprep.mubr.msk.f32.mxu0 %vm295_vm0, %v6145_v6  ;;  %v4583_v6 = vld [vmem:[#allocation3 + $0x1a2] sm:$0xff] }
 0x254   : > { %5112 = vmatmul.mubr.msk.f32.gmra.mrb[26].mxu1 %vm295_vm0, %v6813_v46 }
 0x255   : > { %5114 = vmatprep.mubr.msk.f32.mxu1 %vm295_vm0, %v6814_v48 }
 0x256   : > { %5356 = vmatmul.mubr.msk.f32.gmra.mrb[22].mxu0 %vm295_vm0, %v6151_v19 }
 0x257   : > { %5358 = vmatprep.mubr.msk.f32.mxu0 %vm295_vm0, %v6158_v25 }
 0x258   : > { %5115 = vmatmul.mubr.msk.f32.gmra.mrb[28].mxu1 %vm295_vm0, %v6377_v24 }
 0x259   : > { %5117 = vmatprep.mubr.msk.f32.mxu1 %vm295_vm0, %v6383_v10 }
 0x25a   : > { %5359 = vmatmul.mubr.msk.f32.gmra.mrb[24].mxu0 %vm295_vm0, %v6164_v50 }
 0x25b   : > { %5361 = vmatprep.mubr.msk.f32.mxu0 %vm295_vm0, %v6166_v58 }
 0x25c   : > { %5118 = vmatmul.mubr.msk.f32.gmra.mrb[30].mxu1 %vm295_vm0, %v6393_v0 }
 0x25d   : > { %5146 = vmatprep.mubr.msk.f32.mxu1 %vm295_vm0, %v5984_v62 }
 0x25e   : > { %5362 = vmatmul.mubr.msk.f32.gmra.mrb[26].mxu0 %vm295_vm0, %v6176_v16 }
 0x25f   : > { %5364 = vmatprep.mubr.msk.f32.mxu0 %vm295_vm0, %v6815_v54 }
 0x260   : > { %5147 = vmatmul.mubr.msk.f32.vlgmr.msra.gmra.mrb[16].mxu1 %vm295_vm0, %v6006_v3 }
 0x261   : > { %5149 = vmatprep.mubr.msk.f32.mxu1 %vm295_vm0, %v6019_v7 }
 0x262   : > { %5365 = vmatmul.mubr.msk.f32.gmra.mrb[28].mxu0 %vm295_vm0, %v6816_v2 }
 0x263   : > { %5367 = vmatprep.mubr.msk.f32.mxu0 %vm295_vm0, %v4582_v56 }
 0x264   : > { %5150 = vmatmul.mubr.msk.f32.gmra.mrb[18].mxu1 %vm295_vm0, %v6032_v11 }
 0x265   : > { %5152 = vmatprep.mubr.msk.f32.mxu1 %vm295_vm0, %v6045_v15 }
 0x266   : > { %5368 = vmatmul.mubr.msk.f32.gmra.mrb[30].mxu0 %vm295_vm0, %v4583_v6 }
 0x268   : > { %5153 = vmatmul.mubr.msk.f32.gmra.mrb[20].mxu1 %vm295_vm0, %v6058_v21 }
 0x269   : > { %5155 = vmatprep.mubr.msk.f32.mxu1 %vm295_vm0, %v6071_v26 }
 0x26c   : > { %5156 = vmatmul.mubr.msk.f32.gmra.mrb[22].mxu1 %vm295_vm0, %v6084_v30 }
 0x26d   : > { %5158 = vmatprep.mubr.msk.f32.mxu1 %vm295_vm0, %v6097_v36 }
 0x270   : > { %5159 = vmatmul.mubr.msk.f32.gmra.mrb[24].mxu1 %vm295_vm0, %v6110_v44 }
 0x271   : > { %5161 = vmatprep.mubr.msk.f32.mxu1 %vm295_vm0, %v6123_v52 }
 0x274   : > { %5162 = vmatmul.mubr.msk.f32.gmra.mrb[26].mxu1 %vm295_vm0, %v6783_v33 }
 0x275   : > { %5164 = vmatprep.mubr.msk.f32.mxu1 %vm295_vm0, %v6784_v35 }
 0x278   : > { %5165 = vmatmul.mubr.msk.f32.gmra.mrb[28].mxu1 %vm295_vm0, %v6786_v39 }
 0x279   : > { %5167 = vmatprep.mubr.msk.f32.mxu1 %vm295_vm0, %v6519_v41 }
 0x27c   : > { %5168 = vmatmul.mubr.msk.f32.gmra.mrb[30].mxu1 %vm295_vm0, %v6529_v49 }
 0x2f3   : > { %v5074_v16 = vpop.f32.mrb[0].mxu1 }
 0x2f4   : > { %v1755_v62 = vpop.f32.mrb[1].mxu1 }
 0x2f7   : > { %v5077_v3 = vpop.f32.mrb[2].mxu1 }
 0x2f8   : > { %v1765_v7 = vpop.f32.mrb[3].mxu1 }
 0x2fb   : > { %v5080_v11 = vpop.f32.mrb[4].mxu1 }
 0x2fc   : > { %v1775_v15 = vpop.f32.mrb[5].mxu1 }
 0x2fd   : > { %v5324_v21 = vpop.f32.mrb[0].mxu0 }
 0x2fe   : > { %v5372_v26 = vadd.f32 %v5324_v21, %v5074_v16  ;;  %v3708_v30 = vpop.f32.mrb[1].mxu0 }
 0x2ff   : > { %v5373_v36 = vadd.f32 %v3708_v30, %v1755_v62  ;;  %v5083_v44 = vpop.f32.mrb[6].mxu1 }
 0x300   : > { %v1785_v52 = vpop.f32.mrb[7].mxu1 }
 0x301   : > { %3899 = vxpose.xlu0.b32.start [1/16] (narrow) %v5373_v36, 8  ;;  %v5327_v14 = vpop.f32.mrb[2].mxu0 }
 0x302   : > { %v5374_v19 = vadd.f32 %v5327_v14, %v5077_v3  ;;  %v3718_v25 = vpop.f32.mrb[3].mxu0 }
 0x303   : > { %v5375_v42 = vadd.f32 %v3718_v25, %v1765_v7  ;;  %v5086_v50 = vpop.f32.mrb[8].mxu1 }
 0x304   : > { %v1795_v58 = vpop.f32.mrb[9].mxu1 }
 0x305   : > { %3900 = vxpose.xlu0.b32.cont [2/16] (narrow) %v5372_v26, 8  ;;  %v5330_v34 = vpop.f32.mrb[4].mxu0 }
 0x306   : > { %v5376_v29 = vadd.f32 %v5330_v34, %v5080_v11  ;;  %v3728_v10 = vpop.f32.mrb[5].mxu0 }
 0x307   : > { %v5377_v24 = vadd.f32 %v3728_v10, %v1775_v15  ;;  %v5089_v0 = vpop.f32.mrb[10].mxu1 }
 0x308   : > { %v1805_v61 = vpop.f32.mrb[11].mxu1 }
 0x309   : > { %3901 = vxpose.xlu0.b32.cont [3/16] (narrow) %v5375_v42, 8  ;;  %v5333_v33 = vpop.f32.mrb[6].mxu0 }
 0x30a   : > { %v5378_v35 = vadd.f32 %v5333_v33, %v5083_v44  ;;  %v3738_v37 = vpop.f32.mrb[7].mxu0 }
 0x30b   : > { %v5379_v39 = vadd.f32 %v3738_v37, %v1785_v52  ;;  %v5092_v41 = vpop.f32.mrb[12].mxu1 }
 0x30c   : > { %v1815_v43 = vpop.f32.mrb[13].mxu1 }
 0x30d   : > { %3902 = vxpose.xlu0.b32.cont [4/16] (narrow) %v5374_v19, 8  ;;  %v5336_v45 = vpop.f32.mrb[8].mxu0 }
 0x30e   : > { %v5380_v47 = vadd.f32 %v5336_v45, %v5086_v50  ;;  %v3748_v49 = vpop.f32.mrb[9].mxu0 }
 0x30f   : > { %v5381_v51 = vadd.f32 %v3748_v49, %v1795_v58  ;;  %v5095_v53 = vpop.f32.mrb[14].mxu1 }
 0x310   : > { %v1825_v55 = vpop.f32.mrb[15].mxu1 }
 0x311   : > { %3903 = vxpose.xlu0.b32.cont [5/16] (narrow) %v5377_v24, 8  ;;  %v5339_v20 = vpop.f32.mrb[10].mxu0 }
 0x312   : > { %v5382_v57 = vadd.f32 %v5339_v20, %v5089_v0  ;;  %v3758_v59 = vpop.f32.mrb[11].mxu0 }
 0x313   : > { %v5383_v60 = vadd.f32 %v3758_v59, %v1805_v61 }
 0x315   : > { %3904 = vxpose.xlu0.b32.cont [6/16] (narrow) %v5376_v29, 8  ;;  %v5342_v63 = vpop.f32.mrb[12].mxu0 }
 0x316   : > { %v5384_v1 = vadd.f32 %v5342_v63, %v5092_v41  ;;  %v3768_v4 = vpop.f32.mrb[13].mxu0 }
 0x317   : > { %v5385_v5 = vadd.f32 %v3768_v4, %v1815_v43 }
 0x319   : > { %3905 = vxpose.xlu0.b32.cont [7/16] (narrow) %v5379_v39, 8  ;;  %v5345_v8 = vpop.f32.mrb[14].mxu0 }
 0x31a   : > { %v5386_v9 = vadd.f32 %v5345_v8, %v5095_v53  ;;  %v3778_v12 = vpop.f32.mrb[15].mxu0 }
 0x31b   : > { %v5387_v13 = vadd.f32 %v3778_v12, %v1825_v55 }
 0x31d   : > { %3906 = vxpose.xlu0.b32.cont [8/16] (narrow) %v5378_v35, 8  ;;  %v5348_v17 = vpop.f32.mrb[16].mxu0 }
 0x31e   : > { %v3788_v18 = vpop.f32.mrb[17].mxu0 }
 0x321   : > { %3907 = vxpose.xlu0.b32.cont [9/16] (narrow) %v5381_v51, 8  ;;  %v5351_v22 = vpop.f32.mrb[18].mxu0 }
 0x322   : > { %v3798_v23 = vpop.f32.mrb[19].mxu0 }
 0x325   : > { %3908 = vxpose.xlu0.b32.cont [10/16] (narrow) %v5380_v47, 8  ;;  %v5354_v27 = vpop.f32.mrb[20].mxu0 }
 0x326   : > { %v3808_v28 = vpop.f32.mrb[21].mxu0 }
 0x329   : > { %3909 = vxpose.xlu0.b32.cont [11/16] (narrow) %v5383_v60, 8  ;;  %v5357_v31 = vpop.f32.mrb[22].mxu0 }
 0x32a   : > { %v3818_v32 = vpop.f32.mrb[23].mxu0 }
 0x32d   : > { %3910 = vxpose.xlu0.b32.cont [12/16] (narrow) %v5382_v57, 8  ;;  %v5360_v38 = vpop.f32.mrb[24].mxu0 }
 0x32e   : > { %v3828_v40 = vpop.f32.mrb[25].mxu0 }
 0x331   : > { %3911 = vxpose.xlu0.b32.cont [13/16] (narrow) %v5385_v5, 8  ;;  %v5363_v46 = vpop.f32.mrb[26].mxu0  ;;  %v6817_v5 = vmov 0.0  }
 0x332   : > { %v3838_v48 = vpop.f32.mrb[27].mxu0  ;;  %442 = vst.msk [vmem:[%s5744_s8] sm:$0xf] %vm441_vm4, %v6817_v5 }
 0x333   : > { %v5148_v54 = vpop.f32.mrb[16].mxu1 }
 0x334   : > { %v5388_v56 = vadd.f32 %v5348_v17, %v5148_v54  ;;  %v2225_v2 = vpop.f32.mrb[17].mxu1 }
 0x335   : > { %3912 = vxpose.xlu0.b32.cont [14/16] (narrow) %v5384_v1, 8  ;;  %v5389_v6 = vadd.f32 %v3788_v18, %v2225_v2  ;;  %v5366_v16 = vpop.f32.mrb[28].mxu0 }
 0x336   : > { %v3848_v62 = vpop.f32.mrb[29].mxu0 }
 0x337   : > { %3931 = vxpose.xlu1.b32.start [1/16] (narrow) %v5389_v6, 8  ;;  %v5151_v3 = vpop.f32.mrb[18].mxu1 }
 0x338   : > { %v5390_v7 = vadd.f32 %v5351_v22, %v5151_v3  ;;  %v2235_v11 = vpop.f32.mrb[19].mxu1 }
 0x339   : > { %3913 = vxpose.xlu0.b32.cont [15/16] (narrow) %v5387_v13, 8  ;;  %v5391_v15 = vadd.f32 %v3798_v23, %v2235_v11  ;;  %v5369_v21 = vpop.f32.mrb[30].mxu0 }
 0x33a   : > { %v3858_v26 = vpop.f32.mrb[31].mxu0 }
 0x33b   : > { %3932 = vxpose.xlu1.b32.cont [2/16] (narrow) %v5388_v56, 8  ;;  %v5154_v30 = vpop.f32.mrb[20].mxu1 }
 0x33c   : > { %v5392_v36 = vadd.f32 %v5354_v27, %v5154_v30  ;;  %v2245_v44 = vpop.f32.mrb[21].mxu1 }
 0x33d   : > { %3914 = vxpose.xlu0.b32.end [16/16] (narrow) %v5386_v9, 8  ;;  %v5393_v52 = vadd.f32 %v3808_v28, %v2245_v44  ;;  %v3980_v9 = vld [vmem:[%s5744_s8] sm:$0xf] }
 0x33f   : > { %3933 = vxpose.xlu1.b32.cont [3/16] (narrow) %v5391_v15, 8  ;;  %v5157_v14 = vpop.f32.mrb[22].mxu1 }
 0x340   : > { %v5394_v19 = vadd.f32 %v5357_v31, %v5157_v14  ;;  %v2255_v25 = vpop.f32.mrb[23].mxu1 }
 0x341   : > { %v5395_v42 = vadd.f32 %v3818_v32, %v2255_v25 }
 0x343   : > { %3934 = vxpose.xlu1.b32.cont [4/16] (narrow) %v5390_v7, 8  ;;  %v5160_v50 = vpop.f32.mrb[24].mxu1 }
 0x344   : > { %v5396_v58 = vadd.f32 %v5360_v38, %v5160_v50  ;;  %v2265_v34 = vpop.f32.mrb[25].mxu1 }
 0x345   : > { %v5397_v29 = vadd.f32 %v3828_v40, %v2265_v34 }
 0x347   : > { %3935 = vxpose.xlu1.b32.cont [5/16] (narrow) %v5393_v52, 8  ;;  %v5163_v10 = vpop.f32.mrb[26].mxu1 }
 0x348   : > { %v5398_v24 = vadd.f32 %v5363_v46, %v5163_v10  ;;  %v2275_v0 = vpop.f32.mrb[27].mxu1 }
 0x349   : > { %v5399_v61 = vadd.f32 %v3838_v48, %v2275_v0 }
 0x34b   : > { %3936 = vxpose.xlu1.b32.cont [6/16] (narrow) %v5392_v36, 8  ;;  %v5166_v33 = vpop.f32.mrb[28].mxu1 }
 0x34c   : > { %v5400_v35 = vadd.f32 %v5366_v16, %v5166_v33  ;;  %v2285_v37 = vpop.f32.mrb[29].mxu1 }
 0x34d   : > { %v5401_v39 = vadd.f32 %v3848_v62, %v2285_v37 }
 0x34f   : > { %3937 = vxpose.xlu1.b32.cont [7/16] (narrow) %v5395_v42, 8  ;;  %v5169_v41 = vpop.f32.mrb[30].mxu1 }
 0x350   : > { %v5402_v43 = vadd.f32 %v5369_v21, %v5169_v41  ;;  %v2295_v45 = vpop.f32.mrb[31].mxu1 }
 0x351   : > { %v5403_v47 = vadd.f32 %v3858_v26, %v2295_v45 }
 0x353   : > { %3938 = vxpose.xlu1.b32.cont [8/16] (narrow) %v5394_v19, 8 }
 0x357   : > { %3939 = vxpose.xlu1.b32.cont [9/16] (narrow) %v5397_v29, 8 }
 0x35b   : > { %3940 = vxpose.xlu1.b32.cont [10/16] (narrow) %v5396_v58, 8 }
 0x35f   : > { %3941 = vxpose.xlu1.b32.cont [11/16] (narrow) %v5399_v61, 8 }
 0x363   : > { %3942 = vxpose.xlu1.b32.cont [12/16] (narrow) %v5398_v24, 8 }
 0x367   : > { %3943 = vxpose.xlu1.b32.cont [13/16] (narrow) %v5401_v39, 8 }
 0x36b   : > { %3944 = vxpose.xlu1.b32.cont [14/16] (narrow) %v5400_v35, 8 }
 0x36f   : > { %3945 = vxpose.xlu1.b32.cont [15/16] (narrow) %v5403_v47, 8 }
 0x373   : > { %3946 = vxpose.xlu1.b32.end [16/16] (narrow) %v5402_v43, 8 }
 0x381   : > { %v3915_v49 = vpop.trf.xlu0 }
 0x382   : > { %v3973_v51 = vmul.f32 %v3915_v49, %v3915_v49  ;;  %v3968_v53 = vsel %vm610_vm3, %v3915_v49, 0.0 }
 0x384   : > { %v3975_v63 = vsel %vm610_vm3, %v3973_v51, 0.0 }
 0x3b7   : > { %v3947_v55 = vpop.trf.xlu1 }
 0x3b8   : > { %v3965_v20 = vcombine.low %v3915_v49, %v3947_v55  ;;  %v3969_v57 = vsel %vm610_vm3, %v3947_v55, 0.0  ;;  %v3974_v59 = vmul.f32 %v3947_v55, %v3947_v55 }
 0x3b9   : > { %v3970_v60 = vadd.f32 %v3969_v57, %v3968_v53 }
 0x3ba   : > { %3967 = vst [vmem:[%s5739_s30] sm:$0xff] %v3965_v20  ;;  %v3976_v1 = vsel %vm610_vm3, %v3974_v59, 0.0 }
 0x3bb   : > { %3971 = vadd.xlane.f32.xlu0 %v3970_v60  ;;  %v3977_v4 = vadd.f32 %v3976_v1, %v3975_v63 }
 0x3bf   : > { %3978 = vadd.xlane.f32.xlu0 %v3977_v4 }
 0x448   : > { %v3972_v8 = vpop.xlane.xlu0 %3971 }
 0x44c   : > { %v3979_v12 = vpop.xlane.xlu0 %3978 }
 0x44d   : > { %v3982_v13 = vsel %vm3981_vm5, %v3972_v8, %v3979_v12 }
 0x44e   : > { %v3983_v17 = vadd.f32 %v3982_v13, %v3980_v9 }
 0x450   : > { %3985 = vst.msk [vmem:[%s5744_s8] sm:$0xf] %vm441_vm4, %v3983_v17 }
 0x451 PF: > { %s16_s20 = sadd.s32 1, %s5680_s20   ;;  %s6818_s18 = smov %s5676_s19 }
 0x452   : > { %p13_p5 = scmp.ge.s32.totalorder %s16_s20, 4   ;;  %s6819_s19 = smov %s6821_s21 }
 0x454   :  { %15 = sbr.rel (!%p13_p5) target bundleno = 2 (0x2), region = 131 }
 0x45b   :  { %4030 = vsyncmov [#allocation4] }
 0x45e   :  { %s4031_s30 = vpop.sfrf %4030 }
 0x45f   :  { %p4620_p6 = scmp.ne.s32.totalorder %s4031_s30, 0 }
 0x461   :  { %4035 = shalt.err (%p4620_p6)  }

// kernel: basic_block_forward.4
= control target key start
LH: loop header
LB: loop body
LE: loop exit
PB: predicated region body
PF: predicated region fallthrough
CT: control target
= control target key end

     0   :  { %s5716_s18 = smov 0   ;;  %s5718_s19 = smov 0   ;;  %s6706_s0 = inlined_call_operand.vmem [shape: f32[2,4,256], index: 0, kind: input, shape index: {}]   ;;  %s6707_s1 = inlined_call_operand.vmem [shape: f32[9,4,4], index: 1, kind: input, shape index: {}]   ;;  %s6708_s2 = inlined_call_operand.vmem [shape: f32[4,1], index: 2, kind: input, shape index: {}]   ;;  %s6709_s3 = inlined_call_operand.vmem [shape: f32[4,1], index: 3, kind: input, shape index: {}]   ;;  %s6710_s4 = inlined_call_operand.vmem [shape: f32[2,4,256], index: 4, kind: output, shape index: {0}]   ;;  %s6711_s5 = inlined_call_operand.vmem [shape: f32[2,4,2], index: 5, kind: output, shape index: {1}]  }
   0x1   :  { %s5720_s20 = smov 0  }
   0x2 LB: > { %s28_s21 = sadd.s32 1, %s5677_s19  ;;  %p4116_p0 = scmp.ge.s32.totalorder %s5681_s20, 1  ;;  %s5681_s20 = sphi %s5720_s20, %s16_s20   ;;  %s5677_s19 = sphi %s5718_s19, %s6820_s19   ;;  %s5673_s18 = sphi %s5716_s18, %s6819_s18  }
   0x3   : > { %p30_p1 = scmp.ge.s32.totalorder %s28_s21, 2  ;;  %p170_p2 = scmp.lt.s32.totalorder %s5681_s20, 3 }
   0x5   : > { %s6822_s21 = smov (%p30_p1, %s28_s21), 0  ;;  %p171_p3 = pnand %p4116_p0, %p170_p2 }
   0x7   : > { %174 = sbr.rel (%p171_p3) target bundleno = 1107 (0x453), region = 32 }
   0xe   : > { %p200_p4 = scmp.lt.s32.totalorder %s5673_s18, 1  ;;  %s4623_s22 = sshll.u32 %s5673_s18, 3 }
   0xf   : > { %s219_s25 = scalar_lea.vmem %s6706_s0, %s4623_s22 }
  0x10   : > { %s6824_s18 = smov (!%p200_p4, %s5673_s18), 1  ;;  %v252_v0 = vld [vmem:[%s219_s25] sm:$0xff] }
  0x11   : > { %s4622_s26 = sshll.u32 %s6824_s18, 3  ;;  %s4119_s27 = sshll.u32 %s6824_s18, 2 }
  0x12   : > { %s5740_s30 = scalar_lea.vmem %s6710_s4, %s4622_s26  ;;  %s5745_s8 = scalar_lea.vmem %s6711_s5, %s4119_s27 }
  0x13   : > { %261 = vsyncadd [#allocation4], 128 }
  0x14   : > { %5669 = dma.done.wait [#allocation4], 128 }
  0x15   : > { %5670 = vsyncadd [#allocation4], 4294967168  ;;  %v5683_v1 = vmov 0   ;;  %v267_v2 = vld [vmem:[%s6708_s2] sm:$0xf]  ;;  %v275_v6 = vlaneseq  ;;  %vm296_vm0 = vcmask 31744  }
  0x16   : > { %5656 = vset.pattern.permute.xlu0 %v5683_v1  ;;  %v281_v3 = vld [vmem:[%s6709_s3] sm:$0xf]  ;;  %v5684_v4 = vmov 839922192   ;;  %v6712_v17 = vmov 0.0   ;;  %vm299_vm1 = vcmask 25600  }
  0x17   : > { %270 = vperm.xlu0 %5656, %v267_v2   ;;  %v273_v5 = vunpack.c.l.s4 %v5684_v4  ;;  %v276_v8 = vshrl.u32 %v275_v6, 7  ;;  %297 = vst.msk [vmem:[#allocation3] sm:$0xff] %vm296_vm0, %v6712_v17  ;;  %298 = vst.msk [vmem:[#allocation3 + $0x8] sm:$0xff] %vm296_vm0, %v6712_v17  ;;  %vm305_vm2 = vcmask 24576   ;;  %v4122_v18 = vld [vmem:[%s6707_s1 + $0x4] sm:$0xf] }
  0x18   : > { %302 = vst.msk [vmem:[#allocation3 + $0x198] sm:$0xff] %vm296_vm0, %v6712_v17  ;;  %303 = vst.msk [vmem:[#allocation3 + $0x1a0] sm:$0xff] %vm296_vm0, %v6712_v17  ;;  %vm611_vm3 = vcmask 1043456   ;;  %v5845_v21 = vld [vmem:[%s6707_s1 + $0x10] sm:$0xf]  ;;  %vm442_vm4 = vcmask 11264  }
  0x19   : > { %v274_v7 = vunpack.c.0.s8 %v273_v5  ;;  %300 = vst.msk [vmem:[#allocation3 + $0x10] sm:$0x3] %vm299_vm1, %v6712_v17  ;;  %304 = vst.msk [vmem:[#allocation3 + $0x1a8] sm:$0x3] %vm299_vm1, %v6712_v17  ;;  %4921 = vmatprep.subr.msk.mxu1 %vm611_vm3, %v4122_v18  ;;  %5121 = vmatprep.subr.msk.mxu0 %vm611_vm3, %v5845_v21  ;;  %v479_v23 = vld [vmem:[%s6707_s1] sm:$0xf] }
  0x1a   : > { %324 = vst.msk [vmem:[#allocation3 + $0x11] sm:$0x1] %vm305_vm2, %v6712_v17  ;;  %306 = vst.msk [vmem:[#allocation3] sm:$0x1] %vm305_vm2, %v6712_v17  ;;  %4922 = vmatpush3.msk.msra.mxu1 %vm611_vm3, %v4122_v18  ;;  %5122 = vmatpush3.msk.msra.mxu0 %vm611_vm3, %v5845_v21  ;;  %v4387_v24 = vld [vmem:[%s6707_s1 + $0x14] sm:$0xf] }
  0x1b   : > { %284 = vperm.xlu0 %5656, %v281_v3   ;;  %v277_v9 = vsub.s32 %v274_v7, %v276_v8  ;;  %307 = vst.msk [vmem:[#allocation3 + $0x18] sm:$0x1] %vm305_vm2, %v6712_v17  ;;  %308 = vst.msk [vmem:[#allocation3 + $0x30] sm:$0x1] %vm305_vm2, %v6712_v17  ;;  %4971 = vmatprep.subr.msk.mxu1 %vm611_vm3, %v479_v23  ;;  %v5863_v25 = vld [vmem:[%s6707_s1 + $0x8] sm:$0xf] }
  0x1c   : > { %309 = vst.msk [vmem:[#allocation3 + $0x48] sm:$0x1] %vm305_vm2, %v6712_v17  ;;  %310 = vst.msk [vmem:[#allocation3 + $0x60] sm:$0x1] %vm305_vm2, %v6712_v17  ;;  %5171 = vmatprep.subr.msk.mxu0 %vm611_vm3, %v4387_v24  ;;  %v5875_v32 = vld [vmem:[%s6707_s1 + $0x18] sm:$0xf] }
  0x1d   : > { %311 = vst.msk [vmem:[#allocation3 + $0x78] sm:$0x1] %vm305_vm2, %v6712_v17  ;;  %312 = vst.msk [vmem:[#allocation3 + $0x90] sm:$0x1] %vm305_vm2, %v6712_v17  ;;  %v5992_v1 = vld [vmem:[%s6707_s1 + $0x1c] sm:$0xf] }
  0x1e   : > { %313 = vst.msk [vmem:[#allocation3 + $0xa8] sm:$0x1] %vm305_vm2, %v6712_v17  ;;  %314 = vst.msk [vmem:[#allocation3 + $0xc0] sm:$0x1] %vm305_vm2, %v6712_v17  ;;  %v480_v19 = vld [vmem:[#allocation3 + $0x1] sm:$0xff]  ;;  %vm3982_vm5 = vcmask 7168  }
  0x1f   : > { %315 = vst.msk [vmem:[#allocation3 + $0xd8] sm:$0x1] %vm305_vm2, %v6712_v17  ;;  %316 = vst.msk [vmem:[#allocation3 + $0xf0] sm:$0x1] %vm305_vm2, %v6712_v17  ;;  %4923 = vmatprep.mubr.msk.f32.mxu1 %vm296_vm0, %v480_v19 }
  0x20   : > { %317 = vst.msk [vmem:[#allocation3 + $0x108] sm:$0x1] %vm305_vm2, %v6712_v17  ;;  %318 = vst.msk [vmem:[#allocation3 + $0x120] sm:$0x1] %vm305_vm2, %v6712_v17  ;;  %v481_v20 = vld [vmem:[#allocation3 + $0x9] sm:$0xff] }
  0x21   : > { %319 = vst.msk [vmem:[#allocation3 + $0x138] sm:$0x1] %vm305_vm2, %v6712_v17  ;;  %320 = vst.msk [vmem:[#allocation3 + $0x150] sm:$0x1] %vm305_vm2, %v6712_v17  ;;  %4924 = vmatmul.mubr.msk.f32.vlgmr.msra.gmra.mrb[0].mxu1 %vm296_vm0, %v481_v20 }
  0x22   : > { %321 = vst.msk [vmem:[#allocation3 + $0x168] sm:$0x1] %vm305_vm2, %v6712_v17  ;;  %322 = vst.msk [vmem:[#allocation3 + $0x180] sm:$0x1] %vm305_vm2, %v6712_v17  ;;  %4972 = vmatpush3.msk.msra.mxu1 %vm611_vm3, %v479_v23 }
  0x23   : > { %323 = vst.msk [vmem:[#allocation3 + $0x198] sm:$0x1] %vm305_vm2, %v6712_v17  ;;  %325 = vst.msk [vmem:[#allocation3 + $0x29] sm:$0x1] %vm305_vm2, %v6712_v17  ;;  %5021 = vmatprep.subr.msk.mxu1 %vm611_vm3, %v5863_v25 }
  0x24   : > { %326 = vst.msk [vmem:[#allocation3 + $0x41] sm:$0x1] %vm305_vm2, %v6712_v17  ;;  %327 = vst.msk [vmem:[#allocation3 + $0x59] sm:$0x1] %vm305_vm2, %v6712_v17 }
  0x25   : > { %328 = vst.msk [vmem:[#allocation3 + $0x71] sm:$0x1] %vm305_vm2, %v6712_v17  ;;  %329 = vst.msk [vmem:[#allocation3 + $0x89] sm:$0x1] %vm305_vm2, %v6712_v17 }
  0x26   : > { %330 = vst.msk [vmem:[#allocation3 + $0xa1] sm:$0x1] %vm305_vm2, %v6712_v17  ;;  %331 = vst.msk [vmem:[#allocation3 + $0xb9] sm:$0x1] %vm305_vm2, %v6712_v17 }
  0x27   : > { %332 = vst.msk [vmem:[#allocation3 + $0xd1] sm:$0x1] %vm305_vm2, %v6712_v17  ;;  %333 = vst.msk [vmem:[#allocation3 + $0xe9] sm:$0x1] %vm305_vm2, %v6712_v17 }
  0x28   : > { %334 = vst.msk [vmem:[#allocation3 + $0x101] sm:$0x1] %vm305_vm2, %v6712_v17  ;;  %335 = vst.msk [vmem:[#allocation3 + $0x119] sm:$0x1] %vm305_vm2, %v6712_v17 }
  0x29   : > { %336 = vst.msk [vmem:[#allocation3 + $0x131] sm:$0x1] %vm305_vm2, %v6712_v17  ;;  %337 = vst.msk [vmem:[#allocation3 + $0x149] sm:$0x1] %vm305_vm2, %v6712_v17 }
  0x2a   : > { %338 = vst.msk [vmem:[#allocation3 + $0x161] sm:$0x1] %vm305_vm2, %v6712_v17  ;;  %339 = vst.msk [vmem:[#allocation3 + $0x179] sm:$0x1] %vm305_vm2, %v6712_v17 }
  0x2b   : > { %340 = vst.msk [vmem:[#allocation3 + $0x191] sm:$0x1] %vm305_vm2, %v6712_v17  ;;  %341 = vst.msk [vmem:[#allocation3 + $0x1a9] sm:$0x1] %vm305_vm2, %v6712_v17 }
  0x96   : > { %v271_v10 = vpop.permute.xlu0 %270 }
  0x97   : > { %v278_v11 = vrot.slane %v271_v10, %v277_v9 }
  0x99   : > { %v280_v13 = vmul.f32 %v278_v11, %v252_v0 }
  0x9a   : > { %v285_v12 = vpop.permute.xlu0 %284 }
  0x9b   : > { %v292_v14 = vrot.slane %v285_v12, %v277_v9 }
  0x9d   : > { %v294_v15 = vadd.f32 %v292_v14, %v280_v13 }
  0x9f   : > { %v295_v16 = vmax.f32 %v294_v15, 0.0 }
  0xa1   : > { %345 = vxpose.xlu1.b32.start.end [1/1] (short) %v295_v16, 128  ;;  %v343_v22 = vcombine.high %v295_v16, %v295_v16 }
  0xde   : > { %377 = vxpose.xlu1.b32.start.end [1/1] (short) %v343_v22, 128 }
 0x121   : > { %v361_v26 = vpop.trf.xlu1 }
 0x122   : > { %410 = vst.msk [vmem:[#allocation3 + $0x19] sm:$0xff] %vm296_vm0, %v361_v26 }
 0x125   : > { %v362_v27 = vpop.trf.xlu1 }
 0x126   : > { %411 = vst.msk [vmem:[#allocation3 + $0x21] sm:$0xff] %vm296_vm0, %v362_v27 }
 0x129   : > { %v363_v28 = vpop.trf.xlu1  ;;  %v482_v29 = vld [vmem:[#allocation3 + $0x19] sm:$0xff] }
 0x12a   : > { %412 = vst.msk [vmem:[#allocation3 + $0x31] sm:$0xff] %vm296_vm0, %v363_v28  ;;  %4926 = vmatprep.mubr.msk.f32.mxu1 %vm296_vm0, %v482_v29  ;;  %5123 = vmatprep.mubr.msk.f32.mxu0 %vm296_vm0, %v482_v29 }
 0x12d   : > { %v364_v30 = vpop.trf.xlu1  ;;  %v483_v31 = vld [vmem:[#allocation3 + $0x21] sm:$0xff] }
 0x12e   : > { %413 = vst.msk [vmem:[#allocation3 + $0x39] sm:$0xff] %vm296_vm0, %v364_v30  ;;  %4927 = vmatmul.mubr.msk.f32.gmra.mrb[2].mxu1 %vm296_vm0, %v483_v31  ;;  %5124 = vmatmul.mubr.msk.f32.vlgmr.msra.gmra.mrb[0].mxu0 %vm296_vm0, %v483_v31  ;;  %v5981_v61 = vld [vmem:[#allocation3 + $0x1a] sm:$0xff]  ;;  %v5987_v0 = vld [vmem:[#allocation3 + $0x22] sm:$0xff] }
 0x12f   : > { %5172 = vmatpush3.msk.msra.mxu0 %vm611_vm3, %v4387_v24 }
 0x130   : > { %5221 = vmatprep.subr.msk.mxu0 %vm611_vm3, %v5875_v32 }
 0x131   : > { %v365_v33 = vpop.trf.xlu1  ;;  %v5883_v34 = vld [vmem:[#allocation3 + $0x31] sm:$0xff] }
 0x132   : > { %414 = vst.msk [vmem:[#allocation3 + $0x49] sm:$0xff] %vm296_vm0, %v365_v33  ;;  %4929 = vmatprep.mubr.msk.f32.mxu1 %vm296_vm0, %v5883_v34  ;;  %5126 = vmatprep.mubr.msk.f32.mxu0 %vm296_vm0, %v5883_v34 }
 0x135   : > { %v366_v35 = vpop.trf.xlu1  ;;  %v5890_v36 = vld [vmem:[#allocation3 + $0x39] sm:$0xff] }
 0x136   : > { %415 = vst.msk [vmem:[#allocation3 + $0x51] sm:$0xff] %vm296_vm0, %v366_v35  ;;  %4930 = vmatmul.mubr.msk.f32.gmra.mrb[4].mxu1 %vm296_vm0, %v5890_v36  ;;  %5127 = vmatmul.mubr.msk.f32.gmra.mrb[2].mxu0 %vm296_vm0, %v5890_v36  ;;  %v5999_v2 = vld [vmem:[#allocation3 + $0x32] sm:$0xff]  ;;  %v6009_v5 = vld [vmem:[#allocation3 + $0x3a] sm:$0xff] }
 0x139   : > { %v367_v37 = vpop.trf.xlu1  ;;  %v5897_v38 = vld [vmem:[#allocation3 + $0x49] sm:$0xff] }
 0x13a   : > { %416 = vst.msk [vmem:[#allocation3 + $0x61] sm:$0xff] %vm296_vm0, %v367_v37  ;;  %4932 = vmatprep.mubr.msk.f32.mxu1 %vm296_vm0, %v5897_v38  ;;  %5129 = vmatprep.mubr.msk.f32.mxu0 %vm296_vm0, %v5897_v38 }
 0x13d   : > { %v368_v39 = vpop.trf.xlu1  ;;  %v5904_v40 = vld [vmem:[#allocation3 + $0x51] sm:$0xff] }
 0x13e   : > { %417 = vst.msk [vmem:[#allocation3 + $0x69] sm:$0xff] %vm296_vm0, %v368_v39  ;;  %4933 = vmatmul.mubr.msk.f32.gmra.mrb[6].mxu1 %vm296_vm0, %v5904_v40  ;;  %5130 = vmatmul.mubr.msk.f32.gmra.mrb[4].mxu0 %vm296_vm0, %v5904_v40  ;;  %v6016_v6 = vld [vmem:[#allocation3 + $0x4a] sm:$0xff]  ;;  %v6022_v9 = vld [vmem:[#allocation3 + $0x52] sm:$0xff] }
 0x141   : > { %v369_v41 = vpop.trf.xlu1  ;;  %v5911_v42 = vld [vmem:[#allocation3 + $0x61] sm:$0xff] }
 0x142   : > { %418 = vst.msk [vmem:[#allocation3 + $0x79] sm:$0xff] %vm296_vm0, %v369_v41  ;;  %4935 = vmatprep.mubr.msk.f32.mxu1 %vm296_vm0, %v5911_v42  ;;  %5132 = vmatprep.mubr.msk.f32.mxu0 %vm296_vm0, %v5911_v42 }
 0x145   : > { %v370_v43 = vpop.trf.xlu1  ;;  %v5918_v44 = vld [vmem:[#allocation3 + $0x69] sm:$0xff] }
 0x146   : > { %419 = vst.msk [vmem:[#allocation3 + $0x81] sm:$0xff] %vm296_vm0, %v370_v43  ;;  %4936 = vmatmul.mubr.msk.f32.gmra.mrb[8].mxu1 %vm296_vm0, %v5918_v44  ;;  %5133 = vmatmul.mubr.msk.f32.gmra.mrb[6].mxu0 %vm296_vm0, %v5918_v44  ;;  %v6029_v10 = vld [vmem:[#allocation3 + $0x62] sm:$0xff]  ;;  %v6035_v13 = vld [vmem:[#allocation3 + $0x6a] sm:$0xff] }
 0x149   : > { %v371_v45 = vpop.trf.xlu1  ;;  %v5925_v46 = vld [vmem:[#allocation3 + $0x79] sm:$0xff] }
 0x14a   : > { %420 = vst.msk [vmem:[#allocation3 + $0x91] sm:$0xff] %vm296_vm0, %v371_v45  ;;  %4938 = vmatprep.mubr.msk.f32.mxu1 %vm296_vm0, %v5925_v46  ;;  %5135 = vmatprep.mubr.msk.f32.mxu0 %vm296_vm0, %v5925_v46 }
 0x14d   : > { %v372_v47 = vpop.trf.xlu1  ;;  %v5932_v48 = vld [vmem:[#allocation3 + $0x81] sm:$0xff] }
 0x14e   : > { %421 = vst.msk [vmem:[#allocation3 + $0x99] sm:$0xff] %vm296_vm0, %v372_v47  ;;  %4939 = vmatmul.mubr.msk.f32.gmra.mrb[10].mxu1 %vm296_vm0, %v5932_v48  ;;  %5136 = vmatmul.mubr.msk.f32.gmra.mrb[8].mxu0 %vm296_vm0, %v5932_v48  ;;  %v6042_v14 = vld [vmem:[#allocation3 + $0x7a] sm:$0xff]  ;;  %v6048_v18 = vld [vmem:[#allocation3 + $0x82] sm:$0xff] }
 0x151   : > { %v373_v49 = vpop.trf.xlu1  ;;  %v5939_v50 = vld [vmem:[#allocation3 + $0x91] sm:$0xff] }
 0x152   : > { %422 = vst.msk [vmem:[#allocation3 + $0xa9] sm:$0xff] %vm296_vm0, %v373_v49  ;;  %4941 = vmatprep.mubr.msk.f32.mxu1 %vm296_vm0, %v5939_v50  ;;  %5138 = vmatprep.mubr.msk.f32.mxu0 %vm296_vm0, %v5939_v50 }
 0x155   : > { %v374_v51 = vpop.trf.xlu1  ;;  %v5946_v52 = vld [vmem:[#allocation3 + $0x99] sm:$0xff] }
 0x156   : > { %423 = vst.msk [vmem:[#allocation3 + $0xb1] sm:$0xff] %vm296_vm0, %v374_v51  ;;  %4942 = vmatmul.mubr.msk.f32.gmra.mrb[12].mxu1 %vm296_vm0, %v5946_v52  ;;  %5139 = vmatmul.mubr.msk.f32.gmra.mrb[10].mxu0 %vm296_vm0, %v5946_v52  ;;  %v6055_v19 = vld [vmem:[#allocation3 + $0x92] sm:$0xff]  ;;  %v6061_v23 = vld [vmem:[#allocation3 + $0x9a] sm:$0xff] }
 0x159   : > { %v375_v53 = vpop.trf.xlu1  ;;  %v5953_v54 = vld [vmem:[#allocation3 + $0xa9] sm:$0xff] }
 0x15a   : > { %424 = vst.msk [vmem:[#allocation3 + $0xc1] sm:$0xff] %vm296_vm0, %v375_v53  ;;  %4944 = vmatprep.mubr.msk.f32.mxu1 %vm296_vm0, %v5953_v54  ;;  %5141 = vmatprep.mubr.msk.f32.mxu0 %vm296_vm0, %v5953_v54 }
 0x15d   : > { %v376_v55 = vpop.trf.xlu1  ;;  %v5960_v56 = vld [vmem:[#allocation3 + $0xb1] sm:$0xff] }
 0x15e   : > { %425 = vst.msk [vmem:[#allocation3 + $0xc9] sm:$0xff] %vm296_vm0, %v376_v55  ;;  %4945 = vmatmul.mubr.msk.f32.gmra.mrb[14].mxu1 %vm296_vm0, %v5960_v56  ;;  %5142 = vmatmul.mubr.msk.f32.gmra.mrb[12].mxu0 %vm296_vm0, %v5960_v56  ;;  %v6068_v24 = vld [vmem:[#allocation3 + $0xaa] sm:$0xff]  ;;  %v6074_v28 = vld [vmem:[#allocation3 + $0xb2] sm:$0xff] }
 0x161   : > { %v393_v57 = vpop.trf.xlu1  ;;  %v5967_v58 = vld [vmem:[#allocation3 + $0xc1] sm:$0xff] }
 0x162   : > { %426 = vst.msk [vmem:[#allocation3 + $0xd9] sm:$0xff] %vm296_vm0, %v393_v57  ;;  %4947 = vmatprep.mubr.msk.f32.mxu1 %vm296_vm0, %v5967_v58  ;;  %5144 = vmatprep.mubr.msk.f32.mxu0 %vm296_vm0, %v5967_v58 }
 0x165   : > { %v394_v59 = vpop.trf.xlu1  ;;  %v5974_v60 = vld [vmem:[#allocation3 + $0xc9] sm:$0xff] }
 0x166   : > { %427 = vst.msk [vmem:[#allocation3 + $0xe1] sm:$0xff] %vm296_vm0, %v394_v59  ;;  %4948 = vmatmul.mubr.msk.f32.gmra.mrb[16].mxu1 %vm296_vm0, %v5974_v60  ;;  %5145 = vmatmul.mubr.msk.f32.gmra.mrb[14].mxu0 %vm296_vm0, %v5974_v60  ;;  %v6081_v29 = vld [vmem:[#allocation3 + $0xc2] sm:$0xff] }
 0x167   : > { %5173 = vmatprep.mubr.msk.f32.mxu0 %vm296_vm0, %v5981_v61 }
 0x169   : > { %v395_v62 = vpop.trf.xlu1  ;;  %v5985_v63 = vld [vmem:[#allocation3 + $0xd9] sm:$0xff] }
 0x16a   : > { %428 = vst.msk [vmem:[#allocation3 + $0xf1] sm:$0xff] %vm296_vm0, %v395_v62  ;;  %4950 = vmatprep.mubr.msk.f32.mxu1 %vm296_vm0, %v5985_v63  ;;  %5174 = vmatmul.mubr.msk.f32.vlgmr.msra.gmra.mrb[0].mxu0 %vm296_vm0, %v5987_v0 }
 0x16b   : > { %5176 = vmatprep.mubr.msk.f32.mxu0 %vm296_vm0, %v5999_v2  ;;  %5222 = vmatpush3.msk.msra.mxu0 %vm611_vm3, %v5875_v32  ;;  %v6087_v32 = vld [vmem:[#allocation3 + $0xca] sm:$0xff] }
 0x16c   : > { %5271 = vmatprep.subr.msk.mxu0 %vm611_vm3, %v5992_v1 }
 0x16d   : > { %v396_v3 = vpop.trf.xlu1  ;;  %v6007_v4 = vld [vmem:[#allocation3 + $0xe1] sm:$0xff] }
 0x16e   : > { %429 = vst.msk [vmem:[#allocation3 + $0xf9] sm:$0xff] %vm296_vm0, %v396_v3  ;;  %4951 = vmatmul.mubr.msk.f32.gmra.mrb[18].mxu1 %vm296_vm0, %v6007_v4  ;;  %5177 = vmatmul.mubr.msk.f32.gmra.mrb[2].mxu0 %vm296_vm0, %v6009_v5  ;;  %v6094_v33 = vld [vmem:[#allocation3 + $0xda] sm:$0xff]  ;;  %v6100_v39 = vld [vmem:[#allocation3 + $0xe2] sm:$0xff] }
 0x16f   : > { %5179 = vmatprep.mubr.msk.f32.mxu0 %vm296_vm0, %v6016_v6 }
 0x171   : > { %v397_v7 = vpop.trf.xlu1  ;;  %v6020_v8 = vld [vmem:[#allocation3 + $0xf1] sm:$0xff] }
 0x172   : > { %430 = vst.msk [vmem:[#allocation3 + $0x109] sm:$0xff] %vm296_vm0, %v397_v7  ;;  %4953 = vmatprep.mubr.msk.f32.mxu1 %vm296_vm0, %v6020_v8  ;;  %5180 = vmatmul.mubr.msk.f32.gmra.mrb[4].mxu0 %vm296_vm0, %v6022_v9 }
 0x173   : > { %5182 = vmatprep.mubr.msk.f32.mxu0 %vm296_vm0, %v6029_v10 }
 0x175   : > { %v398_v11 = vpop.trf.xlu1  ;;  %v6033_v12 = vld [vmem:[#allocation3 + $0xf9] sm:$0xff] }
 0x176   : > { %431 = vst.msk [vmem:[#allocation3 + $0x111] sm:$0xff] %vm296_vm0, %v398_v11  ;;  %4954 = vmatmul.mubr.msk.f32.gmra.mrb[20].mxu1 %vm296_vm0, %v6033_v12  ;;  %5183 = vmatmul.mubr.msk.f32.gmra.mrb[6].mxu0 %vm296_vm0, %v6035_v13  ;;  %v6107_v41 = vld [vmem:[#allocation3 + $0xf2] sm:$0xff]  ;;  %v6113_v47 = vld [vmem:[#allocation3 + $0xfa] sm:$0xff] }
 0x177   : > { %5185 = vmatprep.mubr.msk.f32.mxu0 %vm296_vm0, %v6042_v14 }
 0x179   : > { %v399_v15 = vpop.trf.xlu1  ;;  %v6046_v16 = vld [vmem:[#allocation3 + $0x109] sm:$0xff] }
 0x17a   : > { %432 = vst.msk [vmem:[#allocation3 + $0x121] sm:$0xff] %vm296_vm0, %v399_v15  ;;  %4956 = vmatprep.mubr.msk.f32.mxu1 %vm296_vm0, %v6046_v16  ;;  %5186 = vmatmul.mubr.msk.f32.gmra.mrb[8].mxu0 %vm296_vm0, %v6048_v18 }
 0x17b   : > { %5188 = vmatprep.mubr.msk.f32.mxu0 %vm296_vm0, %v6055_v19 }
 0x17d   : > { %v400_v20 = vpop.trf.xlu1  ;;  %v6059_v22 = vld [vmem:[#allocation3 + $0x111] sm:$0xff] }
 0x17e   : > { %433 = vst.msk [vmem:[#allocation3 + $0x129] sm:$0xff] %vm296_vm0, %v400_v20  ;;  %4957 = vmatmul.mubr.msk.f32.gmra.mrb[22].mxu1 %vm296_vm0, %v6059_v22  ;;  %5189 = vmatmul.mubr.msk.f32.gmra.mrb[10].mxu0 %vm296_vm0, %v6061_v23  ;;  %v6120_v49 = vld [vmem:[#allocation3 + $0x10a] sm:$0xff]  ;;  %v6126_v55 = vld [vmem:[#allocation3 + $0x112] sm:$0xff] }
 0x17f   : > { %5191 = vmatprep.mubr.msk.f32.mxu0 %vm296_vm0, %v6068_v24 }
 0x181   : > { %v401_v26 = vpop.trf.xlu1  ;;  %v6072_v27 = vld [vmem:[#allocation3 + $0x121] sm:$0xff] }
 0x182   : > { %434 = vst.msk [vmem:[#allocation3 + $0x139] sm:$0xff] %vm296_vm0, %v401_v26  ;;  %4959 = vmatprep.mubr.msk.f32.mxu1 %vm296_vm0, %v6072_v27  ;;  %5192 = vmatmul.mubr.msk.f32.gmra.mrb[12].mxu0 %vm296_vm0, %v6074_v28 }
 0x183   : > { %5194 = vmatprep.mubr.msk.f32.mxu0 %vm296_vm0, %v6081_v29 }
 0x185   : > { %v402_v30 = vpop.trf.xlu1  ;;  %v6085_v31 = vld [vmem:[#allocation3 + $0x129] sm:$0xff] }
 0x186   : > { %435 = vst.msk [vmem:[#allocation3 + $0x141] sm:$0xff] %vm296_vm0, %v402_v30  ;;  %4960 = vmatmul.mubr.msk.f32.gmra.mrb[24].mxu1 %vm296_vm0, %v6085_v31  ;;  %5195 = vmatmul.mubr.msk.f32.gmra.mrb[14].mxu0 %vm296_vm0, %v6087_v32  ;;  %v6133_v57 = vld [vmem:[#allocation3 + $0x122] sm:$0xff]  ;;  %v6139_v3 = vld [vmem:[#allocation3 + $0x12a] sm:$0xff] }
 0x187   : > { %5197 = vmatprep.mubr.msk.f32.mxu0 %vm296_vm0, %v6094_v33  ;;  %v447_v30 = vld [vmem:[#allocation3] sm:$0xff] }
 0x189   : > { %v403_v35 = vpop.trf.xlu1  ;;  %v6098_v37 = vld [vmem:[#allocation3 + $0x139] sm:$0xff] }
 0x18a   : > { %436 = vst.msk [vmem:[#allocation3 + $0x151] sm:$0xff] %vm296_vm0, %v403_v35  ;;  %4962 = vmatprep.mubr.msk.f32.mxu1 %vm296_vm0, %v6098_v37  ;;  %5198 = vmatmul.mubr.msk.f32.gmra.mrb[16].mxu0 %vm296_vm0, %v6100_v39 }
 0x18b   : > { %5200 = vmatprep.mubr.msk.f32.mxu0 %vm296_vm0, %v6107_v41 }
 0x18d   : > { %v404_v43 = vpop.trf.xlu1  ;;  %v6111_v45 = vld [vmem:[#allocation3 + $0x141] sm:$0xff] }
 0x18e   : > { %437 = vst.msk [vmem:[#allocation3 + $0x159] sm:$0xff] %vm296_vm0, %v404_v43  ;;  %4963 = vmatmul.mubr.msk.f32.gmra.mrb[26].mxu1 %vm296_vm0, %v6111_v45  ;;  %5201 = vmatmul.mubr.msk.f32.gmra.mrb[18].mxu0 %vm296_vm0, %v6113_v47  ;;  %v6146_v7 = vld [vmem:[#allocation3 + $0x13a] sm:$0xff]  ;;  %v6152_v20 = vld [vmem:[#allocation3 + $0x142] sm:$0xff] }
 0x18f   : > { %5203 = vmatprep.mubr.msk.f32.mxu0 %vm296_vm0, %v6120_v49 }
 0x191   : > { %v405_v51 = vpop.trf.xlu1  ;;  %v6124_v53 = vld [vmem:[#allocation3 + $0x151] sm:$0xff] }
 0x192   : > { %438 = vst.msk [vmem:[#allocation3 + $0x169] sm:$0xff] %vm296_vm0, %v405_v51  ;;  %4965 = vmatprep.mubr.msk.f32.mxu1 %vm296_vm0, %v6124_v53  ;;  %5204 = vmatmul.mubr.msk.f32.gmra.mrb[20].mxu0 %vm296_vm0, %v6126_v55 }
 0x193   : > { %5206 = vmatprep.mubr.msk.f32.mxu0 %vm296_vm0, %v6133_v57 }
 0x195   : > { %v406_v59 = vpop.trf.xlu1  ;;  %v6137_v62 = vld [vmem:[#allocation3 + $0x159] sm:$0xff] }
 0x196   : > { %6750 = vst [vmem:[#allocation7_spill] sm:$0xff] %v6137_v62  ;;  %439 = vst.msk [vmem:[#allocation3 + $0x171] sm:$0xff] %vm296_vm0, %v406_v59  ;;  %4966 = vmatmul.mubr.msk.f32.gmra.mrb[28].mxu1 %vm296_vm0, %v6137_v62  ;;  %5207 = vmatmul.mubr.msk.f32.gmra.mrb[22].mxu0 %vm296_vm0, %v6139_v3  ;;  %v6159_v26 = vld [vmem:[#allocation3 + $0x152] sm:$0xff]  ;;  %v6165_v51 = vld [vmem:[#allocation3 + $0x15a] sm:$0xff] }
 0x197   : > { %5209 = vmatprep.mubr.msk.f32.mxu0 %vm296_vm0, %v6146_v7 }
 0x199   : > { %v407_v11 = vpop.trf.xlu1  ;;  %v6150_v15 = vld [vmem:[#allocation3 + $0x169] sm:$0xff] }
 0x19a   : > { %6751 = vst [vmem:[#allocation8_spill] sm:$0xff] %v6150_v15  ;;  %440 = vst.msk [vmem:[#allocation3 + $0x181] sm:$0xff] %vm296_vm0, %v407_v11  ;;  %4968 = vmatprep.mubr.msk.f32.mxu1 %vm296_vm0, %v6150_v15  ;;  %5210 = vmatmul.mubr.msk.f32.gmra.mrb[24].mxu0 %vm296_vm0, %v6152_v20  ;;  %v448_v11 = vld [vmem:[#allocation3 + $0x8] sm:$0xff] }
 0x19b   : > { %5212 = vmatprep.mubr.msk.f32.mxu0 %vm296_vm0, %v6159_v26  ;;  %v6182_v15 = vld [vmem:[%s6707_s1 + $0xc] sm:$0xf] }
 0x19d   : > { %v408_v35 = vpop.trf.xlu1  ;;  %v6163_v43 = vld [vmem:[#allocation3 + $0x171] sm:$0xff] }
 0x19e   : > { %6752 = vst [vmem:[#allocation9_spill] sm:$0xff] %v6163_v43  ;;  %v6167_v59 = vld [vmem:[#allocation3 + $0x16a] sm:$0xff]  ;;  %441 = vst.msk [vmem:[#allocation3 + $0x189] sm:$0xff] %vm296_vm0, %v408_v35  ;;  %4969 = vmatmul.mubr.msk.f32.gmra.mrb[30].mxu1 %vm296_vm0, %v6163_v43  ;;  %5213 = vmatmul.mubr.msk.f32.gmra.mrb[26].mxu0 %vm296_vm0, %v6165_v51  ;;  %v6177_v17 = vld [vmem:[#allocation3 + $0x172] sm:$0xff] }
 0x19f   : > { %5215 = vmatprep.mubr.msk.f32.mxu0 %vm296_vm0, %v6167_v59  ;;  %4973 = vmatprep.mubr.msk.f32.mxu1 %vm296_vm0, %v447_v30  ;;  %v6187_v35 = vld [vmem:[#allocation3 + $0x18] sm:$0xff]  ;;  %v6195_v30 = vld [vmem:[#allocation3 + $0x20] sm:$0xff] }
 0x1a0   : > { %6753 = vst [vmem:[#allocation10_spill] sm:$0xff] %v6187_v35  ;;  %6754 = vst [vmem:[#allocation11_spill] sm:$0xff] %v6195_v30 }
 0x1a2   : > { %4974 = vmatmul.mubr.msk.f32.vlgmr.msra.gmra.mrb[0].mxu1 %vm296_vm0, %v448_v11  ;;  %5216 = vmatmul.mubr.msk.f32.gmra.mrb[28].mxu0 %vm296_vm0, %v6177_v17  ;;  %v6205_v11 = vld [vmem:[#allocation3 + $0x30] sm:$0xff] }
 0x1a3   : > { %5022 = vmatpush3.msk.msra.mxu1 %vm611_vm3, %v5863_v25  ;;  %4976 = vmatprep.mubr.msk.f32.mxu1 %vm296_vm0, %v6187_v35  ;;  %6757 = vst [vmem:[#allocation14_spill] sm:$0xff] %v6205_v11  ;;  %v6213_v25 = vld [vmem:[#allocation3 + $0x38] sm:$0xff]  ;;  %v1165_v35 = vld [vmem:[#allocation3 + $0xa] sm:$0xff] }
 0x1a4   : > { %5071 = vmatprep.subr.msk.mxu1 %vm611_vm3, %v6182_v15  ;;  %6758 = vst [vmem:[#allocation15_spill] sm:$0xff] %v6213_v25 }
 0x1a5   : > { %v6197_v43 = vld [vmem:[#allocation3 + $0x182] sm:$0xff]  ;;  %v6199_v62 = vld [vmem:[#allocation3 + $0x18a] sm:$0xff] }
 0x1a6   : > { %6755 = vst [vmem:[#allocation12_spill] sm:$0xff] %v6197_v43  ;;  %6756 = vst [vmem:[#allocation13_spill] sm:$0xff] %v6199_v62  ;;  %4977 = vmatmul.mubr.msk.f32.gmra.mrb[2].mxu1 %vm296_vm0, %v6195_v30  ;;  %5218 = vmatprep.mubr.msk.f32.mxu0 %vm296_vm0, %v6197_v43  ;;  %v6217_v30 = vld [vmem:[#allocation3 + $0x48] sm:$0xff]  ;;  %v6222_v43 = vld [vmem:[%s6707_s1 + $0x20] sm:$0xf] }
 0x1a7   : > { %4979 = vmatprep.mubr.msk.f32.mxu1 %vm296_vm0, %v6205_v11  ;;  %5219 = vmatmul.mubr.msk.f32.gmra.mrb[30].mxu0 %vm296_vm0, %v6199_v62  ;;  %6759 = vst [vmem:[#allocation16_spill] sm:$0xff] %v6217_v30  ;;  %v6232_v62 = vld [vmem:[#allocation3 + $0x50] sm:$0xff] }
 0x1a8   : > { %5223 = vmatprep.mubr.msk.f32.mxu0 %vm296_vm0, %v6205_v11  ;;  %6760 = vst [vmem:[#allocation17_spill] sm:$0xff] %v6232_v62  ;;  %v6238_v11 = vld [vmem:[#allocation3 + $0x60] sm:$0xff] }
 0x1a9   : > { %6761 = vst [vmem:[#allocation18_spill] sm:$0xff] %v6238_v11 }
 0x1aa   : > { %4980 = vmatmul.mubr.msk.f32.gmra.mrb[4].mxu1 %vm296_vm0, %v6213_v25 }
 0x1ab   : > { %4982 = vmatprep.mubr.msk.f32.mxu1 %vm296_vm0, %v6217_v30  ;;  %5224 = vmatmul.mubr.msk.f32.vlgmr.msra.gmra.mrb[0].mxu0 %vm296_vm0, %v6213_v25  ;;  %v6378_v25 = vld [vmem:[#allocation3 + $0x170] sm:$0xff] }
 0x1ac   : > { %5226 = vmatprep.mubr.msk.f32.mxu0 %vm296_vm0, %v6217_v30  ;;  %5272 = vmatpush3.msk.msra.mxu0 %vm611_vm3, %v5992_v1  ;;  %v6246_v1 = vld [vmem:[#allocation3 + $0x68] sm:$0xff]  ;;  %v6250_v30 = vld [vmem:[#allocation3 + $0x78] sm:$0xff] }
 0x1ad   : > { %5321 = vmatprep.subr.msk.mxu0 %vm611_vm3, %v6222_v43  ;;  %6762 = vst [vmem:[#allocation19_spill] sm:$0xff] %v6246_v1  ;;  %6763 = vst [vmem:[#allocation20_spill] sm:$0xff] %v6250_v30 }
 0x1ae   : > { %4983 = vmatmul.mubr.msk.f32.gmra.mrb[6].mxu1 %vm296_vm0, %v6232_v62 }
 0x1af   : > { %4985 = vmatprep.mubr.msk.f32.mxu1 %vm296_vm0, %v6238_v11  ;;  %5227 = vmatmul.mubr.msk.f32.gmra.mrb[2].mxu0 %vm296_vm0, %v6232_v62  ;;  %v6258_v62 = vld [vmem:[#allocation3 + $0x80] sm:$0xff] }
 0x1b0   : > { %5229 = vmatprep.mubr.msk.f32.mxu0 %vm296_vm0, %v6238_v11  ;;  %6764 = vst [vmem:[#allocation21_spill] sm:$0xff] %v6258_v62  ;;  %v6262_v11 = vld [vmem:[#allocation3 + $0x90] sm:$0xff] }
 0x1b1   : > { %6765 = vst [vmem:[#allocation22_spill] sm:$0xff] %v6262_v11 }
 0x1b2   : > { %4986 = vmatmul.mubr.msk.f32.gmra.mrb[8].mxu1 %vm296_vm0, %v6246_v1 }
 0x1b3   : > { %4988 = vmatprep.mubr.msk.f32.mxu1 %vm296_vm0, %v6250_v30  ;;  %5230 = vmatmul.mubr.msk.f32.gmra.mrb[4].mxu0 %vm296_vm0, %v6246_v1  ;;  %v6270_v1 = vld [vmem:[#allocation3 + $0x98] sm:$0xff] }
 0x1b4   : > { %5232 = vmatprep.mubr.msk.f32.mxu0 %vm296_vm0, %v6250_v30  ;;  %6766 = vst [vmem:[#allocation23_spill] sm:$0xff] %v6270_v1  ;;  %v6274_v30 = vld [vmem:[#allocation3 + $0xa8] sm:$0xff] }
 0x1b5   : > { %6767 = vst [vmem:[#allocation24_spill] sm:$0xff] %v6274_v30 }
 0x1b6   : > { %4989 = vmatmul.mubr.msk.f32.gmra.mrb[10].mxu1 %vm296_vm0, %v6258_v62 }
 0x1b7   : > { %4991 = vmatprep.mubr.msk.f32.mxu1 %vm296_vm0, %v6262_v11  ;;  %5233 = vmatmul.mubr.msk.f32.gmra.mrb[6].mxu0 %vm296_vm0, %v6258_v62  ;;  %v6282_v62 = vld [vmem:[#allocation3 + $0xb0] sm:$0xff] }
 0x1b8   : > { %5235 = vmatprep.mubr.msk.f32.mxu0 %vm296_vm0, %v6262_v11  ;;  %6768 = vst [vmem:[#allocation25_spill] sm:$0xff] %v6282_v62  ;;  %v6286_v11 = vld [vmem:[#allocation3 + $0xc0] sm:$0xff] }
 0x1b9   : > { %6769 = vst [vmem:[#allocation26_spill] sm:$0xff] %v6286_v11 }
 0x1ba   : > { %4992 = vmatmul.mubr.msk.f32.gmra.mrb[12].mxu1 %vm296_vm0, %v6270_v1 }
 0x1bb   : > { %4994 = vmatprep.mubr.msk.f32.mxu1 %vm296_vm0, %v6274_v30  ;;  %5236 = vmatmul.mubr.msk.f32.gmra.mrb[8].mxu0 %vm296_vm0, %v6270_v1  ;;  %v6294_v1 = vld [vmem:[#allocation3 + $0xc8] sm:$0xff] }
 0x1bc   : > { %5238 = vmatprep.mubr.msk.f32.mxu0 %vm296_vm0, %v6274_v30  ;;  %6770 = vst [vmem:[#allocation27_spill] sm:$0xff] %v6294_v1  ;;  %v6298_v30 = vld [vmem:[#allocation3 + $0xd8] sm:$0xff] }
 0x1bd   : > { %6771 = vst [vmem:[#allocation28_spill] sm:$0xff] %v6298_v30 }
 0x1be   : > { %4995 = vmatmul.mubr.msk.f32.gmra.mrb[14].mxu1 %vm296_vm0, %v6282_v62 }
 0x1bf   : > { %4997 = vmatprep.mubr.msk.f32.mxu1 %vm296_vm0, %v6286_v11  ;;  %5239 = vmatmul.mubr.msk.f32.gmra.mrb[10].mxu0 %vm296_vm0, %v6282_v62  ;;  %v6306_v62 = vld [vmem:[#allocation3 + $0xe0] sm:$0xff] }
 0x1c0   : > { %5241 = vmatprep.mubr.msk.f32.mxu0 %vm296_vm0, %v6286_v11  ;;  %6772 = vst [vmem:[#allocation29_spill] sm:$0xff] %v6306_v62  ;;  %v6310_v11 = vld [vmem:[#allocation3 + $0xf0] sm:$0xff] }
 0x1c1   : > { %6773 = vst [vmem:[#allocation30_spill] sm:$0xff] %v6310_v11 }
 0x1c2   : > { %4998 = vmatmul.mubr.msk.f32.gmra.mrb[16].mxu1 %vm296_vm0, %v6294_v1 }
 0x1c3   : > { %5000 = vmatprep.mubr.msk.f32.mxu1 %vm296_vm0, %v6298_v30  ;;  %5242 = vmatmul.mubr.msk.f32.gmra.mrb[12].mxu0 %vm296_vm0, %v6294_v1  ;;  %v6318_v1 = vld [vmem:[#allocation3 + $0xf8] sm:$0xff] }
 0x1c4   : > { %5244 = vmatprep.mubr.msk.f32.mxu0 %vm296_vm0, %v6298_v30  ;;  %6774 = vst [vmem:[#allocation31_spill] sm:$0xff] %v6318_v1  ;;  %v6322_v30 = vld [vmem:[#allocation3 + $0x108] sm:$0xff] }
 0x1c5   : > { %6775 = vst [vmem:[#allocation32_spill] sm:$0xff] %v6322_v30 }
 0x1c6   : > { %5001 = vmatmul.mubr.msk.f32.gmra.mrb[18].mxu1 %vm296_vm0, %v6306_v62 }
 0x1c7   : > { %5003 = vmatprep.mubr.msk.f32.mxu1 %vm296_vm0, %v6310_v11  ;;  %5245 = vmatmul.mubr.msk.f32.gmra.mrb[14].mxu0 %vm296_vm0, %v6306_v62  ;;  %v6330_v62 = vld [vmem:[#allocation3 + $0x110] sm:$0xff] }
 0x1c8   : > { %5247 = vmatprep.mubr.msk.f32.mxu0 %vm296_vm0, %v6310_v11  ;;  %6776 = vst [vmem:[#allocation33_spill] sm:$0xff] %v6330_v62  ;;  %v6334_v11 = vld [vmem:[#allocation3 + $0x120] sm:$0xff] }
 0x1c9   : > { %6777 = vst [vmem:[#allocation34_spill] sm:$0xff] %v6334_v11 }
 0x1ca   : > { %5004 = vmatmul.mubr.msk.f32.gmra.mrb[20].mxu1 %vm296_vm0, %v6318_v1 }
 0x1cb   : > { %5006 = vmatprep.mubr.msk.f32.mxu1 %vm296_vm0, %v6322_v30  ;;  %5248 = vmatmul.mubr.msk.f32.gmra.mrb[16].mxu0 %vm296_vm0, %v6318_v1  ;;  %v6342_v1 = vld [vmem:[#allocation3 + $0x128] sm:$0xff] }
 0x1cc   : > { %5250 = vmatprep.mubr.msk.f32.mxu0 %vm296_vm0, %v6322_v30  ;;  %6778 = vst [vmem:[#allocation35_spill] sm:$0xff] %v6342_v1  ;;  %v6346_v30 = vld [vmem:[#allocation3 + $0x138] sm:$0xff] }
 0x1cd   : > { %6779 = vst [vmem:[#allocation36_spill] sm:$0xff] %v6346_v30 }
 0x1ce   : > { %5007 = vmatmul.mubr.msk.f32.gmra.mrb[22].mxu1 %vm296_vm0, %v6330_v62 }
 0x1cf   : > { %5009 = vmatprep.mubr.msk.f32.mxu1 %vm296_vm0, %v6334_v11  ;;  %5251 = vmatmul.mubr.msk.f32.gmra.mrb[18].mxu0 %vm296_vm0, %v6330_v62  ;;  %v6354_v62 = vld [vmem:[#allocation3 + $0x140] sm:$0xff] }
 0x1d0   : > { %5253 = vmatprep.mubr.msk.f32.mxu0 %vm296_vm0, %v6334_v11  ;;  %6780 = vst [vmem:[#allocation37_spill] sm:$0xff] %v6354_v62  ;;  %v6358_v11 = vld [vmem:[#allocation3 + $0x150] sm:$0xff] }
 0x1d1   : > { %6781 = vst [vmem:[#allocation38_spill] sm:$0xff] %v6358_v11 }
 0x1d2   : > { %5010 = vmatmul.mubr.msk.f32.gmra.mrb[24].mxu1 %vm296_vm0, %v6342_v1 }
 0x1d3   : > { %5012 = vmatprep.mubr.msk.f32.mxu1 %vm296_vm0, %v6346_v30  ;;  %5254 = vmatmul.mubr.msk.f32.gmra.mrb[20].mxu0 %vm296_vm0, %v6342_v1  ;;  %v6366_v1 = vld [vmem:[#allocation3 + $0x158] sm:$0xff] }
 0x1d4   : > { %5256 = vmatprep.mubr.msk.f32.mxu0 %vm296_vm0, %v6346_v30  ;;  %6782 = vst [vmem:[#allocation39_spill] sm:$0xff] %v6366_v1  ;;  %v6370_v30 = vld [vmem:[#allocation3 + $0x168] sm:$0xff] }
 0x1d5   : > { %6783 = vst [vmem:[#allocation40_spill] sm:$0xff] %v6370_v30 }
 0x1d6   : > { %5013 = vmatmul.mubr.msk.f32.gmra.mrb[26].mxu1 %vm296_vm0, %v6354_v62 }
 0x1d7   : > { %5015 = vmatprep.mubr.msk.f32.mxu1 %vm296_vm0, %v6358_v11  ;;  %5257 = vmatmul.mubr.msk.f32.gmra.mrb[22].mxu0 %vm296_vm0, %v6354_v62  ;;  %v1164_v62 = vld [vmem:[#allocation3 + $0x2] sm:$0xff] }
 0x1d8   : > { %5259 = vmatprep.mubr.msk.f32.mxu0 %vm296_vm0, %v6358_v11  ;;  %v6384_v11 = vld [vmem:[#allocation3 + $0x180] sm:$0xff] }
 0x1da   : > { %5016 = vmatmul.mubr.msk.f32.gmra.mrb[28].mxu1 %vm296_vm0, %v6366_v1 }
 0x1db   : > { %5018 = vmatprep.mubr.msk.f32.mxu1 %vm296_vm0, %v6370_v30  ;;  %5260 = vmatmul.mubr.msk.f32.gmra.mrb[24].mxu0 %vm296_vm0, %v6366_v1  ;;  %v6394_v1 = vld [vmem:[#allocation3 + $0x188] sm:$0xff] }
 0x1dc   : > { %5262 = vmatprep.mubr.msk.f32.mxu0 %vm296_vm0, %v6370_v30  ;;  %v4451_v30 = vld [vmem:[#allocation3 + $0x198] sm:$0xff] }
 0x1de   : > { %5019 = vmatmul.mubr.msk.f32.gmra.mrb[30].mxu1 %vm296_vm0, %v6378_v25 }
 0x1df   : > { %5263 = vmatmul.mubr.msk.f32.gmra.mrb[26].mxu0 %vm296_vm0, %v6378_v25  ;;  %5023 = vmatprep.mubr.msk.f32.mxu1 %vm296_vm0, %v1164_v62  ;;  %v4452_v62 = vld [vmem:[#allocation3 + $0x1a0] sm:$0xff] }
 0x1e0   : > { %5265 = vmatprep.mubr.msk.f32.mxu0 %vm296_vm0, %v6384_v11 }
 0x1e2   : > { %5024 = vmatmul.mubr.msk.f32.vlgmr.msra.gmra.mrb[0].mxu1 %vm296_vm0, %v1165_v35 }
 0x1e3   : > { %5072 = vmatpush3.msk.msra.mxu1 %vm611_vm3, %v6182_v15  ;;  %5026 = vmatprep.mubr.msk.f32.mxu1 %vm296_vm0, %v5981_v61  ;;  %v6795_v61 = vld [vmem:[#allocation20_spill] sm:$0xff] }
 0x1e4   : > { %5266 = vmatmul.mubr.msk.f32.gmra.mrb[28].mxu0 %vm296_vm0, %v6394_v1  ;;  %5371 = vmatprep.subr.msk.mxu1 %vm611_vm3, %v5845_v21 }
 0x1e5   : > { %5268 = vmatprep.mubr.msk.f32.mxu0 %vm296_vm0, %v4451_v30 }
 0x1e6   : > { %5027 = vmatmul.mubr.msk.f32.gmra.mrb[2].mxu1 %vm296_vm0, %v5987_v0  ;;  %v6796_v0 = vld [vmem:[#allocation21_spill] sm:$0xff] }
 0x1e7   : > { %5029 = vmatprep.mubr.msk.f32.mxu1 %vm296_vm0, %v5999_v2 }
 0x1e8   : > { %5269 = vmatmul.mubr.msk.f32.gmra.mrb[30].mxu0 %vm296_vm0, %v4452_v62 }
 0x1e9   : > { %5273 = vmatprep.mubr.msk.f32.mxu0 %vm296_vm0, %v5883_v34  ;;  %v6784_v34 = vld [vmem:[#allocation7_spill] sm:$0xff] }
 0x1ea   : > { %5030 = vmatmul.mubr.msk.f32.gmra.mrb[4].mxu1 %vm296_vm0, %v6009_v5 }
 0x1eb   : > { %5032 = vmatprep.mubr.msk.f32.mxu1 %vm296_vm0, %v6016_v6 }
 0x1ec   : > { %5274 = vmatmul.mubr.msk.f32.vlgmr.msra.gmra.mrb[0].mxu0 %vm296_vm0, %v5890_v36  ;;  %v6785_v36 = vld [vmem:[#allocation8_spill] sm:$0xff] }
 0x1ed   : > { %5276 = vmatprep.mubr.msk.f32.mxu0 %vm296_vm0, %v5897_v38  ;;  %5322 = vmatpush3.msk.msra.mxu0 %vm611_vm3, %v6222_v43  ;;  %v6786_v38 = vld [vmem:[#allocation10_spill] sm:$0xff] }
 0x1ee   : > { %5033 = vmatmul.mubr.msk.f32.gmra.mrb[6].mxu1 %vm296_vm0, %v6022_v9 }
 0x1ef   : > { %5035 = vmatprep.mubr.msk.f32.mxu1 %vm296_vm0, %v6029_v10 }
 0x1f0   : > { %5277 = vmatmul.mubr.msk.f32.gmra.mrb[2].mxu0 %vm296_vm0, %v5904_v40  ;;  %v6787_v40 = vld [vmem:[#allocation9_spill] sm:$0xff] }
 0x1f1   : > { %5279 = vmatprep.mubr.msk.f32.mxu0 %vm296_vm0, %v5911_v42  ;;  %v6520_v42 = vld [vmem:[#allocation3 + $0x181] sm:$0xff] }
 0x1f2   : > { %5036 = vmatmul.mubr.msk.f32.gmra.mrb[8].mxu1 %vm296_vm0, %v6035_v13 }
 0x1f3   : > { %5038 = vmatprep.mubr.msk.f32.mxu1 %vm296_vm0, %v6042_v14 }
 0x1f4   : > { %5280 = vmatmul.mubr.msk.f32.gmra.mrb[4].mxu0 %vm296_vm0, %v5918_v44  ;;  %v6788_v44 = vld [vmem:[#allocation11_spill] sm:$0xff] }
 0x1f5   : > { %5282 = vmatprep.mubr.msk.f32.mxu0 %vm296_vm0, %v5925_v46  ;;  %v4517_v46 = vld [vmem:[#allocation3 + $0x199] sm:$0xff] }
 0x1f6   : > { %5039 = vmatmul.mubr.msk.f32.gmra.mrb[10].mxu1 %vm296_vm0, %v6048_v18 }
 0x1f7   : > { %5041 = vmatprep.mubr.msk.f32.mxu1 %vm296_vm0, %v6055_v19 }
 0x1f8   : > { %5283 = vmatmul.mubr.msk.f32.gmra.mrb[6].mxu0 %vm296_vm0, %v5932_v48  ;;  %v6789_v48 = vld [vmem:[#allocation14_spill] sm:$0xff] }
 0x1f9   : > { %5285 = vmatprep.mubr.msk.f32.mxu0 %vm296_vm0, %v5939_v50  ;;  %v6530_v50 = vld [vmem:[#allocation3 + $0x189] sm:$0xff] }
 0x1fa   : > { %5042 = vmatmul.mubr.msk.f32.gmra.mrb[12].mxu1 %vm296_vm0, %v6061_v23 }
 0x1fb   : > { %5044 = vmatprep.mubr.msk.f32.mxu1 %vm296_vm0, %v6068_v24 }
 0x1fc   : > { %5286 = vmatmul.mubr.msk.f32.gmra.mrb[8].mxu0 %vm296_vm0, %v5946_v52  ;;  %v4518_v52 = vld [vmem:[#allocation3 + $0x1a1] sm:$0xff] }
 0x1fd   : > { %5288 = vmatprep.mubr.msk.f32.mxu0 %vm296_vm0, %v5953_v54  ;;  %v6790_v54 = vld [vmem:[#allocation15_spill] sm:$0xff] }
 0x1fe   : > { %5045 = vmatmul.mubr.msk.f32.gmra.mrb[14].mxu1 %vm296_vm0, %v6074_v28 }
 0x1ff   : > { %5047 = vmatprep.mubr.msk.f32.mxu1 %vm296_vm0, %v6081_v29 }
 0x200   : > { %5289 = vmatmul.mubr.msk.f32.gmra.mrb[10].mxu0 %vm296_vm0, %v5960_v56  ;;  %v6791_v56 = vld [vmem:[#allocation16_spill] sm:$0xff] }
 0x201   : > { %5291 = vmatprep.mubr.msk.f32.mxu0 %vm296_vm0, %v5967_v58  ;;  %v6793_v58 = vld [vmem:[#allocation18_spill] sm:$0xff] }
 0x202   : > { %5048 = vmatmul.mubr.msk.f32.gmra.mrb[16].mxu1 %vm296_vm0, %v6087_v32 }
 0x203   : > { %5050 = vmatprep.mubr.msk.f32.mxu1 %vm296_vm0, %v6094_v33 }
 0x204   : > { %5292 = vmatmul.mubr.msk.f32.gmra.mrb[12].mxu0 %vm296_vm0, %v5974_v60  ;;  %v6794_v60 = vld [vmem:[#allocation19_spill] sm:$0xff] }
 0x205   : > { %5294 = vmatprep.mubr.msk.f32.mxu0 %vm296_vm0, %v5985_v63 }
 0x206   : > { %5051 = vmatmul.mubr.msk.f32.gmra.mrb[18].mxu1 %vm296_vm0, %v6100_v39 }
 0x207   : > { %5053 = vmatprep.mubr.msk.f32.mxu1 %vm296_vm0, %v6107_v41 }
 0x208   : > { %5295 = vmatmul.mubr.msk.f32.gmra.mrb[14].mxu0 %vm296_vm0, %v6007_v4 }
 0x209   : > { %5297 = vmatprep.mubr.msk.f32.mxu0 %vm296_vm0, %v6020_v8 }
 0x20a   : > { %5054 = vmatmul.mubr.msk.f32.gmra.mrb[20].mxu1 %vm296_vm0, %v6113_v47 }
 0x20b   : > { %5056 = vmatprep.mubr.msk.f32.mxu1 %vm296_vm0, %v6120_v49 }
 0x20c   : > { %5298 = vmatmul.mubr.msk.f32.gmra.mrb[16].mxu0 %vm296_vm0, %v6033_v12 }
 0x20d   : > { %5300 = vmatprep.mubr.msk.f32.mxu0 %vm296_vm0, %v6046_v16 }
 0x20e   : > { %5057 = vmatmul.mubr.msk.f32.gmra.mrb[22].mxu1 %vm296_vm0, %v6126_v55 }
 0x20f   : > { %5059 = vmatprep.mubr.msk.f32.mxu1 %vm296_vm0, %v6133_v57 }
 0x210   : > { %5301 = vmatmul.mubr.msk.f32.gmra.mrb[18].mxu0 %vm296_vm0, %v6059_v22 }
 0x211   : > { %5303 = vmatprep.mubr.msk.f32.mxu0 %vm296_vm0, %v6072_v27 }
 0x212   : > { %5060 = vmatmul.mubr.msk.f32.gmra.mrb[24].mxu1 %vm296_vm0, %v6139_v3 }
 0x213   : > { %5062 = vmatprep.mubr.msk.f32.mxu1 %vm296_vm0, %v6146_v7 }
 0x214   : > { %5304 = vmatmul.mubr.msk.f32.gmra.mrb[20].mxu0 %vm296_vm0, %v6085_v31 }
 0x215   : > { %5306 = vmatprep.mubr.msk.f32.mxu0 %vm296_vm0, %v6098_v37 }
 0x216   : > { %5063 = vmatmul.mubr.msk.f32.gmra.mrb[26].mxu1 %vm296_vm0, %v6152_v20 }
 0x217   : > { %5065 = vmatprep.mubr.msk.f32.mxu1 %vm296_vm0, %v6159_v26 }
 0x218   : > { %5307 = vmatmul.mubr.msk.f32.gmra.mrb[22].mxu0 %vm296_vm0, %v6111_v45 }
 0x219   : > { %5309 = vmatprep.mubr.msk.f32.mxu0 %vm296_vm0, %v6124_v53 }
 0x21a   : > { %5066 = vmatmul.mubr.msk.f32.gmra.mrb[28].mxu1 %vm296_vm0, %v6165_v51 }
 0x21b   : > { %5068 = vmatprep.mubr.msk.f32.mxu1 %vm296_vm0, %v6167_v59 }
 0x21c   : > { %5310 = vmatmul.mubr.msk.f32.gmra.mrb[24].mxu0 %vm296_vm0, %v6784_v34 }
 0x21d   : > { %5312 = vmatprep.mubr.msk.f32.mxu0 %vm296_vm0, %v6785_v36 }
 0x21e   : > { %5069 = vmatmul.mubr.msk.f32.gmra.mrb[30].mxu1 %vm296_vm0, %v6177_v17 }
 0x21f   : > { %5073 = vmatprep.mubr.msk.f32.mxu1 %vm296_vm0, %v6786_v38 }
 0x220   : > { %5313 = vmatmul.mubr.msk.f32.gmra.mrb[26].mxu0 %vm296_vm0, %v6787_v40 }
 0x221   : > { %5315 = vmatprep.mubr.msk.f32.mxu0 %vm296_vm0, %v6520_v42 }
 0x222   : > { %5074 = vmatmul.mubr.msk.f32.vlgmr.msra.gmra.mrb[0].mxu1 %vm296_vm0, %v6788_v44 }
 0x223   : > { %5372 = vmatpush3.msk.msra.mxu1 %vm611_vm3, %v5845_v21  ;;  %5076 = vmatprep.mubr.msk.f32.mxu1 %vm296_vm0, %v6789_v48  ;;  %v6792_v21 = vld [vmem:[#allocation17_spill] sm:$0xff] }
 0x224   : > { %5316 = vmatmul.mubr.msk.f32.gmra.mrb[28].mxu0 %vm296_vm0, %v6530_v50 }
 0x225   : > { %5318 = vmatprep.mubr.msk.f32.mxu0 %vm296_vm0, %v4517_v46 }
 0x226   : > { %5077 = vmatmul.mubr.msk.f32.gmra.mrb[2].mxu1 %vm296_vm0, %v6790_v54 }
 0x227   : > { %5079 = vmatprep.mubr.msk.f32.mxu1 %vm296_vm0, %v6791_v56 }
 0x228   : > { %5319 = vmatmul.mubr.msk.f32.gmra.mrb[30].mxu0 %vm296_vm0, %v4518_v52 }
 0x229   : > { %5323 = vmatprep.mubr.msk.f32.mxu0 %vm296_vm0, %v5999_v2  ;;  %v6797_v2 = vld [vmem:[#allocation22_spill] sm:$0xff] }
 0x22a   : > { %5080 = vmatmul.mubr.msk.f32.gmra.mrb[4].mxu1 %vm296_vm0, %v6792_v21 }
 0x22b   : > { %5082 = vmatprep.mubr.msk.f32.mxu1 %vm296_vm0, %v6793_v58 }
 0x22c   : > { %5324 = vmatmul.mubr.msk.f32.vlgmr.msra.gmra.mrb[0].mxu0 %vm296_vm0, %v6009_v5  ;;  %v6798_v5 = vld [vmem:[#allocation23_spill] sm:$0xff] }
 0x22d   : > { %5326 = vmatprep.mubr.msk.f32.mxu0 %vm296_vm0, %v6016_v6  ;;  %v6799_v6 = vld [vmem:[#allocation24_spill] sm:$0xff] }
 0x22e   : > { %5083 = vmatmul.mubr.msk.f32.gmra.mrb[6].mxu1 %vm296_vm0, %v6794_v60 }
 0x22f   : > { %5085 = vmatprep.mubr.msk.f32.mxu1 %vm296_vm0, %v6795_v61 }
 0x230   : > { %5327 = vmatmul.mubr.msk.f32.gmra.mrb[2].mxu0 %vm296_vm0, %v6022_v9  ;;  %v6800_v9 = vld [vmem:[#allocation25_spill] sm:$0xff] }
 0x231   : > { %5329 = vmatprep.mubr.msk.f32.mxu0 %vm296_vm0, %v6029_v10  ;;  %v6801_v10 = vld [vmem:[#allocation26_spill] sm:$0xff] }
 0x232   : > { %5086 = vmatmul.mubr.msk.f32.gmra.mrb[8].mxu1 %vm296_vm0, %v6796_v0 }
 0x233   : > { %5088 = vmatprep.mubr.msk.f32.mxu1 %vm296_vm0, %v6797_v2 }
 0x234   : > { %5330 = vmatmul.mubr.msk.f32.gmra.mrb[4].mxu0 %vm296_vm0, %v6035_v13  ;;  %v6802_v13 = vld [vmem:[#allocation27_spill] sm:$0xff] }
 0x235   : > { %5332 = vmatprep.mubr.msk.f32.mxu0 %vm296_vm0, %v6042_v14  ;;  %v6803_v14 = vld [vmem:[#allocation28_spill] sm:$0xff] }
 0x236   : > { %5089 = vmatmul.mubr.msk.f32.gmra.mrb[10].mxu1 %vm296_vm0, %v6798_v5 }
 0x237   : > { %5091 = vmatprep.mubr.msk.f32.mxu1 %vm296_vm0, %v6799_v6 }
 0x238   : > { %5333 = vmatmul.mubr.msk.f32.gmra.mrb[6].mxu0 %vm296_vm0, %v6048_v18  ;;  %v6804_v18 = vld [vmem:[#allocation29_spill] sm:$0xff] }
 0x239   : > { %5335 = vmatprep.mubr.msk.f32.mxu0 %vm296_vm0, %v6055_v19  ;;  %v6805_v19 = vld [vmem:[#allocation30_spill] sm:$0xff] }
 0x23a   : > { %5092 = vmatmul.mubr.msk.f32.gmra.mrb[12].mxu1 %vm296_vm0, %v6800_v9 }
 0x23b   : > { %5094 = vmatprep.mubr.msk.f32.mxu1 %vm296_vm0, %v6801_v10 }
 0x23c   : > { %5336 = vmatmul.mubr.msk.f32.gmra.mrb[8].mxu0 %vm296_vm0, %v6061_v23  ;;  %v6806_v23 = vld [vmem:[#allocation31_spill] sm:$0xff] }
 0x23d   : > { %5338 = vmatprep.mubr.msk.f32.mxu0 %vm296_vm0, %v6068_v24  ;;  %v6807_v24 = vld [vmem:[#allocation32_spill] sm:$0xff] }
 0x23e   : > { %5095 = vmatmul.mubr.msk.f32.gmra.mrb[14].mxu1 %vm296_vm0, %v6802_v13 }
 0x23f   : > { %5097 = vmatprep.mubr.msk.f32.mxu1 %vm296_vm0, %v6803_v14 }
 0x240   : > { %5339 = vmatmul.mubr.msk.f32.gmra.mrb[10].mxu0 %vm296_vm0, %v6074_v28  ;;  %v6808_v28 = vld [vmem:[#allocation33_spill] sm:$0xff] }
 0x241   : > { %5341 = vmatprep.mubr.msk.f32.mxu0 %vm296_vm0, %v6081_v29  ;;  %v6809_v29 = vld [vmem:[#allocation34_spill] sm:$0xff] }
 0x242   : > { %5098 = vmatmul.mubr.msk.f32.gmra.mrb[16].mxu1 %vm296_vm0, %v6804_v18 }
 0x243   : > { %5100 = vmatprep.mubr.msk.f32.mxu1 %vm296_vm0, %v6805_v19 }
 0x244   : > { %5342 = vmatmul.mubr.msk.f32.gmra.mrb[12].mxu0 %vm296_vm0, %v6087_v32  ;;  %v6810_v32 = vld [vmem:[#allocation35_spill] sm:$0xff] }
 0x245   : > { %5344 = vmatprep.mubr.msk.f32.mxu0 %vm296_vm0, %v6094_v33  ;;  %v6811_v33 = vld [vmem:[#allocation36_spill] sm:$0xff] }
 0x246   : > { %5101 = vmatmul.mubr.msk.f32.gmra.mrb[18].mxu1 %vm296_vm0, %v6806_v23 }
 0x247   : > { %5103 = vmatprep.mubr.msk.f32.mxu1 %vm296_vm0, %v6807_v24 }
 0x248   : > { %5345 = vmatmul.mubr.msk.f32.gmra.mrb[14].mxu0 %vm296_vm0, %v6100_v39  ;;  %v6812_v39 = vld [vmem:[#allocation37_spill] sm:$0xff] }
 0x249   : > { %5347 = vmatprep.mubr.msk.f32.mxu0 %vm296_vm0, %v6107_v41  ;;  %v6813_v41 = vld [vmem:[#allocation38_spill] sm:$0xff] }
 0x24a   : > { %5104 = vmatmul.mubr.msk.f32.gmra.mrb[20].mxu1 %vm296_vm0, %v6808_v28 }
 0x24b   : > { %5106 = vmatprep.mubr.msk.f32.mxu1 %vm296_vm0, %v6809_v29 }
 0x24c   : > { %5348 = vmatmul.mubr.msk.f32.gmra.mrb[16].mxu0 %vm296_vm0, %v6113_v47  ;;  %v6814_v47 = vld [vmem:[#allocation39_spill] sm:$0xff] }
 0x24d   : > { %5350 = vmatprep.mubr.msk.f32.mxu0 %vm296_vm0, %v6120_v49  ;;  %v6815_v49 = vld [vmem:[#allocation40_spill] sm:$0xff] }
 0x24e   : > { %5107 = vmatmul.mubr.msk.f32.gmra.mrb[22].mxu1 %vm296_vm0, %v6810_v32 }
 0x24f   : > { %5109 = vmatprep.mubr.msk.f32.mxu1 %vm296_vm0, %v6811_v33 }
 0x250   : > { %5351 = vmatmul.mubr.msk.f32.gmra.mrb[18].mxu0 %vm296_vm0, %v6126_v55  ;;  %v6816_v55 = vld [vmem:[#allocation12_spill] sm:$0xff] }
 0x251   : > { %5353 = vmatprep.mubr.msk.f32.mxu0 %vm296_vm0, %v6133_v57  ;;  %v4583_v57 = vld [vmem:[#allocation3 + $0x19a] sm:$0xff] }
 0x252   : > { %5110 = vmatmul.mubr.msk.f32.gmra.mrb[24].mxu1 %vm296_vm0, %v6812_v39 }
 0x253   : > { %5112 = vmatprep.mubr.msk.f32.mxu1 %vm296_vm0, %v6813_v41 }
 0x254   : > { %5354 = vmatmul.mubr.msk.f32.gmra.mrb[20].mxu0 %vm296_vm0, %v6139_v3  ;;  %v6817_v3 = vld [vmem:[#allocation13_spill] sm:$0xff] }
 0x255   : > { %5356 = vmatprep.mubr.msk.f32.mxu0 %vm296_vm0, %v6146_v7  ;;  %v4584_v7 = vld [vmem:[#allocation3 + $0x1a2] sm:$0xff] }
 0x256   : > { %5113 = vmatmul.mubr.msk.f32.gmra.mrb[26].mxu1 %vm296_vm0, %v6814_v47 }
 0x257   : > { %5115 = vmatprep.mubr.msk.f32.mxu1 %vm296_vm0, %v6815_v49 }
 0x258   : > { %5357 = vmatmul.mubr.msk.f32.gmra.mrb[22].mxu0 %vm296_vm0, %v6152_v20 }
 0x259   : > { %5359 = vmatprep.mubr.msk.f32.mxu0 %vm296_vm0, %v6159_v26 }
 0x25a   : > { %5116 = vmatmul.mubr.msk.f32.gmra.mrb[28].mxu1 %vm296_vm0, %v6378_v25 }
 0x25b   : > { %5118 = vmatprep.mubr.msk.f32.mxu1 %vm296_vm0, %v6384_v11 }
 0x25c   : > { %5360 = vmatmul.mubr.msk.f32.gmra.mrb[24].mxu0 %vm296_vm0, %v6165_v51 }
 0x25d   : > { %5362 = vmatprep.mubr.msk.f32.mxu0 %vm296_vm0, %v6167_v59 }
 0x25e   : > { %5119 = vmatmul.mubr.msk.f32.gmra.mrb[30].mxu1 %vm296_vm0, %v6394_v1 }
 0x25f   : > { %5147 = vmatprep.mubr.msk.f32.mxu1 %vm296_vm0, %v5985_v63 }
 0x260   : > { %5363 = vmatmul.mubr.msk.f32.gmra.mrb[26].mxu0 %vm296_vm0, %v6177_v17 }
 0x261   : > { %5365 = vmatprep.mubr.msk.f32.mxu0 %vm296_vm0, %v6816_v55 }
 0x262   : > { %5148 = vmatmul.mubr.msk.f32.vlgmr.msra.gmra.mrb[16].mxu1 %vm296_vm0, %v6007_v4 }
 0x263   : > { %5150 = vmatprep.mubr.msk.f32.mxu1 %vm296_vm0, %v6020_v8 }
 0x264   : > { %5366 = vmatmul.mubr.msk.f32.gmra.mrb[28].mxu0 %vm296_vm0, %v6817_v3 }
 0x265   : > { %5368 = vmatprep.mubr.msk.f32.mxu0 %vm296_vm0, %v4583_v57 }
 0x266   : > { %5151 = vmatmul.mubr.msk.f32.gmra.mrb[18].mxu1 %vm296_vm0, %v6033_v12 }
 0x267   : > { %5153 = vmatprep.mubr.msk.f32.mxu1 %vm296_vm0, %v6046_v16 }
 0x268   : > { %5369 = vmatmul.mubr.msk.f32.gmra.mrb[30].mxu0 %vm296_vm0, %v4584_v7 }
 0x26a   : > { %5154 = vmatmul.mubr.msk.f32.gmra.mrb[20].mxu1 %vm296_vm0, %v6059_v22 }
 0x26b   : > { %5156 = vmatprep.mubr.msk.f32.mxu1 %vm296_vm0, %v6072_v27 }
 0x26e   : > { %5157 = vmatmul.mubr.msk.f32.gmra.mrb[22].mxu1 %vm296_vm0, %v6085_v31 }
 0x26f   : > { %5159 = vmatprep.mubr.msk.f32.mxu1 %vm296_vm0, %v6098_v37 }
 0x272   : > { %5160 = vmatmul.mubr.msk.f32.gmra.mrb[24].mxu1 %vm296_vm0, %v6111_v45 }
 0x273   : > { %5162 = vmatprep.mubr.msk.f32.mxu1 %vm296_vm0, %v6124_v53 }
 0x276   : > { %5163 = vmatmul.mubr.msk.f32.gmra.mrb[26].mxu1 %vm296_vm0, %v6784_v34 }
 0x277   : > { %5165 = vmatprep.mubr.msk.f32.mxu1 %vm296_vm0, %v6785_v36 }
 0x27a   : > { %5166 = vmatmul.mubr.msk.f32.gmra.mrb[28].mxu1 %vm296_vm0, %v6787_v40 }
 0x27b   : > { %5168 = vmatprep.mubr.msk.f32.mxu1 %vm296_vm0, %v6520_v42 }
 0x27e   : > { %5169 = vmatmul.mubr.msk.f32.gmra.mrb[30].mxu1 %vm296_vm0, %v6530_v50 }
 0x2f5   : > { %v5075_v17 = vpop.f32.mrb[0].mxu1 }
 0x2f6   : > { %v1756_v63 = vpop.f32.mrb[1].mxu1 }
 0x2f9   : > { %v5078_v4 = vpop.f32.mrb[2].mxu1 }
 0x2fa   : > { %v1766_v8 = vpop.f32.mrb[3].mxu1 }
 0x2fd   : > { %v5081_v12 = vpop.f32.mrb[4].mxu1 }
 0x2fe   : > { %v1776_v16 = vpop.f32.mrb[5].mxu1 }
 0x2ff   : > { %v5325_v22 = vpop.f32.mrb[0].mxu0 }
 0x300   : > { %v5373_v27 = vadd.f32 %v5325_v22, %v5075_v17  ;;  %v3709_v31 = vpop.f32.mrb[1].mxu0 }
 0x301   : > { %v5374_v37 = vadd.f32 %v3709_v31, %v1756_v63  ;;  %v5084_v45 = vpop.f32.mrb[6].mxu1 }
 0x302   : > { %v1786_v53 = vpop.f32.mrb[7].mxu1 }
 0x303   : > { %3900 = vxpose.xlu0.b32.start [1/16] (narrow) %v5374_v37, 8  ;;  %v5328_v15 = vpop.f32.mrb[2].mxu0 }
 0x304   : > { %v5375_v20 = vadd.f32 %v5328_v15, %v5078_v4  ;;  %v3719_v26 = vpop.f32.mrb[3].mxu0 }
 0x305   : > { %v5376_v43 = vadd.f32 %v3719_v26, %v1766_v8  ;;  %v5087_v51 = vpop.f32.mrb[8].mxu1 }
 0x306   : > { %v1796_v59 = vpop.f32.mrb[9].mxu1 }
 0x307   : > { %3901 = vxpose.xlu0.b32.cont [2/16] (narrow) %v5373_v27, 8  ;;  %v5331_v35 = vpop.f32.mrb[4].mxu0 }
 0x308   : > { %v5377_v30 = vadd.f32 %v5331_v35, %v5081_v12  ;;  %v3729_v11 = vpop.f32.mrb[5].mxu0 }
 0x309   : > { %v5378_v25 = vadd.f32 %v3729_v11, %v1776_v16  ;;  %v5090_v1 = vpop.f32.mrb[10].mxu1 }
 0x30a   : > { %v1806_v62 = vpop.f32.mrb[11].mxu1 }
 0x30b   : > { %3902 = vxpose.xlu0.b32.cont [3/16] (narrow) %v5376_v43, 8  ;;  %v5334_v34 = vpop.f32.mrb[6].mxu0 }
 0x30c   : > { %v5379_v36 = vadd.f32 %v5334_v34, %v5084_v45  ;;  %v3739_v38 = vpop.f32.mrb[7].mxu0 }
 0x30d   : > { %v5380_v40 = vadd.f32 %v3739_v38, %v1786_v53  ;;  %v5093_v42 = vpop.f32.mrb[12].mxu1 }
 0x30e   : > { %v1816_v44 = vpop.f32.mrb[13].mxu1 }
 0x30f   : > { %3903 = vxpose.xlu0.b32.cont [4/16] (narrow) %v5375_v20, 8  ;;  %v5337_v46 = vpop.f32.mrb[8].mxu0 }
 0x310   : > { %v5381_v48 = vadd.f32 %v5337_v46, %v5087_v51  ;;  %v3749_v50 = vpop.f32.mrb[9].mxu0 }
 0x311   : > { %v5382_v52 = vadd.f32 %v3749_v50, %v1796_v59  ;;  %v5096_v54 = vpop.f32.mrb[14].mxu1 }
 0x312   : > { %v1826_v56 = vpop.f32.mrb[15].mxu1 }
 0x313   : > { %3904 = vxpose.xlu0.b32.cont [5/16] (narrow) %v5378_v25, 8  ;;  %v5340_v21 = vpop.f32.mrb[10].mxu0 }
 0x314   : > { %v5383_v58 = vadd.f32 %v5340_v21, %v5090_v1  ;;  %v3759_v60 = vpop.f32.mrb[11].mxu0 }
 0x315   : > { %v5384_v61 = vadd.f32 %v3759_v60, %v1806_v62 }
 0x317   : > { %3905 = vxpose.xlu0.b32.cont [6/16] (narrow) %v5377_v30, 8  ;;  %v5343_v0 = vpop.f32.mrb[12].mxu0 }
 0x318   : > { %v5385_v2 = vadd.f32 %v5343_v0, %v5093_v42  ;;  %v3769_v5 = vpop.f32.mrb[13].mxu0 }
 0x319   : > { %v5386_v6 = vadd.f32 %v3769_v5, %v1816_v44 }
 0x31b   : > { %3906 = vxpose.xlu0.b32.cont [7/16] (narrow) %v5380_v40, 8  ;;  %v5346_v9 = vpop.f32.mrb[14].mxu0 }
 0x31c   : > { %v5387_v10 = vadd.f32 %v5346_v9, %v5096_v54  ;;  %v3779_v13 = vpop.f32.mrb[15].mxu0 }
 0x31d   : > { %v5388_v14 = vadd.f32 %v3779_v13, %v1826_v56 }
 0x31f   : > { %3907 = vxpose.xlu0.b32.cont [8/16] (narrow) %v5379_v36, 8  ;;  %v5349_v18 = vpop.f32.mrb[16].mxu0 }
 0x320   : > { %v3789_v19 = vpop.f32.mrb[17].mxu0 }
 0x323   : > { %3908 = vxpose.xlu0.b32.cont [9/16] (narrow) %v5382_v52, 8  ;;  %v5352_v23 = vpop.f32.mrb[18].mxu0 }
 0x324   : > { %v3799_v24 = vpop.f32.mrb[19].mxu0 }
 0x327   : > { %3909 = vxpose.xlu0.b32.cont [10/16] (narrow) %v5381_v48, 8  ;;  %v5355_v28 = vpop.f32.mrb[20].mxu0 }
 0x328   : > { %v3809_v29 = vpop.f32.mrb[21].mxu0 }
 0x32b   : > { %3910 = vxpose.xlu0.b32.cont [11/16] (narrow) %v5384_v61, 8  ;;  %v5358_v32 = vpop.f32.mrb[22].mxu0 }
 0x32c   : > { %v3819_v33 = vpop.f32.mrb[23].mxu0 }
 0x32f   : > { %3911 = vxpose.xlu0.b32.cont [12/16] (narrow) %v5383_v58, 8  ;;  %v5361_v39 = vpop.f32.mrb[24].mxu0 }
 0x330   : > { %v3829_v41 = vpop.f32.mrb[25].mxu0 }
 0x333   : > { %3912 = vxpose.xlu0.b32.cont [13/16] (narrow) %v5386_v6, 8  ;;  %v5364_v47 = vpop.f32.mrb[26].mxu0  ;;  %v6818_v6 = vmov 0.0  }
 0x334   : > { %v3839_v49 = vpop.f32.mrb[27].mxu0  ;;  %443 = vst.msk [vmem:[%s5745_s8] sm:$0xf] %vm442_vm4, %v6818_v6 }
 0x335   : > { %v5149_v55 = vpop.f32.mrb[16].mxu1 }
 0x336   : > { %v5389_v57 = vadd.f32 %v5349_v18, %v5149_v55  ;;  %v2226_v3 = vpop.f32.mrb[17].mxu1 }
 0x337   : > { %3913 = vxpose.xlu0.b32.cont [14/16] (narrow) %v5385_v2, 8  ;;  %v5390_v7 = vadd.f32 %v3789_v19, %v2226_v3  ;;  %v5367_v17 = vpop.f32.mrb[28].mxu0 }
 0x338   : > { %v3849_v63 = vpop.f32.mrb[29].mxu0 }
 0x339   : > { %3932 = vxpose.xlu1.b32.start [1/16] (narrow) %v5390_v7, 8  ;;  %v5152_v4 = vpop.f32.mrb[18].mxu1 }
 0x33a   : > { %v5391_v8 = vadd.f32 %v5352_v23, %v5152_v4  ;;  %v2236_v12 = vpop.f32.mrb[19].mxu1 }
 0x33b   : > { %3914 = vxpose.xlu0.b32.cont [15/16] (narrow) %v5388_v14, 8  ;;  %v5392_v16 = vadd.f32 %v3799_v24, %v2236_v12  ;;  %v5370_v22 = vpop.f32.mrb[30].mxu0 }
 0x33c   : > { %v3859_v27 = vpop.f32.mrb[31].mxu0 }
 0x33d   : > { %3933 = vxpose.xlu1.b32.cont [2/16] (narrow) %v5389_v57, 8  ;;  %v5155_v31 = vpop.f32.mrb[20].mxu1 }
 0x33e   : > { %v5393_v37 = vadd.f32 %v5355_v28, %v5155_v31  ;;  %v2246_v45 = vpop.f32.mrb[21].mxu1 }
 0x33f   : > { %3915 = vxpose.xlu0.b32.end [16/16] (narrow) %v5387_v10, 8  ;;  %v5394_v53 = vadd.f32 %v3809_v29, %v2246_v45  ;;  %v3981_v10 = vld [vmem:[%s5745_s8] sm:$0xf] }
 0x341   : > { %3934 = vxpose.xlu1.b32.cont [3/16] (narrow) %v5392_v16, 8  ;;  %v5158_v15 = vpop.f32.mrb[22].mxu1 }
 0x342   : > { %v5395_v20 = vadd.f32 %v5358_v32, %v5158_v15  ;;  %v2256_v26 = vpop.f32.mrb[23].mxu1 }
 0x343   : > { %v5396_v43 = vadd.f32 %v3819_v33, %v2256_v26 }
 0x345   : > { %3935 = vxpose.xlu1.b32.cont [4/16] (narrow) %v5391_v8, 8  ;;  %v5161_v51 = vpop.f32.mrb[24].mxu1 }
 0x346   : > { %v5397_v59 = vadd.f32 %v5361_v39, %v5161_v51  ;;  %v2266_v35 = vpop.f32.mrb[25].mxu1 }
 0x347   : > { %v5398_v30 = vadd.f32 %v3829_v41, %v2266_v35 }
 0x349   : > { %3936 = vxpose.xlu1.b32.cont [5/16] (narrow) %v5394_v53, 8  ;;  %v5164_v11 = vpop.f32.mrb[26].mxu1 }
 0x34a   : > { %v5399_v25 = vadd.f32 %v5364_v47, %v5164_v11  ;;  %v2276_v1 = vpop.f32.mrb[27].mxu1 }
 0x34b   : > { %v5400_v62 = vadd.f32 %v3839_v49, %v2276_v1 }
 0x34d   : > { %3937 = vxpose.xlu1.b32.cont [6/16] (narrow) %v5393_v37, 8  ;;  %v5167_v34 = vpop.f32.mrb[28].mxu1 }
 0x34e   : > { %v5401_v36 = vadd.f32 %v5367_v17, %v5167_v34  ;;  %v2286_v38 = vpop.f32.mrb[29].mxu1 }
 0x34f   : > { %v5402_v40 = vadd.f32 %v3849_v63, %v2286_v38 }
 0x351   : > { %3938 = vxpose.xlu1.b32.cont [7/16] (narrow) %v5396_v43, 8  ;;  %v5170_v42 = vpop.f32.mrb[30].mxu1 }
 0x352   : > { %v5403_v44 = vadd.f32 %v5370_v22, %v5170_v42  ;;  %v2296_v46 = vpop.f32.mrb[31].mxu1 }
 0x353   : > { %v5404_v48 = vadd.f32 %v3859_v27, %v2296_v46 }
 0x355   : > { %3939 = vxpose.xlu1.b32.cont [8/16] (narrow) %v5395_v20, 8 }
 0x359   : > { %3940 = vxpose.xlu1.b32.cont [9/16] (narrow) %v5398_v30, 8 }
 0x35d   : > { %3941 = vxpose.xlu1.b32.cont [10/16] (narrow) %v5397_v59, 8 }
 0x361   : > { %3942 = vxpose.xlu1.b32.cont [11/16] (narrow) %v5400_v62, 8 }
 0x365   : > { %3943 = vxpose.xlu1.b32.cont [12/16] (narrow) %v5399_v25, 8 }
 0x369   : > { %3944 = vxpose.xlu1.b32.cont [13/16] (narrow) %v5402_v40, 8 }
 0x36d   : > { %3945 = vxpose.xlu1.b32.cont [14/16] (narrow) %v5401_v36, 8 }
 0x371   : > { %3946 = vxpose.xlu1.b32.cont [15/16] (narrow) %v5404_v48, 8 }
 0x375   : > { %3947 = vxpose.xlu1.b32.end [16/16] (narrow) %v5403_v44, 8 }
 0x383   : > { %v3916_v50 = vpop.trf.xlu0 }
 0x384   : > { %v3974_v52 = vmul.f32 %v3916_v50, %v3916_v50  ;;  %v3969_v54 = vsel %vm611_vm3, %v3916_v50, 0.0 }
 0x386   : > { %v3976_v0 = vsel %vm611_vm3, %v3974_v52, 0.0 }
 0x3b9   : > { %v3948_v56 = vpop.trf.xlu1 }
 0x3ba   : > { %v3966_v21 = vcombine.low %v3916_v50, %v3948_v56  ;;  %v3970_v58 = vsel %vm611_vm3, %v3948_v56, 0.0  ;;  %v3975_v60 = vmul.f32 %v3948_v56, %v3948_v56 }
 0x3bb   : > { %v3971_v61 = vadd.f32 %v3970_v58, %v3969_v54 }
 0x3bc   : > { %3968 = vst [vmem:[%s5740_s30] sm:$0xff] %v3966_v21  ;;  %v3977_v2 = vsel %vm611_vm3, %v3975_v60, 0.0 }
 0x3bd   : > { %3972 = vadd.xlane.f32.xlu0 %v3971_v61  ;;  %v3978_v5 = vadd.f32 %v3977_v2, %v3976_v0 }
 0x3c1   : > { %3979 = vadd.xlane.f32.xlu0 %v3978_v5 }
 0x44a   : > { %v3973_v9 = vpop.xlane.xlu0 %3972 }
 0x44e   : > { %v3980_v13 = vpop.xlane.xlu0 %3979 }
 0x44f   : > { %v3983_v14 = vsel %vm3982_vm5, %v3973_v9, %v3980_v13 }
 0x450   : > { %v3984_v18 = vadd.f32 %v3983_v14, %v3981_v10 }
 0x452   : > { %3986 = vst.msk [vmem:[%s5745_s8] sm:$0xf] %vm442_vm4, %v3984_v18 }
 0x453 PF: > { %s16_s20 = sadd.s32 1, %s5681_s20   ;;  %s6819_s18 = smov %s5677_s19 }
 0x454   : > { %p13_p5 = scmp.ge.s32.totalorder %s16_s20, 4   ;;  %s6820_s19 = smov %s6822_s21 }
 0x456   :  { %15 = sbr.rel (!%p13_p5) target bundleno = 2 (0x2), region = 131 }
 0x45d   :  { %4031 = vsyncmov [#allocation4] }
 0x460   :  { %s4032_s30 = vpop.sfrf %4031 }
 0x461   :  { %p4621_p6 = scmp.ne.s32.totalorder %s4032_s30, 0 }
 0x463   :  { %4036 = shalt.err (%p4621_p6)  }

</bundles_post_ra>
